<compile_context>
chip_gen: v7x
topology: tpu7x:2x2x1
jax: 0.10.0
libtpu: 0.0.40
codegen_flags: <defaults>
</compile_context>

<pallas_src>
import functools

import jax
import jax.numpy as jnp
from jax import lax
from jax.experimental import pallas as pl
from jax.experimental.pallas import tpu as pltpu

_LANE = 128


def _resnet_block_kernel(x_ref, w1_ref, w2_ref, o_ref, *, H, W, C, eps):
    # x_ref : (1, H, W, C)  NHWC activation block, C padded to a lane multiple
    # w*_ref: (3, 3*C, C)   HWIO weights with the dx taps fused along K
    # o_ref : (1, H, W, C)
    x = x_ref[0].astype(jnp.float32)                       # (H, W, C)
    inv_hw = 1.0 / (H * W)

    def conv3x3_reflect(t, w_ref):
        # Reflection-padded 3x3 conv, t: (H, W, C) f32 -> (H*W, C) f32.
        # dx shifts (with reflection folded in) along W, then one lane-aligned
        # concat so each kernel row dy becomes a single K=3C matmul.
        t_l = jnp.concatenate([t[:, 1:2], t[:, :W - 1]], axis=1)        # t[:, w-1], reflect at w=0
        t_r = jnp.concatenate([t[:, 1:], t[:, W - 2:W - 1]], axis=1)    # t[:, w+1], reflect at w=W-1
        xcat = jnp.concatenate([t_l, t, t_r], axis=-1)                  # (H, W, 3C)

        # dy shifts move whole (W, 3C) tile planes along the leading axis.
        slabs = (
            jnp.concatenate([xcat[1:2], xcat[:H - 1]], axis=0),         # row h-1, reflect at h=0
            xcat,                                                       # row h
            jnp.concatenate([xcat[1:], xcat[H - 2:H - 1]], axis=0),     # row h+1, reflect at h=H-1
        )
        acc = jnp.zeros((H * W, C), jnp.float32)
        for dy in range(3):
            acc = acc + jnp.dot(slabs[dy].reshape(H * W, 3 * C), w_ref[dy],
                                preferred_element_type=jnp.float32)
        return acc                                                      # (H*W, C)
        # Note: conv bias omitted on purpose -- InstanceNorm cancels it exactly.

    def inorm(y):
        # Single-pass InstanceNorm2d (affine=False, biased variance), per channel
        # over the spatial axis. All-zero padded channels stay exactly zero.
        s = jnp.sum(y, axis=0, keepdims=True)
        ss = jnp.sum(y * y, axis=0, keepdims=True)
        mean = s * inv_hw
        var = ss * inv_hw - mean * mean
        return (y - mean) * lax.rsqrt(var + eps)

    h = jnp.maximum(inorm(conv3x3_reflect(x, w1_ref)), 0.0)             # conv1 + IN + ReLU
    y = inorm(conv3x3_reflect(h.reshape(H, W, C), w2_ref))              # conv2 + IN
    o_ref[0] = (x + y.reshape(H, W, C)).astype(o_ref.dtype)             # residual add


def resnet_block(x_nchw, w1_oihw, b1, w2_oihw, b2, eps=1e-5):
    # b1/b2 accepted for parity with nn.Conv2d(bias=True) but unused:
    # InstanceNorm(affine=False) subtracts the per-channel mean, cancelling them.
    del b1, b2
    N, C, H, W = x_nchw.shape
    assert H >= 2 and W >= 2, "ReflectionPad2d(1) requires H, W >= 2"
    Cp = ((C + _LANE - 1) // _LANE) * _LANE                 # lane-dense channel axis

    # NCHW -> NHWC, zero-pad channels up to a multiple of 128 lanes.
    x = jnp.transpose(x_nchw, (0, 2, 3, 1)).astype(jnp.float32)
    x = jnp.pad(x, ((0, 0), (0, 0), (0, 0), (0, Cp - C)))

    def prep_w(w_oihw):
        w = jnp.transpose(w_oihw, (2, 3, 1, 0))             # OIHW -> HWIO (3,3,Cin,Cout)
        w = jnp.pad(w, ((0, 0), (0, 0), (0, Cp - C), (0, Cp - C)))
        return w.reshape(3, 3 * Cp, Cp).astype(jnp.float32)  # fuse dx taps into K

    w1 = prep_w(w1_oihw)
    w2 = prep_w(w2_oihw)

    kernel = functools.partial(_resnet_block_kernel, H=H, W=W, C=Cp, eps=eps)
    out = pl.pallas_call(
        kernel,
        out_shape=jax.ShapeDtypeStruct((N, H, W, Cp), x.dtype),
        grid_spec=pltpu.PrefetchScalarGridSpec(
            num_scalar_prefetch=0,
            grid=(N,),                                      # one image per step (IN needs full H*W)
            in_specs=[
                pl.BlockSpec((1, H, W, Cp), lambda b: (b, 0, 0, 0)),
                pl.BlockSpec((3, 3 * Cp, Cp), lambda b: (0, 0, 0)),   # weights stay resident
                pl.BlockSpec((3, 3 * Cp, Cp), lambda b: (0, 0, 0)),
            ],
            out_specs=pl.BlockSpec((1, H, W, Cp), lambda b: (b, 0, 0, 0)),
        ),
        compiler_params=pltpu.CompilerParams(
            dimension_semantics=("parallel",),
            vmem_limit_bytes=32 * 1024 * 1024,              # explicit budget; safe on v7x 64 MiB
        ),
    )(x, w1, w2)
    out = out[..., :C]                                      # drop lane padding
    return jnp.transpose(out, (0, 3, 1, 2))                 # NHWC -> NCHW


def _reference(x, w1, b1, w2, b2, eps=1e-5):
    # pure-JAX reference of the PyTorch forward (NCHW), *including* the conv
    # biases, to demonstrate the kernel's bias-drop is an exact no-op.
    def refpad(t):
        return jnp.pad(t, ((0, 0), (0, 0), (1, 1), (1, 1)), mode="reflect")

    def conv(t, w, b):
        y = lax.conv_general_dilated(t, w, (1, 1), "VALID",
                                     dimension_numbers=("NCHW", "OIHW", "NCHW"))
        return y + b[None, :, None, None]

    def inorm(t):
        m = jnp.mean(t, axis=(2, 3), keepdims=True)
        v = jnp.mean((t - m) ** 2, axis=(2, 3), keepdims=True)
        return (t - m) / jnp.sqrt(v + eps)

    h = jax.nn.relu(inorm(conv(refpad(x), w1, b1)))
    h2 = inorm(conv(refpad(h), w2, b2))
    return x + h2


if __name__ == "__main__":
    N, C, H, W = 2, 4, 16, 16
    key = jax.random.PRNGKey(0)
    kx, kw1, kb1, kw2, kb2 = jax.random.split(key, 5)

    x = jax.random.normal(kx, (N, C, H, W), dtype=jnp.float32)
    # PyTorch shapes: Conv2d(dim, dim, kernel_size=3, bias=True) -> OIHW weights
    w1 = 0.1 * jax.random.normal(kw1, (C, C, 3, 3), dtype=jnp.float32)
    b1 = 0.1 * jax.random.normal(kb1, (C,), dtype=jnp.float32)
    w2 = 0.1 * jax.random.normal(kw2, (C, C, 3, 3), dtype=jnp.float32)
    b2 = 0.1 * jax.random.normal(kb2, (C,), dtype=jnp.float32)

    out = jax.block_until_ready(resnet_block(x, w1, b1, w2, b2))
    ref = jax.block_until_ready(_reference(x, w1, b1, w2, b2))

    assert out.shape == (N, C, H, W) and out.dtype == x.dtype
    assert jnp.allclose(out, ref, atol=1e-2, rtol=1e-2), "mismatch vs reference"
    print("KERNEL_OK")
</pallas_src>

<mosaic_0001>
module attributes {stable_mosaic.version = 11 : i64} {
  func.func @_resnet_block_kernel(%arg0: i32, %arg1: memref<1x16x16x128xf32, #tpu.memory_space<vmem>>, %arg2: memref<3x384x128xf32, #tpu.memory_space<vmem>>, %arg3: memref<3x384x128xf32, #tpu.memory_space<vmem>>, %arg4: memref<1x16x16x128xf32, #tpu.memory_space<vmem>>) attributes {dimension_semantics = [#tpu.dimension_semantics<parallel>], iteration_bounds = array<i64: 2>, scalar_prefetch = 0 : i64, scratch_operands = 0 : i64, tpu.core_type = #tpu.core_type<tc>, window_params = [{transform_indices = @transform_0, window_bounds = array<i64: 1, 16, 16, 128>}, {pipeline_mode = #tpu.pipeline_mode<synchronous>, transform_indices = @transform_1, window_bounds = array<i64: 3, 384, 128>}, {pipeline_mode = #tpu.pipeline_mode<synchronous>, transform_indices = @transform_2, window_bounds = array<i64: 3, 384, 128>}, {transform_indices = @transform_3, window_bounds = array<i64: 1, 16, 16, 128>}]} {
    %c0 = arith.constant 0 : index
    %c0_0 = arith.constant 0 : index
    %c0_1 = arith.constant 0 : index
    %c0_2 = arith.constant 0 : index
    %0 = vector.load %arg1[%c0, %c0_0, %c0_1, %c0_2] : memref<1x16x16x128xf32, #tpu.memory_space<vmem>>, vector<1x16x16x128xf32>
    %1 = vector.shape_cast %0 : vector<1x16x16x128xf32> to vector<16x16x128xf32>
    %2 = vector.extract_strided_slice %1 {offsets = [0, 1, 0], sizes = [16, 1, 128], strides = [1, 1, 1]} : vector<16x16x128xf32> to vector<16x1x128xf32>
    %3 = vector.extract_strided_slice %1 {offsets = [0, 0, 0], sizes = [16, 15, 128], strides = [1, 1, 1]} : vector<16x16x128xf32> to vector<16x15x128xf32>
    %4 = tpu.concatenate %2, %3 in 1 : vector<16x1x128xf32>, vector<16x15x128xf32> -> vector<16x16x128xf32>
    %5 = vector.extract_strided_slice %1 {offsets = [0, 1, 0], sizes = [16, 15, 128], strides = [1, 1, 1]} : vector<16x16x128xf32> to vector<16x15x128xf32>
    %6 = vector.extract_strided_slice %1 {offsets = [0, 14, 0], sizes = [16, 1, 128], strides = [1, 1, 1]} : vector<16x16x128xf32> to vector<16x1x128xf32>
    %7 = tpu.concatenate %5, %6 in 1 : vector<16x15x128xf32>, vector<16x1x128xf32> -> vector<16x16x128xf32>
    %8 = tpu.concatenate %4, %1, %7 in 2 : vector<16x16x128xf32>, vector<16x16x128xf32>, vector<16x16x128xf32> -> vector<16x16x384xf32>
    %9 = vector.extract_strided_slice %8 {offsets = [1, 0, 0], sizes = [1, 16, 384], strides = [1, 1, 1]} : vector<16x16x384xf32> to vector<1x16x384xf32>
    %10 = vector.extract_strided_slice %8 {offsets = [0, 0, 0], sizes = [15, 16, 384], strides = [1, 1, 1]} : vector<16x16x384xf32> to vector<15x16x384xf32>
    %11 = tpu.concatenate %9, %10 in 0 : vector<1x16x384xf32>, vector<15x16x384xf32> -> vector<16x16x384xf32>
    %12 = vector.extract_strided_slice %8 {offsets = [1, 0, 0], sizes = [15, 16, 384], strides = [1, 1, 1]} : vector<16x16x384xf32> to vector<15x16x384xf32>
    %13 = vector.extract_strided_slice %8 {offsets = [14, 0, 0], sizes = [1, 16, 384], strides = [1, 1, 1]} : vector<16x16x384xf32> to vector<1x16x384xf32>
    %14 = tpu.concatenate %12, %13 in 0 : vector<15x16x384xf32>, vector<1x16x384xf32> -> vector<16x16x384xf32>
    %cst = arith.constant 0.000000e+00 : f32
    %15 = vector.broadcast %cst : f32 to vector<256x128xf32>
    %16 = vector.shape_cast %11 : vector<16x16x384xf32> to vector<256x384xf32>
    %c0_3 = arith.constant 0 : index
    %c0_4 = arith.constant 0 : index
    %c0_5 = arith.constant 0 : index
    %17 = vector.load %arg2[%c0_3, %c0_4, %c0_5] : memref<3x384x128xf32, #tpu.memory_space<vmem>>, vector<1x384x128xf32>
    %18 = vector.shape_cast %17 : vector<1x384x128xf32> to vector<384x128xf32>
    %cst_6 = arith.constant dense<0.000000e+00> : vector<256x128xf32>
    %19 = tpu.matmul %16, %18, %cst_6 {dimension_numbers = #tpu.dot_dimension_numbers<[1], [0], [0], [1], [0, 0, 1, 1], [], []>} : vector<256x384xf32>, vector<384x128xf32>, vector<256x128xf32> -> vector<256x128xf32>
    %20 = arith.addf %15, %19 : vector<256x128xf32>
    %21 = vector.shape_cast %8 : vector<16x16x384xf32> to vector<256x384xf32>
    %c1 = arith.constant 1 : index
    %c0_7 = arith.constant 0 : index
    %c0_8 = arith.constant 0 : index
    %22 = vector.load %arg2[%c1, %c0_7, %c0_8] : memref<3x384x128xf32, #tpu.memory_space<vmem>>, vector<1x384x128xf32>
    %23 = vector.shape_cast %22 : vector<1x384x128xf32> to vector<384x128xf32>
    %cst_9 = arith.constant dense<0.000000e+00> : vector<256x128xf32>
    %24 = tpu.matmul %21, %23, %cst_9 {dimension_numbers = #tpu.dot_dimension_numbers<[1], [0], [0], [1], [0, 0, 1, 1], [], []>} : vector<256x384xf32>, vector<384x128xf32>, vector<256x128xf32> -> vector<256x128xf32>
    %25 = arith.addf %20, %24 : vector<256x128xf32>
    %26 = vector.shape_cast %14 : vector<16x16x384xf32> to vector<256x384xf32>
    %c2 = arith.constant 2 : index
    %c0_10 = arith.constant 0 : index
    %c0_11 = arith.constant 0 : index
    %27 = vector.load %arg2[%c2, %c0_10, %c0_11] : memref<3x384x128xf32, #tpu.memory_space<vmem>>, vector<1x384x128xf32>
    %28 = vector.shape_cast %27 : vector<1x384x128xf32> to vector<384x128xf32>
    %cst_12 = arith.constant dense<0.000000e+00> : vector<256x128xf32>
    %29 = tpu.matmul %26, %28, %cst_12 {dimension_numbers = #tpu.dot_dimension_numbers<[1], [0], [0], [1], [0, 0, 1, 1], [], []>} : vector<256x384xf32>, vector<384x128xf32>, vector<256x128xf32> -> vector<256x128xf32>
    %30 = arith.addf %25, %29 : vector<256x128xf32>
    %cst_13 = arith.constant dense<0.000000e+00> : vector<128xf32>
    %31 = vector.multi_reduction <add>, %30, %cst_13 [0] : vector<256x128xf32> to vector<128xf32>
    %32 = vector.shape_cast %31 : vector<128xf32> to vector<1x128xf32>
    %33 = arith.mulf %30, %30 : vector<256x128xf32>
    %cst_14 = arith.constant dense<0.000000e+00> : vector<128xf32>
    %34 = vector.multi_reduction <add>, %33, %cst_14 [0] : vector<256x128xf32> to vector<128xf32>
    %35 = vector.shape_cast %34 : vector<128xf32> to vector<1x128xf32>
    %cst_15 = arith.constant 3.906250e-03 : f32
    %36 = vector.broadcast %cst_15 : f32 to vector<1x128xf32>
    %37 = arith.mulf %32, %36 : vector<1x128xf32>
    %cst_16 = arith.constant 3.906250e-03 : f32
    %38 = vector.broadcast %cst_16 : f32 to vector<1x128xf32>
    %39 = arith.mulf %35, %38 : vector<1x128xf32>
    %40 = arith.mulf %37, %37 : vector<1x128xf32>
    %41 = arith.subf %39, %40 : vector<1x128xf32>
    %42 = vector.broadcast %37 : vector<1x128xf32> to vector<256x128xf32>
    %43 = arith.subf %30, %42 : vector<256x128xf32>
    %cst_17 = arith.constant 9.99999974E-6 : f32
    %44 = vector.broadcast %cst_17 : f32 to vector<1x128xf32>
    %45 = arith.addf %41, %44 : vector<1x128xf32>
    %46 = math.rsqrt %45 : vector<1x128xf32>
    %47 = vector.broadcast %46 : vector<1x128xf32> to vector<256x128xf32>
    %48 = arith.mulf %43, %47 : vector<256x128xf32>
    %cst_18 = arith.constant 0.000000e+00 : f32
    %49 = vector.broadcast %cst_18 : f32 to vector<256x128xf32>
    %50 = arith.maximumf %48, %49 : vector<256x128xf32>
    %51 = vector.shape_cast %50 : vector<256x128xf32> to vector<16x16x128xf32>
    %52 = vector.extract_strided_slice %51 {offsets = [0, 1, 0], sizes = [16, 1, 128], strides = [1, 1, 1]} : vector<16x16x128xf32> to vector<16x1x128xf32>
    %53 = vector.extract_strided_slice %51 {offsets = [0, 0, 0], sizes = [16, 15, 128], strides = [1, 1, 1]} : vector<16x16x128xf32> to vector<16x15x128xf32>
    %54 = tpu.concatenate %52, %53 in 1 : vector<16x1x128xf32>, vector<16x15x128xf32> -> vector<16x16x128xf32>
    %55 = vector.extract_strided_slice %51 {offsets = [0, 1, 0], sizes = [16, 15, 128], strides = [1, 1, 1]} : vector<16x16x128xf32> to vector<16x15x128xf32>
    %56 = vector.extract_strided_slice %51 {offsets = [0, 14, 0], sizes = [16, 1, 128], strides = [1, 1, 1]} : vector<16x16x128xf32> to vector<16x1x128xf32>
    %57 = tpu.concatenate %55, %56 in 1 : vector<16x15x128xf32>, vector<16x1x128xf32> -> vector<16x16x128xf32>
    %58 = tpu.concatenate %54, %51, %57 in 2 : vector<16x16x128xf32>, vector<16x16x128xf32>, vector<16x16x128xf32> -> vector<16x16x384xf32>
    %59 = vector.extract_strided_slice %58 {offsets = [1, 0, 0], sizes = [1, 16, 384], strides = [1, 1, 1]} : vector<16x16x384xf32> to vector<1x16x384xf32>
    %60 = vector.extract_strided_slice %58 {offsets = [0, 0, 0], sizes = [15, 16, 384], strides = [1, 1, 1]} : vector<16x16x384xf32> to vector<15x16x384xf32>
    %61 = tpu.concatenate %59, %60 in 0 : vector<1x16x384xf32>, vector<15x16x384xf32> -> vector<16x16x384xf32>
    %62 = vector.extract_strided_slice %58 {offsets = [1, 0, 0], sizes = [15, 16, 384], strides = [1, 1, 1]} : vector<16x16x384xf32> to vector<15x16x384xf32>
    %63 = vector.extract_strided_slice %58 {offsets = [14, 0, 0], sizes = [1, 16, 384], strides = [1, 1, 1]} : vector<16x16x384xf32> to vector<1x16x384xf32>
    %64 = tpu.concatenate %62, %63 in 0 : vector<15x16x384xf32>, vector<1x16x384xf32> -> vector<16x16x384xf32>
    %cst_19 = arith.constant 0.000000e+00 : f32
    %65 = vector.broadcast %cst_19 : f32 to vector<256x128xf32>
    %66 = vector.shape_cast %61 : vector<16x16x384xf32> to vector<256x384xf32>
    %c0_20 = arith.constant 0 : index
    %c0_21 = arith.constant 0 : index
    %c0_22 = arith.constant 0 : index
    %67 = vector.load %arg3[%c0_20, %c0_21, %c0_22] : memref<3x384x128xf32, #tpu.memory_space<vmem>>, vector<1x384x128xf32>
    %68 = vector.shape_cast %67 : vector<1x384x128xf32> to vector<384x128xf32>
    %cst_23 = arith.constant dense<0.000000e+00> : vector<256x128xf32>
    %69 = tpu.matmul %66, %68, %cst_23 {dimension_numbers = #tpu.dot_dimension_numbers<[1], [0], [0], [1], [0, 0, 1, 1], [], []>} : vector<256x384xf32>, vector<384x128xf32>, vector<256x128xf32> -> vector<256x128xf32>
    %70 = arith.addf %65, %69 : vector<256x128xf32>
    %71 = vector.shape_cast %58 : vector<16x16x384xf32> to vector<256x384xf32>
    %c1_24 = arith.constant 1 : index
    %c0_25 = arith.constant 0 : index
    %c0_26 = arith.constant 0 : index
    %72 = vector.load %arg3[%c1_24, %c0_25, %c0_26] : memref<3x384x128xf32, #tpu.memory_space<vmem>>, vector<1x384x128xf32>
    %73 = vector.shape_cast %72 : vector<1x384x128xf32> to vector<384x128xf32>
    %cst_27 = arith.constant dense<0.000000e+00> : vector<256x128xf32>
    %74 = tpu.matmul %71, %73, %cst_27 {dimension_numbers = #tpu.dot_dimension_numbers<[1], [0], [0], [1], [0, 0, 1, 1], [], []>} : vector<256x384xf32>, vector<384x128xf32>, vector<256x128xf32> -> vector<256x128xf32>
    %75 = arith.addf %70, %74 : vector<256x128xf32>
    %76 = vector.shape_cast %64 : vector<16x16x384xf32> to vector<256x384xf32>
    %c2_28 = arith.constant 2 : index
    %c0_29 = arith.constant 0 : index
    %c0_30 = arith.constant 0 : index
    %77 = vector.load %arg3[%c2_28, %c0_29, %c0_30] : memref<3x384x128xf32, #tpu.memory_space<vmem>>, vector<1x384x128xf32>
    %78 = vector.shape_cast %77 : vector<1x384x128xf32> to vector<384x128xf32>
    %cst_31 = arith.constant dense<0.000000e+00> : vector<256x128xf32>
    %79 = tpu.matmul %76, %78, %cst_31 {dimension_numbers = #tpu.dot_dimension_numbers<[1], [0], [0], [1], [0, 0, 1, 1], [], []>} : vector<256x384xf32>, vector<384x128xf32>, vector<256x128xf32> -> vector<256x128xf32>
    %80 = arith.addf %75, %79 : vector<256x128xf32>
    %cst_32 = arith.constant dense<0.000000e+00> : vector<128xf32>
    %81 = vector.multi_reduction <add>, %80, %cst_32 [0] : vector<256x128xf32> to vector<128xf32>
    %82 = vector.shape_cast %81 : vector<128xf32> to vector<1x128xf32>
    %83 = arith.mulf %80, %80 : vector<256x128xf32>
    %cst_33 = arith.constant dense<0.000000e+00> : vector<128xf32>
    %84 = vector.multi_reduction <add>, %83, %cst_33 [0] : vector<256x128xf32> to vector<128xf32>
    %85 = vector.shape_cast %84 : vector<128xf32> to vector<1x128xf32>
    %cst_34 = arith.constant 3.906250e-03 : f32
    %86 = vector.broadcast %cst_34 : f32 to vector<1x128xf32>
    %87 = arith.mulf %82, %86 : vector<1x128xf32>
    %cst_35 = arith.constant 3.906250e-03 : f32
    %88 = vector.broadcast %cst_35 : f32 to vector<1x128xf32>
    %89 = arith.mulf %85, %88 : vector<1x128xf32>
    %90 = arith.mulf %87, %87 : vector<1x128xf32>
    %91 = arith.subf %89, %90 : vector<1x128xf32>
    %92 = vector.broadcast %87 : vector<1x128xf32> to vector<256x128xf32>
    %93 = arith.subf %80, %92 : vector<256x128xf32>
    %cst_36 = arith.constant 9.99999974E-6 : f32
    %94 = vector.broadcast %cst_36 : f32 to vector<1x128xf32>
    %95 = arith.addf %91, %94 : vector<1x128xf32>
    %96 = math.rsqrt %95 : vector<1x128xf32>
    %97 = vector.broadcast %96 : vector<1x128xf32> to vector<256x128xf32>
    %98 = arith.mulf %93, %97 : vector<256x128xf32>
    %99 = vector.shape_cast %98 : vector<256x128xf32> to vector<16x16x128xf32>
    %100 = arith.addf %1, %99 : vector<16x16x128xf32>
    %c0_37 = arith.constant 0 : index
    %c0_38 = arith.constant 0 : index
    %c0_39 = arith.constant 0 : index
    %c0_40 = arith.constant 0 : index
    %101 = vector.load %arg4[%c0_37, %c0_38, %c0_39, %c0_40] : memref<1x16x16x128xf32, #tpu.memory_space<vmem>>, vector<1x16x16x128xf32>
    %102 = vector.shape_cast %101 : vector<1x16x16x128xf32> to vector<16x16x128xf32>
    %103 = vector.shape_cast %100 : vector<16x16x128xf32> to vector<1x16x16x128xf32>
    tpu.vector_store %arg4[%c0_37, %c0_38, %c0_39, %c0_40], %103 {strides = array<i32>} : memref<1x16x16x128xf32, #tpu.memory_space<vmem>>, vector<1x16x16x128xf32>,
    return
  }
  func.func @transform_0(%arg0: i32) -> (i32, i32, i32, i32) {
    %c0_i32 = arith.constant 0 : i32
    %c0_i32_0 = arith.constant 0 : i32
    %c0_i32_1 = arith.constant 0 : i32
    %c0_i32_2 = arith.constant 0 : i32
    return %arg0, %c0_i32, %c0_i32_0, %c0_i32_1 : i32, i32, i32, i32
  }
  func.func @transform_1(%arg0: i32) -> (i32, i32, i32) {
    %c0_i32 = arith.constant 0 : i32
    %c0_i32_0 = arith.constant 0 : i32
    %c0_i32_1 = arith.constant 0 : i32
    %c0_i32_2 = arith.constant 0 : i32
    return %c0_i32, %c0_i32_0, %c0_i32_1 : i32, i32, i32
  }
  func.func @transform_2(%arg0: i32) -> (i32, i32, i32) {
    %c0_i32 = arith.constant 0 : i32
    %c0_i32_0 = arith.constant 0 : i32
    %c0_i32_1 = arith.constant 0 : i32
    %c0_i32_2 = arith.constant 0 : i32
    return %c0_i32, %c0_i32_0, %c0_i32_1 : i32, i32, i32
  }
  func.func @transform_3(%arg0: i32) -> (i32, i32, i32, i32) {
    %c0_i32 = arith.constant 0 : i32
    %c0_i32_0 = arith.constant 0 : i32
    %c0_i32_1 = arith.constant 0 : i32
    %c0_i32_2 = arith.constant 0 : i32
    return %arg0, %c0_i32, %c0_i32_0, %c0_i32_1 : i32, i32, i32, i32
  }
}

</mosaic_0001>

<bundles_post_ra>
// kernel: tpu_custom_call.1
= control target key start
LH: loop header
LB: loop body
LE: loop exit
PB: predicated region body
PF: predicated region fallthrough
CT: control target
= control target key end

     0   :  { %8 = vsyncpa [#allocation3], 0  ;;  %s9134_s0 = inlined_call_operand.hbm [shape: f32[2,16,16,128], index: 0, kind: input, shape index: {}]   ;;  %s9135_s1 = inlined_call_operand.hbm [shape: f32[3,384,128], index: 1, kind: input, shape index: {}]   ;;  %s9136_s2 = inlined_call_operand.hbm [shape: f32[3,384,128], index: 2, kind: input, shape index: {}]   ;;  %s9137_s3 = inlined_call_operand.hbm [shape: f32[2,16,16,128], index: 3, kind: output, shape index: {}]  }
   0x1   :  { %10 = vsyncpa [#allocation3 + $0x1], 0 }
   0x2   :  { %11 = vsyncpa [#allocation6], 0 }
   0x3   :  { %12 = vsyncpa [#allocation4], 0 }
   0x4   :  { %14 = vsyncpa [#allocation4 + $0x1], 0  ;;  %s5967_s12 = smov 0   ;;  %s5969_s13 = smov 0  }
   0x5   :  { %s5971_s14 = smov 0   ;;  %s5973_s15 = smov 0  }
   0x6 LB: > { %s5988_s16 = sadd.s32 4294967295, %s5936_s15   ;;  %s4374_s17 = sadd.s32 4294967294, %s5936_s15   ;;  %s5936_s15 = sphi %s5973_s15, %s9577_s15   ;;  %s5932_s14 = sphi %s5971_s14, %s9576_s14   ;;  %s5928_s13 = sphi %s5969_s13, %s9575_s13   ;;  %s5924_s12 = sphi %s5967_s12, %s9574_s12  }
   0x7   : > { %p40_p0 = scmp.ne.s32.totalorder %s5928_s13, %s5924_s12  ;;  %p9138_p1 = scmp.eq.s32.totalorder %s5988_s16, 0 }
   0x8   : > { %p112_p3 = scmp.eq.s32.totalorder %s4374_s17, 1  ;;  %p4375_p5 = scmp.ge.s32.totalorder %s5936_s15, 1 }
   0x9   : > { %p5997_p4 = por %p9138_p1, %p40_p0  ;;  %p119_p7 = scmp.lt.s32.totalorder %s5936_s15, 3 }
   0xa   : > { %p6002_p6 = por %p112_p3, %p40_p0  ;;  %s5938_s21 = smov [#allocation5]  }
   0xb   : > { %s9305_s18 = scalar_select %p5997_p4, 1, 0 }
   0xc   : > { %s9306_s19 = scalar_select %p6002_p6, 1, 0 }
   0xd   : > { %p6007_p8 = pnand %p4375_p5, %p119_p7  ;;  %s131_s22 = sshll.u32 %s5938_s21, 4  ;;  %s6011_s22 = int_to_ptr.vmem [resolvable:$true] %s131_s22 }
   0xe   : > { %s5939_s24 = smov [#allocation7]   ;;  %s5780_s28 = scalar_lea.hbm %s9135_s1, 18432 }
   0xf   : > { %p5654_p9 = pneg %p6007_p8  ;;  %s144_s25 = sshll.u32 %s5939_s24, 4  ;;  %s6022_s25 = int_to_ptr.vmem [resolvable:$true] %s144_s25 }
  0x10   : > { %p5781_p12 = scmp.ne.s32.totalorder %s9135_s1, %s5780_s28  ;;  %p5787_p5 = scmp.lt.u32.totalorder %s5780_s28, %s9135_s1 }
  0x11   : > { %p6018_p11 = pnand %p5654_p9, %p9138_p1 }
  0x13   : > { %p5782_p13 = pneg %p6018_p11 }
  0x15   : > { %p5783_p0 = pnand %p5782_p13, %p5781_p12 }
  0x17   : > { %p5784_p3 = pneg %p5783_p0 }
  0x19   : > { %p5789_p7 = pnand %p5787_p5, %p5784_p3 }
  0x1b   : > { %5792 = shalt.err (!%p5789_p7)
}
  0x1c   : > { %s5793_s6 = scalar_lea.vmem %s6011_s22, 18432  ;;  %p5801_p2 = scmp.lt.s32.totalorder %s6011_s22, %s6011_s22 }
  0x1d   : > { %p5794_p9 = scmp.ne.s32.totalorder %s6011_s22, %s5793_s6  ;;  %p5802_p12 = scmp.lt.s32.totalorder %s5793_s6, %s5793_s6 }
  0x1f   : > { %p5796_p10 = pnand %p5794_p9, %p5782_p13  ;;  %p5803_p0 = por %p5802_p12, %p5801_p2 }
  0x21   : > { %p5797_p1 = pneg %p5796_p10 }
  0x23   : > { %p5804_p6 = pnand %p5803_p0, %p5797_p1 }
  0x25   : > { %5807 = shalt.err (!%p5804_p6)
}
  0x26   : > { %s5940_s7 = smov 128   ;;  %s5941_s8 = smov 8  }
  0x27   : > { %5657 = dma.hbm_to_vmem [thread:$0]  (!%p6018_p11), %s9135_s1, 18432, %s6011_s22, [#allocation6], %s5940_s7, %s5940_s7, %s5941_s8  }
  0x28   : > { %s5808_s21 = scalar_lea.hbm %s9136_s2, 18432 }
  0x29   : > { %p5809_p1 = scmp.ne.s32.totalorder %s9136_s2, %s5808_s21  ;;  %p5815_p10 = scmp.lt.u32.totalorder %s5808_s21, %s9136_s2 }
  0x2b   : > { %p5811_p2 = pnand %p5809_p1, %p5782_p13 }
  0x2d   : > { %p5812_p6 = pneg %p5811_p2 }
  0x2f   : > { %p5817_p3 = pnand %p5815_p10, %p5812_p6 }
  0x31   : > { %5820 = shalt.err (!%p5817_p3)
}
  0x32   : > { %s5821_s22 = scalar_lea.vmem %s6022_s25, 18432  ;;  %p5829_p12 = scmp.lt.s32.totalorder %s6022_s25, %s6022_s25 }
  0x33   : > { %p5822_p5 = scmp.ne.s32.totalorder %s6022_s25, %s5821_s22  ;;  %p5830_p0 = scmp.lt.s32.totalorder %s5821_s22, %s5821_s22 }
  0x35   : > { %p5824_p7 = pnand %p5822_p5, %p5782_p13  ;;  %p5831_p1 = por %p5830_p0, %p5829_p12 }
  0x37   : > { %p5825_p9 = pneg %p5824_p7 }
  0x39   : > { %p5832_p2 = pnand %p5831_p1, %p5825_p9 }
  0x3b   : > { %5835 = shalt.err (!%p5832_p2)
}
  0x3c   : > { %5660 = dma.hbm_to_vmem [thread:$0]  (!%p6018_p11), %s9136_s2, 18432, %s6022_s25, [#allocation6], %s5940_s7, %s5940_s7, %s5941_s8  }
  0x3d   : > { %s6083_s23 = sadd.s32 1, %s5936_s15   ;;  %s27_s4 = sadd.s32 1, %s5932_s14 }
  0x3e   : > { %s24_s5 = ssub.s32 %s5936_s15, %s6083_s23  ;;  %p34_p13 = scmp.ne.s32.totalorder %s5932_s14, %s5928_s13 }
  0x3f   : > { %p25_p6 = scmp.eq.s32.totalorder %s24_s5, 0  ;;  %p35_p10 = scmp.eq.s32.totalorder %s5936_s15, 0 }
  0x40   : > { %p9309_p3 = scmp.eq.s32.totalorder %s5988_s16, 1  ;;  %p5671_p7 = scmp.lt.s32.totalorder %s5936_s15, 2 }
  0x41   : > { %s6099_s9 = scalar_select %p25_p6, %s5932_s14, %s27_s4  }
  0x42   : > { %p6093_p5 = por %p9309_p3, %p34_p13  ;;  %p36_p9 = por %p35_p10, %p34_p13 }
  0x43   : > { %s158_s10 = sand.u32 1, %s5932_s14   ;;  %s4392_s25 = sshll.u32 %s5936_s15, 12 }
  0x44   : > { %s9310_s6 = scalar_select %p6093_p5, 1, 0 }
  0x45   : > { %s4379_s11 = sshll.u32 %s158_s10, 8  ;;  %s6106_s24 = scalar_lea.hbm %s9134_s0, %s4392_s25 }
  0x46   : > { %s162_s26 = scalar_lea.vmem [#allocation2], %s4379_s11  ;;  %p6110_p11 = pnand %p5671_p7, %p36_p9 }
  0x47   : > { %s169_s27 = sshll.u32 %s162_s26, 4  ;;  %s6114_s22 = scalar_lea.sflag [#allocation3], %s158_s10  ;;  %s6108_s27 = int_to_ptr.vmem [resolvable:$true] %s169_s27 }
  0x48   : > { %s5836_s29 = scalar_lea.hbm %s6106_s24, 4096  ;;  %p5838_p0 = pneg %p6110_p11 }
  0x49   : > { %p5837_p12 = scmp.ne.s32.totalorder %s6106_s24, %s5836_s29  ;;  %s5841_s5 = scalar_lea.hbm %s9134_s0, 8192 }
  0x4a   : > { %p5842_p13 = scmp.lt.u32.totalorder %s6106_s24, %s9134_s0  ;;  %p5843_p6 = scmp.lt.u32.totalorder %s5841_s5, %s5836_s29 }
  0x4b   : > { %p5839_p1 = pnand %p5838_p0, %p5837_p12  ;;  %p5845_p3 = scmp.lt.u32.totalorder %s5836_s29, %s6106_s24 }
  0x4c   : > { %p5844_p10 = por %p5843_p6, %p5842_p13 }
  0x4d   : > { %p5840_p2 = pneg %p5839_p1 }
  0x4e   : > { %p5846_p7 = por %p5845_p3, %p5844_p10 }
  0x50   : > { %p5847_p9 = pnand %p5846_p7, %p5840_p2 }
  0x52   : > { %5850 = shalt.err (!%p5847_p9)
}
  0x53   : > { %s5851_s10 = scalar_lea.vmem %s6108_s27, 4096  ;;  %s5942_s17 = smov [#allocation2]  }
  0x54   : > { %p5852_p12 = scmp.ne.s32.totalorder %s6108_s27, %s5851_s10  ;;  %s5856_s21 = sshll.u32 %s5942_s17, 4  ;;  %s5857_s21 = int_to_ptr.vmem [resolvable:$false] %s5856_s21 }
  0x55   : > { %s5858_s26 = scalar_lea.vmem %s5857_s21, 8192  ;;  %p5859_p4 = scmp.lt.s32.totalorder %s6108_s27, %s5857_s21 }
  0x56   : > { %p5854_p1 = pnand %p5852_p12, %p5838_p0  ;;  %p5860_p13 = scmp.lt.s32.totalorder %s5858_s26, %s5851_s10 }
  0x58   : > { %p5855_p5 = pneg %p5854_p1  ;;  %p5861_p6 = por %p5860_p13, %p5859_p4 }
  0x5a   : > { %p5862_p10 = pnand %p5861_p6, %p5855_p5 }
  0x5c   : > { %5865 = shalt.err (!%p5862_p10)
}
  0x5d   : > { %5664 = dma.hbm_to_vmem [thread:$0]  (!%p6110_p11), %s6106_s24, 4096, %s6108_s27, %s6114_s22, %s5940_s7, %s5940_s7, %s5941_s8  }
  0x5e   : > { %181 = sbr.rel (%p6007_p8) target bundleno = 1331 (0x533), region = 32 }
  0x65   : > { %s6148_s29 = sand.u32 1, %s5928_s13   ;;  %p9312_p4 = scmp.ne.s32.totalorder %s9305_s18, 0 }
  0x66   : > { %s4383_s30 = sshll.u32 %s6148_s29, 8  ;;  %s184_s4 = scalar_lea.sflag [#allocation3], %s6148_s29 }
  0x67   : > { %s6154_s28 = scalar_lea.vmem [#allocation2], %s4383_s30 }
  0x68   : > { %5911 = dma.done.wait (%p9312_p4), %s184_s4, 4096  }
  0x69   : > { %5913 = vsyncadd (%p9312_p4), %s184_s4, 4294963200  ;;  %p9313_p5 = scmp.eq.s32.totalorder %s5988_s16, 0 }
  0x6b   : > { %5915 = dma.done.wait (%p9313_p5), [#allocation6], 36864   ;;  %p9314_p8 = pmov %p9313_p5 }
  0x6c   : > { %v9159_v0 = vmov 0.0|0.0   ;;  %v557_v1 = vld [vmem:[#allocation5 + $0x180] sm:$0xff]  ;;  %v558_v2 = vld [vmem:[#allocation5 + $0x188] sm:$0xff]  ;;  %v559_v6 = vld [vmem:[#allocation5 + $0x190] sm:$0xff]  ;;  %vm411_vm0 = vcmask 1046528   ;;  %vm314_vm1 = vcmask 1040384  }
  0x6d   : > { %5917 = vsyncadd (%p9314_p8), [#allocation6], 4294930432  ;;  %5162 = vmatprep.subr.bf16.mxu0 %v9159_v0  ;;  %v589_v3 = vld [vmem:[#allocation5 + $0x280] sm:$0xff]  ;;  %v5163_v4 = vpack.c.bf16 %v558_v2, %v557_v1  ;;  %v590_v5 = vld [vmem:[#allocation5 + $0x288] sm:$0xff]  ;;  %s8978_s18 = scalar_lea.vmem [#allocation8], %s4383_s30  ;;  %s4393_s20 = sshll.u32 %s5988_s16, 12 }
  0x6e   : > { %v560_v7 = vld [vmem:[#allocation5 + $0x198] sm:$0xff]  ;;  %v5210_v8 = vpack.c.bf16 %v590_v5, %v589_v3  ;;  %v591_v9 = vld [vmem:[#allocation5 + $0x290] sm:$0xff]  ;;  %v593_v13 = vld [vmem:[#allocation5 + $0x2a0] sm:$0xff]  ;;  %s4282_s7 = sshll.u32 %s8978_s18, 4  ;;  %s9066_s27 = scalar_lea.hbm %s9137_s3, %s4393_s20  ;;  %s9070_s7 = int_to_ptr.vmem [resolvable:$true] %s4282_s7 }
  0x6f   : > { %v592_v10 = vld [vmem:[#allocation5 + $0x298] sm:$0xff]  ;;  %5164 = vmatpush1.bf16.msra.mxu0 %v5163_v4  ;;  %v5166_v11 = vpack.c.bf16 %v560_v7, %v559_v6  ;;  %v594_v14 = vld [vmem:[#allocation5 + $0x2a8] sm:$0xff]  ;;  %v561_v15 = vld [vmem:[#allocation5 + $0x1a0] sm:$0xff]  ;;  %s4269_s16 = scalar_lea.sflag [#allocation4], %s6148_s29  ;;  %s5866_s22 = scalar_lea.vmem %s9070_s7, 4096 }
  0x70   : > { %v5214_v12 = vpack.c.bf16 %v592_v10, %v591_v9  ;;  %5211 = vmatprep.subr.bf16.mxu1 %v5210_v8  ;;  %5165 = vmatprep.subr.bf16.mxu0 %v9159_v0  ;;  %v562_v16 = vld [vmem:[#allocation5 + $0x1a8] sm:$0xff]  ;;  %v5218_v17 = vpack.c.bf16 %v594_v14, %v593_v13  ;;  %v595_v19 = vld [vmem:[#allocation5 + $0x2b0] sm:$0xff]  ;;  %v596_v20 = vld [vmem:[#allocation5 + $0x2b8] sm:$0xff]  ;;  %p5867_p11 = scmp.ne.s32.totalorder %s9070_s7, %s5866_s22  ;;  %p9571_p0 = scmp.ne.s32.totalorder %s9310_s6, 0 }
  0x71   : > { %5213 = vmatpush3.bf16.msra.mxu1 %v5210_v8  ;;  %v5169_v18 = vpack.c.bf16 %v562_v16, %v561_v15  ;;  %v563_v21 = vld [vmem:[#allocation5 + $0x1b0] sm:$0xff]  ;;  %v564_v22 = vld [vmem:[#allocation5 + $0x1b8] sm:$0xff]  ;;  %v5222_v23 = vpack.c.bf16 %v596_v20, %v595_v19  ;;  %v6168_v24 = vld [vmem:[%s6154_s28] sm:$0xff]  ;;  %s5944_s5 = smov [#allocation8]  }
  0x72   : > { %5215 = vmatprep.subr.bf16.mxu1 %v5214_v12  ;;  %v5172_v25 = vpack.c.bf16 %v564_v22, %v563_v21  ;;  %v597_v26 = vld [vmem:[#allocation5 + $0x2c0] sm:$0xff]  ;;  %v598_v27 = vld [vmem:[#allocation5 + $0x2c8] sm:$0xff]  ;;  %v266_v29 = vrot.slane %v6168_v24, 1  ;;  %669 = vmatprep.mubr.f32.mxu0 %v6168_v24  ;;  %v599_v36 = vld [vmem:[#allocation5 + $0x2d0] sm:$0xff]  ;;  %p5868_p2 = pnand %p5867_p11, %p9571_p0  ;;  %s5870_s11 = sshll.u32 %s5944_s5, 4  ;;  %s5871_s11 = int_to_ptr.vmem [resolvable:$false] %s5870_s11 }
  0x73   : > { %5167 = vmatpush1.bf16.msra.mxu0 %v5166_v11  ;;  %v6171_v28 = vld [vmem:[%s6154_s28 + $0x8] sm:$0xff]  ;;  %v565_v30 = vld [vmem:[#allocation5 + $0x1c0] sm:$0xff]  ;;  %v5226_v33 = vpack.c.bf16 %v598_v27, %v597_v26  ;;  %v600_v37 = vld [vmem:[#allocation5 + $0x2d8] sm:$0xff]  ;;  %s5872_s25 = scalar_lea.vmem %s5871_s11, 8192  ;;  %p5873_p7 = scmp.lt.s32.totalorder %s9070_s7, %s5871_s11 }
  0x74   : > { %5168 = vmatprep.subr.bf16.mxu0 %v9159_v0  ;;  %v566_v31 = vld [vmem:[#allocation5 + $0x1c8] sm:$0xff]  ;;  %v412_v32 = vrot.slane %v6171_v28, 1  ;;  %v567_v38 = vld [vmem:[#allocation5 + $0x1d0] sm:$0xff]  ;;  %v568_v39 = vld [vmem:[#allocation5 + $0x1d8] sm:$0xff]  ;;  %v5230_v40 = vpack.c.bf16 %v600_v37, %v599_v36  ;;  %v316_v58 = vrot.slane %v6171_v28, 7  ;;  %p5869_p3 = pneg %p5868_p2  ;;  %p5874_p9 = scmp.lt.s32.totalorder %s5872_s25, %s5866_s22 }
  0x75   : > { %5217 = vmatpush3.bf16.msra.mxu1 %v5214_v12  ;;  %v5175_v35 = vpack.c.bf16 %v566_v31, %v565_v30  ;;  %v5178_v41 = vpack.c.bf16 %v568_v39, %v567_v38  ;;  %v601_v42 = vld [vmem:[#allocation5 + $0x2e0] sm:$0xff]  ;;  %v602_v43 = vld [vmem:[#allocation5 + $0x2e8] sm:$0xff]  ;;  %v603_v48 = vld [vmem:[#allocation5 + $0x2f0] sm:$0xff] }
  0x76   : > { %5219 = vmatprep.subr.bf16.mxu1 %v5218_v17  ;;  %v6180_v34 = vsel %vm411_vm0, %v266_v29, %v412_v32  ;;  %v569_v44 = vld [vmem:[#allocation5 + $0x1e0] sm:$0xff]  ;;  %v570_v45 = vld [vmem:[#allocation5 + $0x1e8] sm:$0xff]  ;;  %v5234_v46 = vpack.c.bf16 %v602_v43, %v601_v42  ;;  %v604_v49 = vld [vmem:[#allocation5 + $0x2f8] sm:$0xff]  ;;  %v6206_v5 = vsel %vm411_vm0, %v412_v32, %v316_v58  ;;  %p5875_p12 = por %p5874_p9, %p5873_p7 }
  0x77   : > { %5170 = vmatpush1.bf16.msra.mxu0 %v5169_v18  ;;  %4714 = vmatprep.mubr.f32.mxu1 %v6180_v34  ;;  %v5181_v47 = vpack.c.bf16 %v570_v45, %v569_v44  ;;  %v571_v50 = vld [vmem:[#allocation5 + $0x1f0] sm:$0xff]  ;;  %v572_v51 = vld [vmem:[#allocation5 + $0x1f8] sm:$0xff]  ;;  %v5238_v52 = vpack.c.bf16 %v604_v49, %v603_v48  ;;  %v573_v56 = vld [vmem:[#allocation5 + $0x200] sm:$0xff] }
  0x78   : > { %5171 = vmatprep.subr.bf16.mxu0 %v9159_v0  ;;  %v5184_v53 = vpack.c.bf16 %v572_v51, %v571_v50  ;;  %v6187_v54 = vld [vmem:[%s6154_s28 + $0x10] sm:$0xff]  ;;  %v6190_v55 = vld [vmem:[%s6154_s28 + $0x18] sm:$0xff]  ;;  %v574_v57 = vld [vmem:[#allocation5 + $0x208] sm:$0xff]  ;;  %p5876_p1 = pnand %p5875_p12, %p5869_p3 }
  0x79   : > { %5221 = vmatpush3.bf16.msra.mxu1 %v5218_v17  ;;  %v508_v59 = vld [vmem:[#allocation5] sm:$0xff]  ;;  %v509_v60 = vld [vmem:[#allocation5 + $0x8] sm:$0xff]  ;;  %v9157_v61 = vrot.slane %v6187_v54, 1  ;;  %v414_v62 = vrot.slane %v6190_v55, 1  ;;  %v5187_v63 = vpack.c.bf16 %v574_v57, %v573_v56  ;;  %v575_v3 = vld [vmem:[#allocation5 + $0x210] sm:$0xff]  ;;  %v9156_v7 = vrot.slane %v6190_v55, 7 }
  0x7a   : > { %5223 = vmatprep.subr.bf16.mxu1 %v5222_v23  ;;  %v6197_v1 = vld [vmem:[%s6154_s28 + $0x20] sm:$0xff]  ;;  %v6200_v2 = vld [vmem:[%s6154_s28 + $0x28] sm:$0xff]  ;;  %v576_v4 = vld [vmem:[#allocation5 + $0x218] sm:$0xff]  ;;  %v5243_v6 = vpack.c.bf16 %v509_v60, %v508_v59 }
  0x7b   : > { %5173 = vmatpush1.bf16.msra.mxu0 %v5172_v25  ;;  %v6213_v8 = vsel %vm411_vm0, %v9157_v61, %v414_v62  ;;  %v510_v9 = vld [vmem:[#allocation5 + $0x10] sm:$0xff]  ;;  %v511_v10 = vld [vmem:[#allocation5 + $0x18] sm:$0xff]  ;;  %v9155_v11 = vrot.slane %v6197_v1, 1  ;;  %v416_v12 = vrot.slane %v6200_v2, 1  ;;  %v5190_v13 = vpack.c.bf16 %v576_v4, %v575_v3  ;;  %v577_v16 = vld [vmem:[#allocation5 + $0x220] sm:$0xff] }
  0x7c   : > { %5174 = vmatprep.subr.bf16.mxu0 %v9159_v0  ;;  %v6218_v14 = vld [vmem:[%s6154_s28 + $0x30] sm:$0xff]  ;;  %v6221_v15 = vld [vmem:[%s6154_s28 + $0x38] sm:$0xff]  ;;  %v578_v17 = vld [vmem:[#allocation5 + $0x228] sm:$0xff]  ;;  %v6229_v18 = vsel %vm411_vm0, %v414_v62, %v9156_v7  ;;  %v5246_v19 = vpack.c.bf16 %v511_v10, %v510_v9  ;;  %v9153_v20 = vrot.slane %v6200_v2, 7 }
  0x7d   : > { %5225 = vmatpush3.bf16.msra.mxu1 %v5222_v23  ;;  %v6236_v21 = vsel %vm411_vm0, %v9155_v11, %v416_v12  ;;  %v512_v22 = vld [vmem:[#allocation5 + $0x20] sm:$0xff]  ;;  %v513_v23 = vld [vmem:[#allocation5 + $0x28] sm:$0xff]  ;;  %v9152_v25 = vrot.slane %v6218_v14, 1  ;;  %v418_v26 = vrot.slane %v6221_v15, 1  ;;  %v5193_v27 = vpack.c.bf16 %v578_v17, %v577_v16  ;;  %v579_v32 = vld [vmem:[#allocation5 + $0x230] sm:$0xff] }
  0x7e   : > { %5227 = vmatprep.subr.bf16.mxu1 %v5226_v33  ;;  %v6241_v30 = vld [vmem:[%s6154_s28 + $0x40] sm:$0xff]  ;;  %v6244_v31 = vld [vmem:[%s6154_s28 + $0x48] sm:$0xff]  ;;  %v5249_v36 = vpack.c.bf16 %v513_v23, %v512_v22  ;;  %v9150_v37 = vrot.slane %v6221_v15, 7  ;;  %v514_v39 = vld [vmem:[#allocation5 + $0x30] sm:$0xff] }
  0x7f   : > { %5176 = vmatpush1.bf16.msra.mxu0 %v5175_v35  ;;  %v6252_v35 = vsel %vm411_vm0, %v416_v12, %v9153_v20  ;;  %v6259_v38 = vsel %vm411_vm0, %v9152_v25, %v418_v26  ;;  %v420_v42 = vrot.slane %v6244_v31, 1  ;;  %v6264_v44 = vld [vmem:[%s6154_s28 + $0x50] sm:$0xff]  ;;  %v6267_v45 = vld [vmem:[%s6154_s28 + $0x58] sm:$0xff]  ;;  %v9146_v50 = vrot.slane %v6244_v31, 7  ;;  %v6287_v60 = vld [vmem:[%s6154_s28 + $0x60] sm:$0xff] }
  0x80   : > { %5177 = vmatprep.subr.bf16.mxu0 %v9159_v0  ;;  %9315 = vst [vmem:[#allocation12_spill] sm:$0xff] %v6259_v38  ;;  %v6275_v48 = vsel %vm411_vm0, %v418_v26, %v9150_v37  ;;  %v9145_v56 = vrot.slane %v6264_v44, 1  ;;  %v422_v57 = vrot.slane %v6267_v45, 1  ;;  %v6290_v62 = vld [vmem:[%s6154_s28 + $0x68] sm:$0xff]  ;;  %v584_v3 = vld [vmem:[#allocation5 + $0x258] sm:$0xff]  ;;  %v9144_v9 = vrot.slane %v6267_v45, 7 }
  0x81   : > { %5229 = vmatpush3.bf16.msra.mxu1 %v5226_v33  ;;  %v580_v33 = vld [vmem:[#allocation5 + $0x238] sm:$0xff]  ;;  %9316 = vst [vmem:[#allocation13_spill] sm:$0xff] %v6275_v48  ;;  %v6298_v4 = vsel %vm411_vm0, %v420_v42, %v9146_v50  ;;  %v518_v12 = vld [vmem:[#allocation5 + $0x50] sm:$0xff]  ;;  %v9143_v16 = vrot.slane %v6287_v60, 1  ;;  %v424_v17 = vrot.slane %v6290_v62, 1  ;;  %v585_v26 = vld [vmem:[#allocation5 + $0x260] sm:$0xff] }
  0x82   : > { %5231 = vmatprep.subr.bf16.mxu1 %v5230_v40  ;;  %v5196_v43 = vpack.c.bf16 %v580_v33, %v579_v32  ;;  %9318 = vst [vmem:[#allocation15_spill] sm:$0xff] %v6298_v4  ;;  %v6305_v10 = vsel %vm411_vm0, %v9145_v56, %v422_v57  ;;  %v6310_v22 = vld [vmem:[%s6154_s28 + $0x70] sm:$0xff]  ;;  %v6313_v23 = vld [vmem:[%s6154_s28 + $0x78] sm:$0xff]  ;;  %v6321_v32 = vsel %vm411_vm0, %v422_v57, %v9144_v9  ;;  %v545_v37 = vld [vmem:[#allocation5 + $0x128] sm:$0xff] }
  0x83   : > { %5179 = vmatpush1.bf16.msra.mxu0 %v5178_v41  ;;  %v9149_v41 = vrot.slane %v6241_v30, 1  ;;  %9319 = vst [vmem:[#allocation16_spill] sm:$0xff] %v6305_v10  ;;  %9320 = vst [vmem:[#allocation17_spill] sm:$0xff] %v6321_v32  ;;  %v588_v57 = vld [vmem:[#allocation5 + $0x278] sm:$0xff]  ;;  %v6415_v25 = vld [vmem:[%s6154_s28 + $0xb0] sm:$0xff] }
  0x84   : > { %5180 = vmatprep.subr.bf16.mxu0 %v9159_v0  ;;  %v543_v9 = vld [vmem:[#allocation5 + $0x118] sm:$0xff]  ;;  %v546_v7 = vld [vmem:[#allocation5 + $0x130] sm:$0xff] }
  0x85   : > { %5233 = vmatpush3.bf16.msra.mxu1 %v5230_v40  ;;  %v515_v40 = vld [vmem:[#allocation5 + $0x38] sm:$0xff]  ;;  %v6282_v51 = vsel %vm411_vm0, %v9149_v41, %v420_v42  ;;  %v521_v42 = vld [vmem:[#allocation5 + $0x68] sm:$0xff]  ;;  %v544_v41 = vld [vmem:[#allocation5 + $0x120] sm:$0xff] }
  0x86   : > { %5235 = vmatprep.subr.bf16.mxu1 %v5234_v46  ;;  %v5252_v49 = vpack.c.bf16 %v515_v40, %v514_v39  ;;  %9317 = vst [vmem:[#allocation14_spill] sm:$0xff] %v6282_v51  ;;  %v6328_v39 = vsel %vm411_vm0, %v9143_v16, %v424_v17  ;;  %v520_v40 = vld [vmem:[#allocation5 + $0x60] sm:$0xff]  ;;  %v542_v16 = vld [vmem:[#allocation5 + $0x110] sm:$0xff]  ;;  %v6418_v20 = vld [vmem:[%s6154_s28 + $0xb8] sm:$0xff] }
  0x87   : > { %5182 = vmatpush1.bf16.msra.mxu0 %v5181_v47  ;;  %v582_v47 = vld [vmem:[#allocation5 + $0x248] sm:$0xff]  ;;  %9321 = vst [vmem:[#allocation18_spill] sm:$0xff] %v6328_v39  ;;  %v547_v61 = vld [vmem:[#allocation5 + $0x138] sm:$0xff] }
  0x88   : > { %5183 = vmatprep.subr.bf16.mxu0 %v9159_v0 }
  0x89   : > { %5237 = vmatpush3.bf16.msra.mxu1 %v5234_v46  ;;  %v581_v46 = vld [vmem:[#allocation5 + $0x240] sm:$0xff] }
  0x8a   : > { %5239 = vmatprep.subr.bf16.mxu1 %v5238_v52  ;;  %v5199_v59 = vpack.c.bf16 %v582_v47, %v581_v46  ;;  %v426_v46 = vrot.slane %v6313_v23, 1 }
  0x8b   : > { %5185 = vmatpush1.bf16.msra.mxu0 %v5184_v53  ;;  %v517_v53 = vld [vmem:[#allocation5 + $0x48] sm:$0xff] }
  0x8c   : > { %5186 = vmatprep.subr.bf16.mxu0 %v9159_v0 }
  0x8d   : > { %5241 = vmatpush3.bf16.msra.mxu1 %v5238_v52  ;;  %v516_v52 = vld [vmem:[#allocation5 + $0x40] sm:$0xff] }
  0x8e   : > { %5242 = vmatprep.subr.bf16.mxu1 %v9159_v0 }
  0x8f   : > { %5188 = vmatpush1.bf16.msra.mxu0 %v5187_v63  ;;  %v583_v63 = vld [vmem:[#allocation5 + $0x250] sm:$0xff] }
  0x90   : > { %4715 = vmatmul.mubr.f32.vlgmr.msra.gmra.mrb[0].mxu1 %v6206_v5  ;;  %5189 = vmatprep.subr.bf16.mxu0 %v9159_v0 }
  0x91   : > { %5244 = vmatpush1.bf16.msra.mxu1 %v5243_v6  ;;  %4717 = vmatprep.mubr.f32.mxu1 %v6213_v8  ;;  %v5255_v6 = vpack.c.bf16 %v517_v53, %v516_v52  ;;  %v6336_v52 = vld [vmem:[%s6154_s28 + $0x88] sm:$0xff]  ;;  %v587_v53 = vld [vmem:[#allocation5 + $0x270] sm:$0xff] }
  0x92   : > { %5245 = vmatprep.subr.bf16.mxu1 %v9159_v0 }
  0x93   : > { %5191 = vmatpush1.bf16.msra.mxu0 %v5190_v13  ;;  %v519_v13 = vld [vmem:[#allocation5 + $0x58] sm:$0xff] }
  0x94   : > { %4718 = vmatmul.mubr.f32.gmra.mrb[2].mxu1 %v6229_v18  ;;  %5192 = vmatprep.subr.bf16.mxu0 %v9159_v0  ;;  %v5258_v33 = vpack.c.bf16 %v519_v13, %v518_v12  ;;  %v541_v12 = vld [vmem:[#allocation5 + $0x108] sm:$0xff] }
  0x95   : > { %5247 = vmatpush1.bf16.msra.mxu1 %v5246_v19  ;;  %4720 = vmatprep.mubr.f32.mxu1 %v6236_v21  ;;  %v5202_v19 = vpack.c.bf16 %v584_v3, %v583_v63  ;;  %v5261_v63 = vpack.c.bf16 %v521_v42, %v520_v40  ;;  %v9148_v3 = vrot.slane %v6313_v23, 7  ;;  %v315_v40 = vrot.slane %v6168_v24, 7  ;;  %v6357_v42 = vld [vmem:[%s6154_s28 + $0x90] sm:$0xff] }
  0x96   : > { %5248 = vmatprep.subr.bf16.mxu1 %v9159_v0  ;;  %v9154_v56 = vrot.slane %v6357_v42, 1 }
  0x97   : > { %5194 = vmatpush1.bf16.msra.mxu0 %v5193_v27  ;;  %v586_v27 = vld [vmem:[#allocation5 + $0x268] sm:$0xff] }
  0x98   : > { %4721 = vmatmul.mubr.f32.gmra.mrb[4].mxu1 %v6252_v35  ;;  %5195 = vmatprep.subr.bf16.mxu0 %v9159_v0  ;;  %v5205_v47 = vpack.c.bf16 %v586_v27, %v585_v26  ;;  %v523_v26 = vld [vmem:[#allocation5 + $0x78] sm:$0xff] }
  0x99   : > { %5250 = vmatpush1.bf16.msra.mxu1 %v5249_v36  ;;  %4723 = vmatprep.mubr.f32.mxu1 %v6259_v38  ;;  %v9141_v36 = vrot.slane %v6290_v62, 7  ;;  %v555_v38 = vld [vmem:[#allocation5 + $0x178] sm:$0xff] }
  0x9a   : > { %5251 = vmatprep.subr.bf16.mxu1 %v9159_v0 }
  0x9b   : > { %5197 = vmatpush1.bf16.msra.mxu0 %v5196_v43  ;;  %v9142_v43 = vrot.slane %v6310_v22, 1 }
  0x9c   : > { %4724 = vmatmul.mubr.f32.gmra.mrb[6].mxu1 %v6275_v48  ;;  %5198 = vmatprep.subr.bf16.mxu0 %v9159_v0  ;;  %v554_v48 = vld [vmem:[#allocation5 + $0x170] sm:$0xff] }
  0x9d   : > { %5253 = vmatpush1.bf16.msra.mxu1 %v5252_v49  ;;  %4726 = vmatprep.mubr.f32.mxu1 %v6282_v51  ;;  %v6333_v49 = vld [vmem:[%s6154_s28 + $0x80] sm:$0xff]  ;;  %v6351_v13 = vsel %vm411_vm0, %v9142_v43, %v426_v46 }
  0x9e   : > { %5254 = vmatprep.subr.bf16.mxu1 %v9159_v0  ;;  %9323 = vst [vmem:[#allocation20_spill] sm:$0xff] %v6351_v13  ;;  %v9147_v27 = vrot.slane %v6333_v49, 1 }
  0x9f   : > { %5200 = vmatpush1.bf16.msra.mxu0 %v5199_v59  ;;  %v6344_v59 = vsel %vm411_vm0, %v424_v17, %v9141_v36  ;;  %v5208_v17 = vpack.c.bf16 %v588_v57, %v587_v53  ;;  %v6360_v36 = vld [vmem:[%s6154_s28 + $0x98] sm:$0xff]  ;;  %v9151_v57 = vrot.slane %v6336_v52, 7 }
  0xa0   : > { %4727 = vmatmul.mubr.f32.gmra.mrb[8].mxu1 %v6298_v4  ;;  %5201 = vmatprep.subr.bf16.mxu0 %v9159_v0  ;;  %9322 = vst [vmem:[#allocation19_spill] sm:$0xff] %v6344_v59  ;;  %v430_v50 = vrot.slane %v6360_v36, 1  ;;  %v553_v4 = vld [vmem:[#allocation5 + $0x168] sm:$0xff] }
  0xa1   : > { %5256 = vmatpush1.bf16.msra.mxu1 %v5255_v6  ;;  %4729 = vmatprep.mubr.f32.mxu1 %v6305_v10  ;;  %v540_v6 = vld [vmem:[#allocation5 + $0x100] sm:$0xff] }
  0xa2   : > { %5257 = vmatprep.subr.bf16.mxu1 %v9159_v0  ;;  %v5290_v43 = vpack.c.bf16 %v541_v12, %v540_v6  ;;  %v525_v12 = vld [vmem:[#allocation5 + $0x88] sm:$0xff]  ;;  %v552_v10 = vld [vmem:[#allocation5 + $0x160] sm:$0xff] }
  0xa3   : > { %5203 = vmatpush1.bf16.msra.mxu0 %v5202_v19  ;;  %v522_v19 = vld [vmem:[#allocation5 + $0x70] sm:$0xff] }
  0xa4   : > { %4730 = vmatmul.mubr.f32.gmra.mrb[10].mxu1 %v6321_v32  ;;  %5204 = vmatprep.subr.bf16.mxu0 %v9159_v0  ;;  %v5264_v53 = vpack.c.bf16 %v523_v26, %v522_v19  ;;  %v6385_v19 = vld [vmem:[%s6154_s28 + $0xa0] sm:$0xff]  ;;  %v6388_v26 = vld [vmem:[%s6154_s28 + $0xa8] sm:$0xff]  ;;  %v324_v32 = vrot.slane %v6218_v14, 7 }
  0xa5   : > { %5259 = vmatpush1.bf16.msra.mxu1 %v5258_v33  ;;  %4732 = vmatprep.mubr.f32.mxu1 %v6328_v39  ;;  %v428_v33 = vrot.slane %v6336_v52, 1  ;;  %v9170_v11 = vrot.slane %v6388_v26, 7  ;;  %v551_v39 = vld [vmem:[#allocation5 + $0x158] sm:$0xff] }
  0xa6   : > { %5260 = vmatprep.subr.bf16.mxu1 %v9159_v0 }
  0xa7   : > { %5206 = vmatpush1.bf16.msra.mxu0 %v5205_v47  ;;  %v6368_v47 = vsel %vm411_vm0, %v426_v46, %v9148_v3  ;;  %v6375_v6 = vsel %vm411_vm0, %v9147_v27, %v428_v33  ;;  %v6382_v46 = vsel %vm314_vm1, %v266_v29, %v315_v40  ;;  %v5294_v27 = vpack.c.bf16 %v543_v9, %v542_v16  ;;  %v526_v16 = vld [vmem:[#allocation5 + $0x90] sm:$0xff] }
  0xa8   : > { %4733 = vmatmul.mubr.f32.gmra.mrb[12].mxu1 %v6344_v59  ;;  %5207 = vmatprep.subr.bf16.mxu0 %v9159_v0  ;;  %9324 = vst [vmem:[#allocation21_spill] sm:$0xff] %v6368_v47  ;;  %9325 = vst [vmem:[#allocation22_spill] sm:$0xff] %v6375_v6  ;;  %v9158_v3 = vrot.slane %v6360_v36, 7  ;;  %v6403_v9 = vsel %vm411_vm0, %v9154_v56, %v430_v50  ;;  %v5298_v56 = vpack.c.bf16 %v545_v37, %v544_v41  ;;  %v528_v41 = vld [vmem:[#allocation5 + $0xa0] sm:$0xff]  ;;  %v550_v59 = vld [vmem:[#allocation5 + $0x150] sm:$0xff] }
  0xa9   : > { %5262 = vmatpush1.bf16.msra.mxu1 %v5261_v63  ;;  %4735 = vmatprep.mubr.f32.mxu1 %v6351_v13  ;;  %v524_v63 = vld [vmem:[#allocation5 + $0x80] sm:$0xff]  ;;  %9327 = vst [vmem:[#allocation24_spill] sm:$0xff] %v6403_v9  ;;  %v6506_v13 = vld [vmem:[%s6154_s28 + $0xe8] sm:$0xff] }
  0xaa   : > { %5263 = vmatprep.subr.bf16.mxu1 %v9159_v0  ;;  %v5267_v29 = vpack.c.bf16 %v525_v12, %v524_v63  ;;  %v6411_v63 = vsel %vm314_vm1, %v315_v40, %v316_v58  ;;  %v318_v12 = vrot.slane %v6187_v54, 7  ;;  %v6425_v58 = vsel %vm411_vm0, %v430_v50, %v9158_v3  ;;  %v6444_v3 = vld [vmem:[%s6154_s28 + $0xc0] sm:$0xff] }
  0xab   : > { %5209 = vmatpush1.bf16.msra.mxu0 %v5208_v17  ;;  %v6395_v17 = vsel %vm411_vm0, %v428_v33, %v9151_v57  ;;  %v9161_v33 = vrot.slane %v6385_v19, 1  ;;  %v432_v57 = vrot.slane %v6388_v26, 1  ;;  %9328 = vst [vmem:[#allocation25_spill] sm:$0xff] %v6425_v58  ;;  %v434_v50 = vrot.slane %v6418_v20, 1 }
  0xac   : > { %4736 = vmatmul.mubr.f32.gmra.mrb[14].mxu1 %v6368_v47  ;;  %5291 = vmatprep.subr.bf16.mxu0 %v5290_v43  ;;  %9326 = vst [vmem:[#allocation23_spill] sm:$0xff] %v6395_v17  ;;  %v6477_v47 = vld [vmem:[%s6154_s28 + $0xd8] sm:$0xff] }
  0xad   : > { %5265 = vmatpush1.bf16.msra.mxu1 %v5264_v53  ;;  %4738 = vmatprep.mubr.f32.mxu1 %v6375_v6  ;;  %v527_v53 = vld [vmem:[#allocation5 + $0x98] sm:$0xff]  ;;  %v6433_v37 = vsel %vm411_vm0, %v9161_v33, %v432_v57  ;;  %v5302_v33 = vpack.c.bf16 %v547_v61, %v546_v7  ;;  %v549_v6 = vld [vmem:[#allocation5 + $0x148] sm:$0xff]  ;;  %v9333_v61 = vrot.slane %v6415_v25, 1 }
  0xae   : > { %670 = vmatmul.mubr.f32.vlgmr.msra.gmra.mrb[0].mxu0 %v6382_v46  ;;  %5266 = vmatprep.subr.bf16.mxu1 %v9159_v0  ;;  %v5270_v40 = vpack.c.bf16 %v527_v53, %v526_v16  ;;  %9329 = vst [vmem:[#allocation26_spill] sm:$0xff] %v6433_v37  ;;  %v9330_v16 = vrot.slane %v6187_v54, 1 }
  0xaf   : > { %674 = vmatprep.mubr.f32.mxu0 %v6171_v28  ;;  %5293 = vmatpush3.bf16.msra.mxu0 %v5290_v43  ;;  %v529_v43 = vld [vmem:[#allocation5 + $0xa8] sm:$0xff]  ;;  %v6462_v7 = vsel %vm411_vm0, %v9333_v61, %v434_v50 }
  0xb0   : > { %4739 = vmatmul.mubr.f32.gmra.mrb[16].mxu1 %v6395_v17  ;;  %5295 = vmatprep.subr.bf16.mxu0 %v5294_v27  ;;  %v6441_v53 = vsel %vm314_vm1, %v9330_v16, %v318_v12  ;;  %v5273_v16 = vpack.c.bf16 %v529_v43, %v528_v41  ;;  %v548_v17 = vld [vmem:[#allocation5 + $0x140] sm:$0xff]  ;;  %9334 = vst [vmem:[#allocation28_spill] sm:$0xff] %v6462_v7  ;;  %v9335_v41 = vrot.slane %v6190_v55, 7 }
  0xb1   : > { %5268 = vmatpush1.bf16.msra.mxu1 %v5267_v29  ;;  %4741 = vmatprep.mubr.f32.mxu1 %v6403_v9  ;;  %v6454_v29 = vsel %vm411_vm0, %v432_v57, %v9170_v11  ;;  %v321_v9 = vrot.slane %v6197_v1, 7  ;;  %v5306_v61 = vpack.c.bf16 %v549_v6, %v548_v17  ;;  %v9336_v57 = vrot.slane %v6418_v20, 7  ;;  %v532_v17 = vld [vmem:[#allocation5 + $0xc0] sm:$0xff] }
  0xb2   : > { %675 = vmatmul.mubr.f32.gmra.mrb[2].mxu0 %v6411_v63  ;;  %5269 = vmatprep.subr.bf16.mxu1 %v9159_v0  ;;  %v6447_v0 = vld [vmem:[%s6154_s28 + $0xc8] sm:$0xff]  ;;  %9331 = vst [vmem:[#allocation27_spill] sm:$0xff] %v6454_v29  ;;  %v6470_v43 = vsel %vm314_vm1, %v318_v12, %v9335_v41 }
  0xb3   : > { %679 = vmatprep.mubr.f32.mxu0 %v6187_v54  ;;  %5297 = vmatpush3.bf16.msra.mxu0 %v5294_v27  ;;  %v9332_v27 = vmov 0.0|0.0   ;;  %v436_v11 = vrot.slane %v6447_v0, 1  ;;  %v6484_v12 = vsel %vm411_vm0, %v434_v50, %v9336_v57  ;;  %v438_v50 = vrot.slane %v6477_v47, 1  ;;  %v6503_v57 = vld [vmem:[%s6154_s28 + $0xe0] sm:$0xff] }
  0xb4   : > { %4742 = vmatmul.mubr.f32.gmra.mrb[18].mxu1 %v6425_v58  ;;  %5299 = vmatprep.subr.bf16.mxu0 %v5298_v56  ;;  %v6474_v58 = vld [vmem:[%s6154_s28 + $0xd0] sm:$0xff]  ;;  %9337 = vst [vmem:[#allocation29_spill] sm:$0xff] %v6484_v12 }
  0xb5   : > { %5271 = vmatpush1.bf16.msra.mxu1 %v5270_v40  ;;  %4744 = vmatprep.mubr.f32.mxu1 %v6433_v37  ;;  %v530_v40 = vld [vmem:[#allocation5 + $0xb0] sm:$0xff]  ;;  %v531_v37 = vld [vmem:[#allocation5 + $0xb8] sm:$0xff] }
  0xb6   : > { %680 = vmatmul.mubr.f32.gmra.mrb[4].mxu0 %v6441_v53  ;;  %5272 = vmatprep.subr.bf16.mxu1 %v9332_v27  ;;  %v5276_v41 = vpack.c.bf16 %v531_v37, %v530_v40  ;;  %v9340_v37 = vrot.slane %v6197_v1, 1 }
  0xb7   : > { %684 = vmatprep.mubr.f32.mxu0 %v6190_v55  ;;  %5301 = vmatpush3.bf16.msra.mxu0 %v5298_v56  ;;  %v9338_v56 = vrot.slane %v6444_v3, 1 }
  0xb8   : > { %4745 = vmatmul.mubr.f32.gmra.mrb[20].mxu1 %v6454_v29  ;;  %5303 = vmatprep.subr.bf16.mxu0 %v5302_v33  ;;  %v6500_v40 = vsel %vm314_vm1, %v9340_v37, %v321_v9 }
  0xb9   : > { %5274 = vmatpush1.bf16.msra.mxu1 %v5273_v16  ;;  %4747 = vmatprep.mubr.f32.mxu1 %v6462_v7  ;;  %v6492_v6 = vsel %vm411_vm0, %v9338_v56, %v436_v11  ;;  %v533_v16 = vld [vmem:[#allocation5 + $0xc8] sm:$0xff]  ;;  %v5310_v56 = vpack.c.bf16 %v551_v39, %v550_v59  ;;  %v9341_v7 = vrot.slane %v6447_v0, 7  ;;  %v9343_v39 = vrot.slane %v6474_v58, 1 }
  0xba   : > { %685 = vmatmul.mubr.f32.gmra.mrb[6].mxu0 %v6470_v43  ;;  %5275 = vmatprep.subr.bf16.mxu1 %v9332_v27  ;;  %9339 = vst [vmem:[#allocation30_spill] sm:$0xff] %v6492_v6  ;;  %v5279_v37 = vpack.c.bf16 %v533_v16, %v532_v17  ;;  %v9345_v17 = vrot.slane %v6200_v2, 7 }
  0xbb   : > { %689 = vmatprep.mubr.f32.mxu0 %v6197_v1  ;;  %5305 = vmatpush3.bf16.msra.mxu0 %v5302_v33  ;;  %v6513_v29 = vsel %vm411_vm0, %v436_v11, %v9341_v7  ;;  %v6521_v59 = vsel %vm411_vm0, %v9343_v39, %v438_v50  ;;  %v534_v33 = vld [vmem:[#allocation5 + $0xd0] sm:$0xff]  ;;  %v440_v7 = vrot.slane %v6506_v13, 1  ;;  %v5314_v39 = vpack.c.bf16 %v553_v4, %v552_v10  ;;  %v536_v10 = vld [vmem:[#allocation5 + $0xe0] sm:$0xff] }
  0xbc   : > { %4748 = vmatmul.mubr.f32.gmra.mrb[22].mxu1 %v6484_v12  ;;  %5307 = vmatprep.subr.bf16.mxu0 %v5306_v61  ;;  %9342 = vst [vmem:[#allocation31_spill] sm:$0xff] %v6513_v29  ;;  %9344 = vst [vmem:[#allocation32_spill] sm:$0xff] %v6521_v59  ;;  %v6529_v16 = vsel %vm314_vm1, %v321_v9, %v9345_v17  ;;  %v6536_v12 = vld [vmem:[%s6154_s28 + $0xf8] sm:$0xff]  ;;  %v9346_v11 = vrot.slane %v6477_v47, 7  ;;  %v9205_v17 = vrot.slane %v6506_v13, 7 }
  0xbd   : > { %5277 = vmatpush1.bf16.msra.mxu1 %v5276_v41  ;;  %4750 = vmatprep.mubr.f32.mxu1 %v6492_v6  ;;  %v535_v41 = vld [vmem:[#allocation5 + $0xd8] sm:$0xff]  ;;  %v6533_v6 = vld [vmem:[%s6154_s28 + $0xf0] sm:$0xff] }
  0xbe   : > { %690 = vmatmul.mubr.f32.gmra.mrb[8].mxu0 %v6500_v40  ;;  %5278 = vmatprep.subr.bf16.mxu1 %v9332_v27  ;;  %v6543_v51 = vsel %vm411_vm0, %v438_v50, %v9346_v11  ;;  %v5282_v9 = vpack.c.bf16 %v535_v41, %v534_v33  ;;  %v442_v50 = vrot.slane %v6536_v12, 1  ;;  %v9348_v33 = vrot.slane %v6218_v14, 1 }
  0xbf   : > { %694 = vmatprep.mubr.f32.mxu0 %v6200_v2  ;;  %5309 = vmatpush3.bf16.msra.mxu0 %v5306_v61  ;;  %v9347_v61 = vrot.slane %v6503_v57, 1  ;;  %v5318_v11 = vpack.c.bf16 %v555_v38, %v554_v48  ;;  %v538_v38 = vld [vmem:[#allocation5 + $0xf0] sm:$0xff]  ;;  %v539_v48 = vld [vmem:[#allocation5 + $0xf8] sm:$0xff] }
  0xc0   : > { %4751 = vmatmul.mubr.f32.gmra.mrb[24].mxu1 %v6513_v29  ;;  %5311 = vmatprep.subr.bf16.mxu0 %v5310_v56  ;;  %v6559_v41 = vsel %vm314_vm1, %v9348_v33, %v324_v32  ;;  %v9206_v29 = vrot.slane %v6536_v12, 7 }
  0xc1   : > { %5280 = vmatpush1.bf16.msra.mxu1 %v5279_v37  ;;  %4753 = vmatprep.mubr.f32.mxu1 %v6521_v59  ;;  %v6551_v4 = vsel %vm411_vm0, %v9347_v61, %v440_v7  ;;  %v537_v37 = vld [vmem:[#allocation5 + $0xe8] sm:$0xff]  ;;  %v6566_v61 = vsel %vm411_vm0, %v440_v7, %v9205_v17  ;;  %v1538_v17 = vld [vmem:[#allocation5 + $0x400] sm:$0xff] }
  0xc2   : > { %695 = vmatmul.mubr.f32.gmra.mrb[10].mxu0 %v6529_v16  ;;  %5281 = vmatprep.subr.bf16.mxu1 %v9332_v27  ;;  %v5285_v59 = vpack.c.bf16 %v537_v37, %v536_v10  ;;  %v327_v10 = vrot.slane %v6241_v30, 7  ;;  %v6588_v37 = vsel %vm411_vm0, %v442_v50, %v9206_v29  ;;  %v1508_v29 = vld [vmem:[#allocation5 + $0x310] sm:$0xff] }
  0xc3   : > { %699 = vmatprep.mubr.f32.mxu0 %v6218_v14  ;;  %5313 = vmatpush3.bf16.msra.mxu0 %v5310_v56  ;;  %v9349_v56 = vrot.slane %v6533_v6, 1  ;;  %9352 = vst [vmem:[#allocation34_spill] sm:$0xff] %v6588_v37 }
  0xc4   : > { %4754 = vmatmul.mubr.f32.gmra.mrb[26].mxu1 %v6543_v51  ;;  %5315 = vmatprep.subr.bf16.mxu0 %v5314_v39 }
  0xc5   : > { %5283 = vmatpush1.bf16.msra.mxu1 %v5282_v9  ;;  %4756 = vmatprep.mubr.f32.mxu1 %v6551_v4  ;;  %v6574_v33 = vsel %vm411_vm0, %v9349_v56, %v442_v50  ;;  %v9351_v9 = vrot.slane %v6221_v15, 7  ;;  %v5288_v56 = vpack.c.bf16 %v539_v48, %v538_v38  ;;  %v1539_v50 = vld [vmem:[#allocation5 + $0x408] sm:$0xff] }
  0xc6   : > { %700 = vmatmul.mubr.f32.gmra.mrb[12].mxu0 %v6559_v41  ;;  %5284 = vmatprep.subr.bf16.mxu1 %v9332_v27  ;;  %9350 = vst [vmem:[#allocation33_spill] sm:$0xff] %v6574_v33  ;;  %v6600_v48 = vpack.c.bf16 %v1539_v50, %v1538_v17 }
  0xc7   : > { %704 = vmatprep.mubr.f32.mxu0 %v6221_v15  ;;  %v6580_v7 = vsel %vm314_vm1, %v324_v32, %v9351_v9  ;;  %5317 = vmatpush3.bf16.msra.mxu0 %v5314_v39  ;;  %v1506_v32 = vld [vmem:[#allocation5 + $0x300] sm:$0xff]  ;;  %v1507_v9 = vld [vmem:[#allocation5 + $0x308] sm:$0xff]  ;;  %v9353_v39 = vrot.slane %v6241_v30, 1 }
  0xc8   : > { %4757 = vmatmul.mubr.f32.gmra.mrb[28].mxu1 %v6566_v61  ;;  %5319 = vmatprep.subr.bf16.mxu0 %v5318_v11  ;;  %v5323_v38 = vpack.c.bf16 %v1507_v9, %v1506_v32  ;;  %v1510_v32 = vld [vmem:[#allocation5 + $0x320] sm:$0xff]  ;;  %v1511_v9 = vld [vmem:[#allocation5 + $0x328] sm:$0xff] }
  0xc9   : > { %5286 = vmatpush1.bf16.msra.mxu1 %v5285_v59  ;;  %4759 = vmatprep.mubr.f32.mxu1 %v6574_v33  ;;  %v6596_v59 = vsel %vm314_vm1, %v9353_v39, %v327_v10  ;;  %v1509_v33 = vld [vmem:[#allocation5 + $0x318] sm:$0xff] }
  0xca   : > { %705 = vmatmul.mubr.f32.gmra.mrb[14].mxu0 %v6580_v7  ;;  %5287 = vmatprep.subr.bf16.mxu1 %v9332_v27  ;;  %v5326_v17 = vpack.c.bf16 %v1509_v33, %v1508_v29  ;;  %v1512_v29 = vld [vmem:[#allocation5 + $0x330] sm:$0xff]  ;;  %v1513_v33 = vld [vmem:[#allocation5 + $0x338] sm:$0xff] }
  0xcb   : > { %709 = vmatprep.mubr.f32.mxu0 %v6241_v30  ;;  %5321 = vmatpush3.bf16.msra.mxu0 %v5318_v11  ;;  %v9354_v11 = vrot.slane %v6244_v31, 7 }
  0xcc   : > { %4760 = vmatmul.mubr.f32.gmra.mrb[30].mxu1 %v6588_v37  ;;  %5371 = vmatprep.subr.bf16.mxu0 %v6600_v48 }
  0xcd   : > { %5289 = vmatpush1.bf16.msra.mxu1 %v5288_v56  ;;  %1119 = vmatprep.mubr.f32.mxu1 %v6187_v54  ;;  %v6608_v39 = vsel %vm314_vm1, %v327_v10, %v9354_v11  ;;  %v330_v56 = vrot.slane %v6264_v44, 7  ;;  %v9355_v10 = vrot.slane %v6264_v44, 1  ;;  %v9356_v11 = vrot.slane %v6267_v45, 7 }
  0xce   : > { %710 = vmatmul.mubr.f32.gmra.mrb[16].mxu0 %v6596_v59  ;;  %5322 = vmatprep.subr.bf16.mxu1 %v9332_v27 }
  0xcf   : > { %714 = vmatprep.mubr.f32.mxu0 %v6244_v31  ;;  %v6620_v50 = vsel %vm314_vm1, %v9355_v10, %v330_v56  ;;  %v6630_v37 = vsel %vm314_vm1, %v330_v56, %v9356_v11  ;;  %v333_v10 = vrot.slane %v6287_v60, 7  ;;  %v336_v11 = vrot.slane %v6310_v22, 7 }
  0xd0   : > { %1120 = vmatmul.mubr.f32.vlgmr.msra.gmra.mrb[32].mxu1 %v6441_v53 }
  0xd1   : > { %5324 = vmatpush1.bf16.msra.mxu1 %v5323_v38  ;;  %1124 = vmatprep.mubr.f32.mxu1 %v6190_v55  ;;  %v5329_v38 = vpack.c.bf16 %v1511_v9, %v1510_v32  ;;  %v1515_v32 = vld [vmem:[#allocation5 + $0x348] sm:$0xff]  ;;  %v9357_v9 = vrot.slane %v6287_v60, 1 }
  0xd2   : > { %715 = vmatmul.mubr.f32.gmra.mrb[18].mxu0 %v6608_v39  ;;  %5325 = vmatprep.subr.bf16.mxu1 %v9332_v27 }
  0xd3   : > { %719 = vmatprep.mubr.f32.mxu0 %v6264_v44  ;;  %v6641_v56 = vsel %vm314_vm1, %v9357_v9, %v333_v10  ;;  %v1521_v9 = vld [vmem:[#allocation5 + $0x378] sm:$0xff] }
  0xd4   : > { %1125 = vmatmul.mubr.f32.gmra.mrb[34].mxu1 %v6470_v43 }
  0xd5   : > { %1129 = vmatprep.mubr.f32.mxu1 %v6168_v24  ;;  %5327 = vmatpush1.bf16.msra.mxu1 %v5326_v17  ;;  %v5332_v24 = vpack.c.bf16 %v1513_v33, %v1512_v29  ;;  %v1514_v17 = vld [vmem:[#allocation5 + $0x340] sm:$0xff]  ;;  %v9358_v29 = vrot.slane %v6290_v62, 7 }
  0xd6   : > { %720 = vmatmul.mubr.f32.gmra.mrb[20].mxu0 %v6620_v50  ;;  %5328 = vmatprep.subr.bf16.mxu1 %v9332_v27 }
  0xd7   : > { %724 = vmatprep.mubr.f32.mxu0 %v6267_v45  ;;  %v6651_v33 = vsel %vm314_vm1, %v333_v10, %v9358_v29  ;;  %v1522_v29 = vld [vmem:[#allocation5 + $0x380] sm:$0xff] }
  0xd8   : > { %1130 = vmatmul.mubr.f32.gmra.mrb[36].mxu1 %v6382_v46  ;;  %v1516_v46 = vld [vmem:[#allocation5 + $0x350] sm:$0xff] }
  0xd9   : > { %1134 = vmatprep.mubr.f32.mxu1 %v6171_v28  ;;  %5330 = vmatpush1.bf16.msra.mxu1 %v5329_v38  ;;  %v5335_v28 = vpack.c.bf16 %v1515_v32, %v1514_v17  ;;  %v1517_v38 = vld [vmem:[#allocation5 + $0x358] sm:$0xff]  ;;  %v9359_v17 = vrot.slane %v6310_v22, 1  ;;  %v1520_v32 = vld [vmem:[#allocation5 + $0x370] sm:$0xff] }
  0xda   : > { %725 = vmatmul.mubr.f32.gmra.mrb[22].mxu0 %v6630_v37  ;;  %5331 = vmatprep.subr.bf16.mxu1 %v9332_v27 }
  0xdb   : > { %729 = vmatprep.mubr.f32.mxu0 %v6287_v60  ;;  %v6662_v10 = vsel %vm314_vm1, %v9359_v17, %v336_v11  ;;  %v1525_v17 = vld [vmem:[#allocation5 + $0x398] sm:$0xff] }
  0xdc   : > { %1135 = vmatmul.mubr.f32.gmra.mrb[38].mxu1 %v6411_v63  ;;  %v1518_v63 = vld [vmem:[#allocation5 + $0x360] sm:$0xff] }
  0xdd   : > { %1139 = vmatprep.mubr.f32.mxu1 %v6187_v54  ;;  %5333 = vmatpush1.bf16.msra.mxu1 %v5332_v24  ;;  %v5338_v54 = vpack.c.bf16 %v1517_v38, %v1516_v46  ;;  %v1519_v24 = vld [vmem:[#allocation5 + $0x368] sm:$0xff]  ;;  %v339_v38 = vrot.slane %v6333_v49, 7 }
  0xde   : > { %730 = vmatmul.mubr.f32.gmra.mrb[24].mxu0 %v6641_v56  ;;  %5334 = vmatprep.subr.bf16.mxu1 %v9332_v27 }
  0xdf   : > { %734 = vmatprep.mubr.f32.mxu0 %v6290_v62 }
  0xe0   : > { %1140 = vmatmul.mubr.f32.gmra.mrb[40].mxu1 %v6441_v53 }
  0xe1   : > { %1144 = vmatprep.mubr.f32.mxu1 %v6190_v55  ;;  %5336 = vmatpush1.bf16.msra.mxu1 %v5335_v28  ;;  %v5341_v55 = vpack.c.bf16 %v1519_v24, %v1518_v63  ;;  %v9360_v28 = vrot.slane %v6313_v23, 7  ;;  %v9361_v63 = vrot.slane %v6333_v49, 1  ;;  %v1524_v24 = vld [vmem:[#allocation5 + $0x390] sm:$0xff] }
  0xe2   : > { %735 = vmatmul.mubr.f32.gmra.mrb[26].mxu0 %v6651_v33  ;;  %5337 = vmatprep.subr.bf16.mxu1 %v9332_v27 }
  0xe3   : > { %739 = vmatprep.mubr.f32.mxu0 %v6310_v22  ;;  %v6672_v46 = vsel %vm314_vm1, %v336_v11, %v9360_v28  ;;  %v6683_v11 = vsel %vm314_vm1, %v9361_v63, %v339_v38  ;;  %v1526_v28 = vld [vmem:[#allocation5 + $0x3a0] sm:$0xff]  ;;  %v1529_v63 = vld [vmem:[#allocation5 + $0x3b8] sm:$0xff] }
  0xe4   : > { %1145 = vmatmul.mubr.f32.gmra.mrb[42].mxu1 %v6470_v43 }
  0xe5   : > { %1149 = vmatprep.mubr.f32.mxu1 %v6197_v1  ;;  %5339 = vmatpush1.bf16.msra.mxu1 %v5338_v54  ;;  %v5344_v1 = vpack.c.bf16 %v1521_v9, %v1520_v32  ;;  %v1523_v54 = vld [vmem:[#allocation5 + $0x388] sm:$0xff]  ;;  %v342_v9 = vrot.slane %v6357_v42, 7 }
  0xe6   : > { %740 = vmatmul.mubr.f32.gmra.mrb[28].mxu0 %v6662_v10  ;;  %5340 = vmatprep.subr.bf16.mxu1 %v9332_v27 }
  0xe7   : > { %744 = vmatprep.mubr.f32.mxu0 %v6313_v23 }
  0xe8   : > { %1150 = vmatmul.mubr.f32.gmra.mrb[44].mxu1 %v6500_v40 }
  0xe9   : > { %1154 = vmatprep.mubr.f32.mxu1 %v6200_v2  ;;  %5342 = vmatpush1.bf16.msra.mxu1 %v5341_v55  ;;  %v5347_v2 = vpack.c.bf16 %v1523_v54, %v1522_v29  ;;  %v9362_v55 = vrot.slane %v6336_v52, 7  ;;  %v9363_v29 = vrot.slane %v6357_v42, 1  ;;  %v1528_v54 = vld [vmem:[#allocation5 + $0x3b0] sm:$0xff] }
  0xea   : > { %745 = vmatmul.mubr.f32.gmra.mrb[30].mxu0 %v6672_v46  ;;  %5343 = vmatprep.subr.bf16.mxu1 %v9332_v27 }
  0xeb   : > { %749 = vmatprep.mubr.f32.mxu0 %v6333_v49  ;;  %v6693_v32 = vsel %vm314_vm1, %v339_v38, %v9362_v55  ;;  %v6704_v38 = vsel %vm314_vm1, %v9363_v29, %v342_v9  ;;  %v1530_v55 = vld [vmem:[#allocation5 + $0x3c0] sm:$0xff]  ;;  %v1533_v29 = vld [vmem:[#allocation5 + $0x3d8] sm:$0xff] }
  0xec   : > { %1155 = vmatmul.mubr.f32.gmra.mrb[46].mxu1 %v6529_v16 }
  0xed   : > { %1159 = vmatprep.mubr.f32.mxu1 %v6218_v14  ;;  %5345 = vmatpush1.bf16.msra.mxu1 %v5344_v1  ;;  %v5350_v14 = vpack.c.bf16 %v1525_v17, %v1524_v24  ;;  %v1527_v1 = vld [vmem:[#allocation5 + $0x3a8] sm:$0xff]  ;;  %v345_v17 = vrot.slane %v6385_v19, 7 }
  0xee   : > { %750 = vmatmul.mubr.f32.gmra.mrb[32].mxu0 %v6683_v11  ;;  %5346 = vmatprep.subr.bf16.mxu1 %v9332_v27 }
  0xef   : > { %754 = vmatprep.mubr.f32.mxu0 %v6336_v52 }
  0xf0   : > { %1160 = vmatmul.mubr.f32.gmra.mrb[48].mxu1 %v6559_v41 }
  0xf1   : > { %1164 = vmatprep.mubr.f32.mxu1 %v6221_v15  ;;  %5348 = vmatpush1.bf16.msra.mxu1 %v5347_v2  ;;  %v5353_v15 = vpack.c.bf16 %v1527_v1, %v1526_v28  ;;  %v9364_v2 = vrot.slane %v6360_v36, 7  ;;  %v9365_v28 = vrot.slane %v6385_v19, 1  ;;  %v1532_v1 = vld [vmem:[#allocation5 + $0x3d0] sm:$0xff] }
  0xf2   : > { %755 = vmatmul.mubr.f32.gmra.mrb[34].mxu0 %v6693_v32  ;;  %5349 = vmatprep.subr.bf16.mxu1 %v9332_v27 }
  0xf3   : > { %759 = vmatprep.mubr.f32.mxu0 %v6357_v42  ;;  %v6714_v24 = vsel %vm314_vm1, %v342_v9, %v9364_v2  ;;  %v6725_v9 = vsel %vm314_vm1, %v9365_v28, %v345_v17  ;;  %v1534_v2 = vld [vmem:[#allocation5 + $0x3e0] sm:$0xff]  ;;  %v1537_v28 = vld [vmem:[#allocation5 + $0x3f8] sm:$0xff] }
  0xf4   : > { %1165 = vmatmul.mubr.f32.gmra.mrb[50].mxu1 %v6580_v7 }
  0xf5   : > { %1169 = vmatprep.mubr.f32.mxu1 %v6241_v30  ;;  %5351 = vmatpush1.bf16.msra.mxu1 %v5350_v14  ;;  %v5356_v30 = vpack.c.bf16 %v1529_v63, %v1528_v54  ;;  %v1531_v14 = vld [vmem:[#allocation5 + $0x3c8] sm:$0xff]  ;;  %v348_v63 = vrot.slane %v6415_v25, 7 }
  0xf6   : > { %760 = vmatmul.mubr.f32.gmra.mrb[36].mxu0 %v6704_v38  ;;  %5352 = vmatprep.subr.bf16.mxu1 %v9332_v27 }
  0xf7   : > { %764 = vmatprep.mubr.f32.mxu0 %v6360_v36 }
  0xf8   : > { %1170 = vmatmul.mubr.f32.gmra.mrb[52].mxu1 %v6596_v59 }
  0xf9   : > { %1174 = vmatprep.mubr.f32.mxu1 %v6244_v31  ;;  %5354 = vmatpush1.bf16.msra.mxu1 %v5353_v15  ;;  %v5359_v31 = vpack.c.bf16 %v1531_v14, %v1530_v55  ;;  %v9366_v15 = vrot.slane %v6388_v26, 7  ;;  %v9367_v55 = vrot.slane %v6415_v25, 1  ;;  %v1536_v14 = vld [vmem:[#allocation5 + $0x3f0] sm:$0xff] }
  0xfa   : > { %765 = vmatmul.mubr.f32.gmra.mrb[38].mxu0 %v6714_v24  ;;  %5355 = vmatprep.subr.bf16.mxu1 %v9332_v27 }
  0xfb   : > { %769 = vmatprep.mubr.f32.mxu0 %v6385_v19  ;;  %v6735_v54 = vsel %vm314_vm1, %v345_v17, %v9366_v15  ;;  %v6746_v17 = vsel %vm314_vm1, %v9367_v55, %v348_v63  ;;  %v9369_v15 = vrot.slane %v6444_v3, 1  ;;  %v9372_v55 = vrot.slane %v6477_v47, 7 }
  0xfc   : > { %1175 = vmatmul.mubr.f32.gmra.mrb[54].mxu1 %v6608_v39 }
  0xfd   : > { %1179 = vmatprep.mubr.f32.mxu1 %v6264_v44  ;;  %5357 = vmatpush1.bf16.msra.mxu1 %v5356_v30  ;;  %v5362_v44 = vpack.c.bf16 %v1533_v29, %v1532_v1  ;;  %v1535_v30 = vld [vmem:[#allocation5 + $0x3e8] sm:$0xff]  ;;  %v351_v29 = vrot.slane %v6444_v3, 7 }
  0xfe   : > { %770 = vmatmul.mubr.f32.gmra.mrb[40].mxu0 %v6725_v9  ;;  %5358 = vmatprep.subr.bf16.mxu1 %v9332_v27 }
  0xff   : > { %774 = vmatprep.mubr.f32.mxu0 %v6388_v26 }
 0x100   : > { %1180 = vmatmul.mubr.f32.gmra.mrb[56].mxu1 %v6620_v50 }
 0x101   : > { %1184 = vmatprep.mubr.f32.mxu1 %v6267_v45  ;;  %5360 = vmatpush1.bf16.msra.mxu1 %v5359_v31  ;;  %v5365_v45 = vpack.c.bf16 %v1535_v30, %v1534_v2  ;;  %v9368_v31 = vrot.slane %v6418_v20, 7  ;;  %v354_v2 = vrot.slane %v6474_v58, 7 }
 0x102   : > { %775 = vmatmul.mubr.f32.gmra.mrb[42].mxu0 %v6735_v54  ;;  %5361 = vmatprep.subr.bf16.mxu1 %v9332_v27 }
 0x103   : > { %779 = vmatprep.mubr.f32.mxu0 %v6415_v25  ;;  %v6756_v1 = vsel %vm314_vm1, %v348_v63, %v9368_v31  ;;  %v360_v31 = vrot.slane %v6533_v6, 7 }
 0x104   : > { %1185 = vmatmul.mubr.f32.gmra.mrb[58].mxu1 %v6630_v37 }
 0x105   : > { %1189 = vmatprep.mubr.f32.mxu1 %v6287_v60  ;;  %5363 = vmatpush1.bf16.msra.mxu1 %v5362_v44  ;;  %v5368_v60 = vpack.c.bf16 %v1537_v28, %v1536_v14  ;;  %v6767_v44 = vsel %vm314_vm1, %v9369_v15, %v351_v29  ;;  %v9374_v28 = vrot.slane %v6506_v13, 7  ;;  %v1541_v15 = vld [vmem:[#allocation5 + $0x418] sm:$0xff] }
 0x106   : > { %780 = vmatmul.mubr.f32.gmra.mrb[44].mxu0 %v6746_v17  ;;  %5364 = vmatprep.subr.bf16.mxu1 %v9332_v27 }
 0x107   : > { %784 = vmatprep.mubr.f32.mxu0 %v6418_v20 }
 0x108   : > { %1190 = vmatmul.mubr.f32.gmra.mrb[60].mxu1 %v6641_v56 }
 0x109   : > { %1194 = vmatprep.mubr.f32.mxu1 %v6290_v62  ;;  %5366 = vmatpush1.bf16.msra.mxu1 %v5365_v45  ;;  %v9370_v62 = vrot.slane %v6447_v0, 7  ;;  %v357_v45 = vrot.slane %v6503_v57, 7 }
 0x10a   : > { %785 = vmatmul.mubr.f32.gmra.mrb[46].mxu0 %v6756_v1  ;;  %5367 = vmatprep.subr.bf16.mxu1 %v9332_v27 }
 0x10b   : > { %789 = vmatprep.mubr.f32.mxu0 %v6444_v3  ;;  %v6776_v63 = vsel %vm314_vm1, %v351_v29, %v9370_v62  ;;  %v1542_v62 = vld [vmem:[#allocation5 + $0x420] sm:$0xff] }
 0x10c   : > { %1195 = vmatmul.mubr.f32.gmra.mrb[62].mxu1 %v6651_v33 }
 0x10d   : > { %1199 = vmatprep.mubr.f32.mxu1 %v6310_v22  ;;  %5369 = vmatpush1.bf16.msra.mxu1 %v5368_v60  ;;  %v9371_v22 = vrot.slane %v6474_v58, 1  ;;  %v9376_v60 = vrot.slane %v6536_v12, 7 }
 0x10e   : > { %790 = vmatmul.mubr.f32.gmra.mrb[48].mxu0 %v6767_v44 }
 0x10f   : > { %794 = vmatprep.mubr.f32.mxu0 %v6447_v0  ;;  %v6786_v30 = vsel %vm314_vm1, %v9371_v22, %v354_v2  ;;  %v1545_v22 = vld [vmem:[#allocation5 + $0x438] sm:$0xff] }
 0x110   : > { %1200 = vmatmul.mubr.f32.gmra.mrb[64].mxu1 %v6662_v10 }
 0x111   : > { %1204 = vmatprep.mubr.f32.mxu1 %v6313_v23  ;;  %v6795_v23 = vsel %vm314_vm1, %v354_v2, %v9372_v55  ;;  %v1544_v2 = vld [vmem:[#allocation5 + $0x430] sm:$0xff]  ;;  %v1549_v55 = vld [vmem:[#allocation5 + $0x458] sm:$0xff] }
 0x112   : > { %795 = vmatmul.mubr.f32.gmra.mrb[50].mxu0 %v6776_v63 }
 0x113   : > { %799 = vmatprep.mubr.f32.mxu0 %v6474_v58 }
 0x114   : > { %1205 = vmatmul.mubr.f32.gmra.mrb[66].mxu1 %v6672_v46 }
 0x115   : > { %1209 = vmatprep.mubr.f32.mxu1 %v6333_v49  ;;  %v9373_v49 = vrot.slane %v6503_v57, 1 }
 0x116   : > { %800 = vmatmul.mubr.f32.gmra.mrb[52].mxu0 %v6786_v30 }
 0x117   : > { %804 = vmatprep.mubr.f32.mxu0 %v6477_v47  ;;  %v6805_v14 = vsel %vm314_vm1, %v9373_v49, %v357_v45  ;;  %v1550_v49 = vld [vmem:[#allocation5 + $0x460] sm:$0xff] }
 0x118   : > { %1210 = vmatmul.mubr.f32.gmra.mrb[68].mxu1 %v6683_v11 }
 0x119   : > { %1214 = vmatprep.mubr.f32.mxu1 %v6336_v52  ;;  %v6814_v52 = vsel %vm314_vm1, %v357_v45, %v9374_v28  ;;  %v9377_v45 = vld [vmem:[#allocation12_spill] sm:$0xff]  ;;  %v1551_v28 = vld [vmem:[#allocation5 + $0x468] sm:$0xff] }
 0x11a   : > { %805 = vmatmul.mubr.f32.gmra.mrb[54].mxu0 %v6795_v23 }
 0x11b   : > { %809 = vmatprep.mubr.f32.mxu0 %v6503_v57 }
 0x11c   : > { %1215 = vmatmul.mubr.f32.gmra.mrb[70].mxu1 %v6693_v32 }
 0x11d   : > { %1219 = vmatprep.mubr.f32.mxu1 %v6357_v42  ;;  %v9375_v42 = vrot.slane %v6533_v6, 1 }
 0x11e   : > { %810 = vmatmul.mubr.f32.gmra.mrb[56].mxu0 %v6805_v14 }
 0x11f   : > { %814 = vmatprep.mubr.f32.mxu0 %v6506_v13  ;;  %v6824_v29 = vsel %vm314_vm1, %v9375_v42, %v360_v31  ;;  %v9379_v42 = vld [vmem:[#allocation14_spill] sm:$0xff] }
 0x120   : > { %1220 = vmatmul.mubr.f32.gmra.mrb[72].mxu1 %v6704_v38 }
 0x121   : > { %1224 = vmatprep.mubr.f32.mxu1 %v6360_v36  ;;  %v6833_v36 = vsel %vm314_vm1, %v360_v31, %v9376_v60  ;;  %v9378_v31 = vld [vmem:[#allocation13_spill] sm:$0xff]  ;;  %v1552_v60 = vld [vmem:[#allocation5 + $0x470] sm:$0xff] }
 0x122   : > { %815 = vmatmul.mubr.f32.gmra.mrb[58].mxu0 %v6814_v52 }
 0x123   : > { %819 = vmatprep.mubr.f32.mxu0 %v6533_v6  ;;  %v1540_v6 = vld [vmem:[#allocation5 + $0x410] sm:$0xff] }
 0x124   : > { %1225 = vmatmul.mubr.f32.gmra.mrb[74].mxu1 %v6714_v24 }
 0x125   : > { %1229 = vmatprep.mubr.f32.mxu1 %v6385_v19  ;;  %v5374_v19 = vpack.c.bf16 %v1541_v15, %v1540_v6  ;;  %v1553_v6 = vld [vmem:[#allocation5 + $0x478] sm:$0xff] }
 0x126   : > { %820 = vmatmul.mubr.f32.gmra.mrb[60].mxu0 %v6824_v29  ;;  %v9380_v15 = vld [vmem:[#allocation15_spill] sm:$0xff] }
 0x127   : > { %824 = vmatprep.mubr.f32.mxu0 %v6536_v12  ;;  %v1543_v12 = vld [vmem:[#allocation5 + $0x428] sm:$0xff] }
 0x128   : > { %1230 = vmatmul.mubr.f32.gmra.mrb[76].mxu1 %v6725_v9 }
 0x129   : > { %1234 = vmatprep.mubr.f32.mxu1 %v6388_v26  ;;  %v5378_v26 = vpack.c.bf16 %v1543_v12, %v1542_v62  ;;  %v9382_v62 = vld [vmem:[#allocation17_spill] sm:$0xff]  ;;  %v9383_v12 = vld [vmem:[#allocation18_spill] sm:$0xff] }
 0x12a   : > { %825 = vmatmul.mubr.f32.gmra.mrb[62].mxu0 %v6833_v36 }
 0x12b   : > { %4794 = vmatprep.mubr.f32.mxu0 %v6213_v8 }
 0x12c   : > { %1235 = vmatmul.mubr.f32.gmra.mrb[78].mxu1 %v6735_v54 }
 0x12d   : > { %1239 = vmatprep.mubr.f32.mxu1 %v6415_v25  ;;  %v5382_v25 = vpack.c.bf16 %v1545_v22, %v1544_v2  ;;  %v9386_v2 = vld [vmem:[#allocation21_spill] sm:$0xff]  ;;  %v9387_v22 = vld [vmem:[#allocation22_spill] sm:$0xff] }
 0x12e   : > { %4795 = vmatmul.mubr.f32.vlgmr.msra.gmra.mrb[64].mxu0 %v6229_v18 }
 0x12f   : > { %4797 = vmatprep.mubr.f32.mxu0 %v6180_v34  ;;  %5373 = vmatpush3.bf16.msra.mxu0 %v6600_v48  ;;  %v1546_v34 = vld [vmem:[#allocation5 + $0x440] sm:$0xff]  ;;  %v1547_v48 = vld [vmem:[#allocation5 + $0x448] sm:$0xff] }
 0x130   : > { %1240 = vmatmul.mubr.f32.gmra.mrb[80].mxu1 %v6746_v17  ;;  %5375 = vmatprep.subr.bf16.mxu0 %v5374_v19 }
 0x131   : > { %1244 = vmatprep.mubr.f32.mxu1 %v6418_v20  ;;  %v1548_v20 = vld [vmem:[#allocation5 + $0x450] sm:$0xff] }
 0x132   : > { %4798 = vmatmul.mubr.f32.gmra.mrb[66].mxu0 %v6206_v5  ;;  %v5386_v5 = vpack.c.bf16 %v1547_v48, %v1546_v34  ;;  %v9389_v34 = vld [vmem:[#allocation24_spill] sm:$0xff] }
 0x133   : > { %4800 = vmatprep.mubr.f32.mxu0 %v6213_v8  ;;  %5377 = vmatpush3.bf16.msra.mxu0 %v5374_v19  ;;  %v9381_v19 = vld [vmem:[#allocation16_spill] sm:$0xff] }
 0x134   : > { %1245 = vmatmul.mubr.f32.gmra.mrb[82].mxu1 %v6756_v1  ;;  %5379 = vmatprep.subr.bf16.mxu0 %v5378_v26  ;;  %v5720_v48 = vld [vmem:[%s6154_s28 + $0x20] sm:$0xff] }
 0x135   : > { %1249 = vmatprep.mubr.f32.mxu1 %v6444_v3  ;;  %v5390_v3 = vpack.c.bf16 %v1549_v55, %v1548_v20  ;;  %v9391_v20 = vld [vmem:[#allocation26_spill] sm:$0xff]  ;;  %v5721_v55 = vld [vmem:[%s6154_s28 + $0x28] sm:$0xff] }
 0x136   : > { %4801 = vmatmul.mubr.f32.gmra.mrb[68].mxu0 %v6229_v18 }
 0x137   : > { %4803 = vmatprep.mubr.f32.mxu0 %v6236_v21  ;;  %5381 = vmatpush3.bf16.msra.mxu0 %v5378_v26  ;;  %v9385_v26 = vld [vmem:[#allocation20_spill] sm:$0xff] }
 0x138   : > { %1250 = vmatmul.mubr.f32.gmra.mrb[84].mxu1 %v6767_v44  ;;  %5383 = vmatprep.subr.bf16.mxu0 %v5382_v25 }
 0x139   : > { %1254 = vmatprep.mubr.f32.mxu1 %v6447_v0  ;;  %v5394_v0 = vpack.c.bf16 %v1551_v28, %v1550_v49  ;;  %v5722_v49 = vld [vmem:[%s6154_s28 + $0x30] sm:$0xff] }
 0x13a   : > { %4804 = vmatmul.mubr.f32.gmra.mrb[70].mxu0 %v6252_v35  ;;  %v9395_v28 = vld [vmem:[#allocation30_spill] sm:$0xff] }
 0x13b   : > { %4806 = vmatprep.mubr.f32.mxu0 %v9377_v45  ;;  %5385 = vmatpush3.bf16.msra.mxu0 %v5382_v25  ;;  %v9388_v25 = vld [vmem:[#allocation23_spill] sm:$0xff] }
 0x13c   : > { %1255 = vmatmul.mubr.f32.gmra.mrb[86].mxu1 %v6776_v63  ;;  %5387 = vmatprep.subr.bf16.mxu0 %v5386_v5 }
 0x13d   : > { %1259 = vmatprep.mubr.f32.mxu1 %v6474_v58  ;;  %v5398_v58 = vpack.c.bf16 %v1553_v6, %v1552_v60  ;;  %v9397_v6 = vld [vmem:[#allocation32_spill] sm:$0xff] }
 0x13e   : > { %4807 = vmatmul.mubr.f32.gmra.mrb[72].mxu0 %v9378_v31 }
 0x13f   : > { %4809 = vmatprep.mubr.f32.mxu0 %v9379_v42  ;;  %5389 = vmatpush3.bf16.msra.mxu0 %v5386_v5  ;;  %v9390_v5 = vld [vmem:[#allocation25_spill] sm:$0xff] }
 0x140   : > { %1260 = vmatmul.mubr.f32.gmra.mrb[88].mxu1 %v6786_v30  ;;  %5391 = vmatprep.subr.bf16.mxu0 %v5390_v3 }
 0x141   : > { %1264 = vmatprep.mubr.f32.mxu1 %v6477_v47  ;;  %v9384_v47 = vld [vmem:[#allocation19_spill] sm:$0xff] }
 0x142   : > { %4810 = vmatmul.mubr.f32.gmra.mrb[74].mxu0 %v9380_v15 }
 0x143   : > { %4812 = vmatprep.mubr.f32.mxu0 %v9381_v19  ;;  %5393 = vmatpush3.bf16.msra.mxu0 %v5390_v3  ;;  %v9393_v3 = vld [vmem:[#allocation28_spill] sm:$0xff] }
 0x144   : > { %1265 = vmatmul.mubr.f32.gmra.mrb[90].mxu1 %v6795_v23  ;;  %5395 = vmatprep.subr.bf16.mxu0 %v5394_v0 }
 0x145   : > { %1269 = vmatprep.mubr.f32.mxu1 %v6503_v57  ;;  %v5718_v57 = vld [vmem:[%s6154_s28 + $0x10] sm:$0xff] }
 0x146   : > { %4813 = vmatmul.mubr.f32.gmra.mrb[76].mxu0 %v9382_v62 }
 0x147   : > { %4815 = vmatprep.mubr.f32.mxu0 %v9383_v12  ;;  %5397 = vmatpush3.bf16.msra.mxu0 %v5394_v0  ;;  %v5723_v0 = vld [vmem:[%s6154_s28 + $0x38] sm:$0xff] }
 0x148   : > { %1270 = vmatmul.mubr.f32.gmra.mrb[92].mxu1 %v6805_v14  ;;  %5399 = vmatprep.subr.bf16.mxu0 %v5398_v58 }
 0x149   : > { %1274 = vmatprep.mubr.f32.mxu1 %v6506_v13  ;;  %v5719_v13 = vld [vmem:[%s6154_s28 + $0x18] sm:$0xff] }
 0x14a   : > { %4816 = vmatmul.mubr.f32.gmra.mrb[78].mxu0 %v9384_v47 }
 0x14b   : > { %4818 = vmatprep.mubr.f32.mxu0 %v9385_v26  ;;  %5401 = vmatpush3.bf16.msra.mxu0 %v5398_v58 }
 0x14c   : > { %1275 = vmatmul.mubr.f32.gmra.mrb[94].mxu1 %v6814_v52  ;;  %5402 = vmatprep.subr.bf16.mxu0 %v9332_v27 }
 0x14d   : > { %1618 = vmatprep.mubr.f32.mxu1 %v5718_v57 }
 0x14e   : > { %4819 = vmatmul.mubr.f32.gmra.mrb[80].mxu0 %v9386_v2 }
 0x14f   : > { %4821 = vmatprep.mubr.f32.mxu0 %v9387_v22 }
 0x150   : > { %1619 = vmatmul.mubr.f32.vlgmr.msra.gmra.mrb[96].mxu1 %v6441_v53  ;;  %v9392_v53 = vld [vmem:[#allocation27_spill] sm:$0xff] }
 0x151   : > { %1623 = vmatprep.mubr.f32.mxu1 %v5719_v13  ;;  %v5725_v13 = vld [vmem:[%s6154_s28 + $0x48] sm:$0xff] }
 0x152   : > { %4822 = vmatmul.mubr.f32.gmra.mrb[82].mxu0 %v9388_v25 }
 0x153   : > { %4824 = vmatprep.mubr.f32.mxu0 %v9389_v34 }
 0x154   : > { %1624 = vmatmul.mubr.f32.gmra.mrb[98].mxu1 %v6470_v43  ;;  %v9394_v43 = vld [vmem:[#allocation29_spill] sm:$0xff] }
 0x155   : > { %1628 = vmatprep.mubr.f32.mxu1 %v5720_v48 }
 0x156   : > { %4825 = vmatmul.mubr.f32.gmra.mrb[84].mxu0 %v9390_v5 }
 0x157   : > { %4827 = vmatprep.mubr.f32.mxu0 %v9391_v20 }
 0x158   : > { %1629 = vmatmul.mubr.f32.gmra.mrb[100].mxu1 %v6500_v40  ;;  %v9396_v40 = vld [vmem:[#allocation31_spill] sm:$0xff] }
 0x159   : > { %1633 = vmatprep.mubr.f32.mxu1 %v5721_v55  ;;  %v5726_v55 = vld [vmem:[%s6154_s28 + $0x50] sm:$0xff] }
 0x15a   : > { %4828 = vmatmul.mubr.f32.gmra.mrb[86].mxu0 %v9392_v53 }
 0x15b   : > { %4830 = vmatprep.mubr.f32.mxu0 %v9393_v3 }
 0x15c   : > { %1634 = vmatmul.mubr.f32.gmra.mrb[102].mxu1 %v6529_v16  ;;  %v5724_v16 = vld [vmem:[%s6154_s28 + $0x40] sm:$0xff] }
 0x15d   : > { %1638 = vmatprep.mubr.f32.mxu1 %v5722_v49 }
 0x15e   : > { %4831 = vmatmul.mubr.f32.gmra.mrb[88].mxu0 %v9394_v43 }
 0x15f   : > { %4833 = vmatprep.mubr.f32.mxu0 %v9395_v28 }
 0x160   : > { %1639 = vmatmul.mubr.f32.gmra.mrb[104].mxu1 %v6559_v41 }
 0x161   : > { %1643 = vmatprep.mubr.f32.mxu1 %v5723_v0  ;;  %v5727_v0 = vld [vmem:[%s6154_s28 + $0x58] sm:$0xff] }
 0x162   : > { %4834 = vmatmul.mubr.f32.gmra.mrb[90].mxu0 %v9396_v40 }
 0x163   : > { %v6896_v60 = vpop.f32.mrb[0].mxu1  ;;  %4836 = vmatprep.mubr.f32.mxu0 %v9397_v6 }
 0x164   : > { %v896_v58 = vpop.f32.mrb[1].mxu1  ;;  %1644 = vmatmul.mubr.f32.gmra.mrb[106].mxu1 %v6580_v7 }
 0x165   : > { %1648 = vmatprep.mubr.f32.mxu1 %v5724_v16  ;;  %v5731_v16 = vld [vmem:[%s6154_s28 + $0x78] sm:$0xff] }
 0x166   : > { %4837 = vmatmul.mubr.f32.gmra.mrb[92].mxu0 %v6543_v51 }
 0x167   : > { %v6902_v57 = vpop.f32.mrb[2].mxu1  ;;  %4839 = vmatprep.mubr.f32.mxu0 %v6551_v4 }
 0x168   : > { %v6905_v41 = vpop.f32.mrb[3].mxu1  ;;  %1649 = vmatmul.mubr.f32.gmra.mrb[108].mxu1 %v6596_v59 }
 0x169   : > { %1653 = vmatprep.mubr.f32.mxu1 %v5725_v13 }
 0x16a   : > { %4840 = vmatmul.mubr.f32.gmra.mrb[94].mxu0 %v6566_v61 }
 0x16b   : > { %v6910_v48 = vpop.f32.mrb[4].mxu1  ;;  %4874 = vmatprep.mubr.f32.mxu0 %v6213_v8 }
 0x16c   : > { %v6913_v7 = vpop.f32.mrb[5].mxu1  ;;  %1654 = vmatmul.mubr.f32.gmra.mrb[110].mxu1 %v6608_v39 }
 0x16d   : > { %1658 = vmatprep.mubr.f32.mxu1 %v5726_v55  ;;  %v5732_v55 = vld [vmem:[%s6154_s28 + $0x80] sm:$0xff] }
 0x16e   : > { %4875 = vmatmul.mubr.f32.vlgmr.msra.gmra.mrb[96].mxu0 %v6229_v18  ;;  %v5728_v18 = vld [vmem:[%s6154_s28 + $0x60] sm:$0xff] }
 0x16f   : > { %v6918_v49 = vpop.f32.mrb[6].mxu1  ;;  %4877 = vmatprep.mubr.f32.mxu0 %v6236_v21 }
 0x170   : > { %v6921_v59 = vpop.f32.mrb[7].mxu1  ;;  %1659 = vmatmul.mubr.f32.gmra.mrb[112].mxu1 %v6620_v50 }
 0x171   : > { %1663 = vmatprep.mubr.f32.mxu1 %v5727_v0 }
 0x172   : > { %4878 = vmatmul.mubr.f32.gmra.mrb[98].mxu0 %v6252_v35  ;;  %v5729_v35 = vld [vmem:[%s6154_s28 + $0x68] sm:$0xff] }
 0x173   : > { %v6926_v8 = vpop.f32.mrb[8].mxu1  ;;  %4880 = vmatprep.mubr.f32.mxu0 %v9377_v45 }
 0x174   : > { %v6929_v39 = vpop.f32.mrb[9].mxu1  ;;  %1664 = vmatmul.mubr.f32.gmra.mrb[114].mxu1 %v6630_v37 }
 0x175   : > { %1668 = vmatprep.mubr.f32.mxu1 %v5728_v18 }
 0x176   : > { %4881 = vmatmul.mubr.f32.gmra.mrb[100].mxu0 %v9378_v31  ;;  %v5730_v31 = vld [vmem:[%s6154_s28 + $0x70] sm:$0xff] }
 0x177   : > { %v6934_v21 = vpop.f32.mrb[10].mxu1  ;;  %4883 = vmatprep.mubr.f32.mxu0 %v9379_v42 }
 0x178   : > { %v6937_v50 = vpop.f32.mrb[11].mxu1  ;;  %1669 = vmatmul.mubr.f32.gmra.mrb[116].mxu1 %v6641_v56 }
 0x179   : > { %1673 = vmatprep.mubr.f32.mxu1 %v5729_v35 }
 0x17a   : > { %4884 = vmatmul.mubr.f32.gmra.mrb[102].mxu0 %v9380_v15 }
 0x17b   : > { %v6942_v45 = vpop.f32.mrb[12].mxu1  ;;  %4886 = vmatprep.mubr.f32.mxu0 %v9381_v19 }
 0x17c   : > { %v6945_v37 = vpop.f32.mrb[13].mxu1  ;;  %1674 = vmatmul.mubr.f32.gmra.mrb[118].mxu1 %v6651_v33 }
 0x17d   : > { %1678 = vmatprep.mubr.f32.mxu1 %v5730_v31 }
 0x17e   : > { %4887 = vmatmul.mubr.f32.gmra.mrb[104].mxu0 %v9382_v62 }
 0x17f   : > { %v6950_v42 = vpop.f32.mrb[14].mxu1  ;;  %4889 = vmatprep.mubr.f32.mxu0 %v9383_v12 }
 0x180   : > { %v6953_v56 = vpop.f32.mrb[15].mxu1  ;;  %1679 = vmatmul.mubr.f32.gmra.mrb[120].mxu1 %v6662_v10 }
 0x181   : > { %v671_v15 = vpop.f32.mrb[0].mxu0  ;;  %1683 = vmatprep.mubr.f32.mxu1 %v5731_v16 }
 0x182   : > { %4890 = vmatmul.mubr.f32.gmra.mrb[106].mxu0 %v9384_v47  ;;  %v673_v19 = vpop.f32.mrb[1].mxu0  ;;  %v6958_v33 = vadd.f32 %v896_v58, %v671_v15 }
 0x183   : > { %v6960_v13 = vpop.f32.mrb[16].mxu1  ;;  %4892 = vmatprep.mubr.f32.mxu0 %v9385_v26 }
 0x184   : > { %v6963_v62 = vpop.f32.mrb[17].mxu1  ;;  %1684 = vmatmul.mubr.f32.gmra.mrb[122].mxu1 %v6672_v46  ;;  %v5733_v46 = vld [vmem:[%s6154_s28 + $0x88] sm:$0xff] }
 0x185   : > { %v676_v12 = vpop.f32.mrb[2].mxu0  ;;  %1688 = vmatprep.mubr.f32.mxu1 %v5732_v55 }
 0x186   : > { %4893 = vmatmul.mubr.f32.gmra.mrb[108].mxu0 %v9386_v2  ;;  %v678_v10 = vpop.f32.mrb[3].mxu0  ;;  %v6969_v47 = vadd.f32 %v6896_v60, %v676_v12 }
 0x187   : > { %v6971_v58 = vpop.f32.mrb[18].mxu1  ;;  %4895 = vmatprep.mubr.f32.mxu0 %v9387_v22 }
 0x188   : > { %v6974_v0 = vpop.f32.mrb[19].mxu1  ;;  %1689 = vmatmul.mubr.f32.gmra.mrb[124].mxu1 %v6683_v11  ;;  %v5734_v11 = vld [vmem:[%s6154_s28 + $0x90] sm:$0xff] }
 0x189   : > { %v681_v26 = vpop.f32.mrb[4].mxu0  ;;  %1693 = vmatprep.mubr.f32.mxu1 %v5733_v46 }
 0x18a   : > { %4896 = vmatmul.mubr.f32.gmra.mrb[110].mxu0 %v9388_v25  ;;  %v683_v18 = vpop.f32.mrb[5].mxu0  ;;  %v6980_v2 = vadd.f32 %v6905_v41, %v681_v26 }
 0x18b   : > { %v6982_v60 = vpop.f32.mrb[20].mxu1  ;;  %4898 = vmatprep.mubr.f32.mxu0 %v9389_v34 }
 0x18c   : > { %v6985_v35 = vpop.f32.mrb[21].mxu1  ;;  %1694 = vmatmul.mubr.f32.gmra.mrb[126].mxu1 %v6693_v32  ;;  %v5735_v32 = vld [vmem:[%s6154_s28 + $0x98] sm:$0xff] }
 0x18d   : > { %v686_v22 = vpop.f32.mrb[6].mxu0  ;;  %1698 = vmatprep.mubr.f32.mxu1 %v5734_v11  ;;  %v9398_v11 = vld [vmem:[#allocation33_spill] sm:$0xff] }
 0x18e   : > { %4899 = vmatmul.mubr.f32.gmra.mrb[112].mxu0 %v9390_v5  ;;  %v688_v31 = vpop.f32.mrb[7].mxu0  ;;  %v6991_v25 = vadd.f32 %v6902_v57, %v686_v22 }
 0x18f   : > { %v6993_v41 = vpop.f32.mrb[22].mxu1  ;;  %4901 = vmatprep.mubr.f32.mxu0 %v9391_v20 }
 0x190   : > { %v6996_v15 = vpop.f32.mrb[23].mxu1  ;;  %1699 = vmatmul.mubr.f32.gmra.mrb[128].mxu1 %v6704_v38  ;;  %v5736_v38 = vld [vmem:[%s6154_s28 + $0xa0] sm:$0xff] }
 0x191   : > { %v691_v34 = vpop.f32.mrb[8].mxu0  ;;  %1703 = vmatprep.mubr.f32.mxu1 %v5735_v32  ;;  %v5740_v32 = vld [vmem:[%s6154_s28 + $0xc0] sm:$0xff] }
 0x192   : > { %v693_v16 = vpop.f32.mrb[9].mxu0  ;;  %4902 = vmatmul.mubr.f32.gmra.mrb[114].mxu0 %v9392_v53  ;;  %v7002_v5 = vadd.f32 %v6913_v7, %v691_v34 }
 0x193   : > { %v7004_v57 = vpop.f32.mrb[24].mxu1  ;;  %4904 = vmatprep.mubr.f32.mxu0 %v9393_v3 }
 0x194   : > { %v7007_v19 = vpop.f32.mrb[25].mxu1  ;;  %1704 = vmatmul.mubr.f32.gmra.mrb[130].mxu1 %v6714_v24  ;;  %v5737_v24 = vld [vmem:[%s6154_s28 + $0xa8] sm:$0xff] }
 0x195   : > { %v696_v20 = vpop.f32.mrb[10].mxu0  ;;  %1708 = vmatprep.mubr.f32.mxu1 %v5736_v38 }
 0x196   : > { %v698_v12 = vpop.f32.mrb[11].mxu0  ;;  %4905 = vmatmul.mubr.f32.gmra.mrb[116].mxu0 %v9394_v43  ;;  %v7013_v53 = vadd.f32 %v6910_v48, %v696_v20  ;;  %v9399_v20 = vld [vmem:[#allocation34_spill] sm:$0xff] }
 0x197   : > { %v7015_v7 = vpop.f32.mrb[26].mxu1  ;;  %4907 = vmatprep.mubr.f32.mxu0 %v9395_v28 }
 0x198   : > { %v7018_v55 = vpop.f32.mrb[27].mxu1  ;;  %1709 = vmatmul.mubr.f32.gmra.mrb[132].mxu1 %v6725_v9  ;;  %v5738_v9 = vld [vmem:[%s6154_s28 + $0xb0] sm:$0xff] }
 0x199   : > { %v701_v3 = vpop.f32.mrb[12].mxu0  ;;  %1713 = vmatprep.mubr.f32.mxu1 %v5737_v24 }
 0x19a   : > { %v703_v10 = vpop.f32.mrb[13].mxu0  ;;  %4908 = vmatmul.mubr.f32.gmra.mrb[118].mxu0 %v9396_v40  ;;  %v7024_v43 = vadd.f32 %v6921_v59, %v701_v3  ;;  %v5741_v3 = vld [vmem:[%s6154_s28 + $0xc8] sm:$0xff] }
 0x19b   : > { %v7026_v48 = vpop.f32.mrb[28].mxu1  ;;  %4910 = vmatprep.mubr.f32.mxu0 %v9397_v6 }
 0x19c   : > { %v7029_v26 = vpop.f32.mrb[29].mxu1  ;;  %1714 = vmatmul.mubr.f32.gmra.mrb[134].mxu1 %v6735_v54  ;;  %v5739_v54 = vld [vmem:[%s6154_s28 + $0xb8] sm:$0xff] }
 0x19d   : > { %v706_v28 = vpop.f32.mrb[14].mxu0  ;;  %1718 = vmatprep.mubr.f32.mxu1 %v5738_v9  ;;  %v5742_v9 = vld [vmem:[%s6154_s28 + $0xd0] sm:$0xff] }
 0x19e   : > { %v708_v46 = vpop.f32.mrb[15].mxu0  ;;  %4911 = vmatmul.mubr.f32.gmra.mrb[120].mxu0 %v6543_v51  ;;  %v7035_v40 = vadd.f32 %v6918_v49, %v706_v28 }
 0x19f   : > { %v7037_v59 = vpop.f32.mrb[30].mxu1  ;;  %4913 = vmatprep.mubr.f32.mxu0 %v6551_v4 }
 0x1a0   : > { %v7040_v18 = vpop.f32.mrb[31].mxu1  ;;  %1719 = vmatmul.mubr.f32.gmra.mrb[136].mxu1 %v6746_v17 }
 0x1a1   : > { %v711_v6 = vpop.f32.mrb[16].mxu0  ;;  %1723 = vmatprep.mubr.f32.mxu1 %v5739_v54  ;;  %v5743_v54 = vld [vmem:[%s6154_s28 + $0xd8] sm:$0xff] }
 0x1a2   : > { %v713_v22 = vpop.f32.mrb[17].mxu0  ;;  %4914 = vmatmul.mubr.f32.gmra.mrb[122].mxu0 %v6566_v61  ;;  %v7046_v51 = vadd.f32 %v6929_v39, %v711_v6 }
 0x1a3   : > { %v1121_v49 = vpop.f32.mrb[32].mxu1  ;;  %4916 = vmatprep.mubr.f32.mxu0 %v9398_v11 }
 0x1a4   : > { %v7050_v31 = vadd.f32 %v1121_v49, %v6958_v33  ;;  %v1123_v34 = vpop.f32.mrb[33].mxu1  ;;  %1724 = vmatmul.mubr.f32.gmra.mrb[138].mxu1 %v6756_v1 }
 0x1a5   : > { %v716_v17 = vpop.f32.mrb[18].mxu0  ;;  %1728 = vmatprep.mubr.f32.mxu1 %v5740_v32  ;;  %v5744_v34 = vld [vmem:[%s6154_s28 + $0xe0] sm:$0xff] }
 0x1a6   : > { %v718_v16 = vpop.f32.mrb[19].mxu0  ;;  %4917 = vmatmul.mubr.f32.gmra.mrb[124].mxu0 %v9399_v20  ;;  %v7056_v38 = vadd.f32 %v6926_v8, %v716_v17  ;;  %v5745_v20 = vld [vmem:[%s6154_s28 + $0xe8] sm:$0xff] }
 0x1a7   : > { %v1126_v39 = vpop.f32.mrb[34].mxu1  ;;  %4919 = vmatprep.mubr.f32.mxu0 %v6551_v4 }
 0x1a8   : > { %v7060_v12 = vadd.f32 %v1126_v39, %v6969_v47  ;;  %v1128_v33 = vpop.f32.mrb[35].mxu1  ;;  %1729 = vmatmul.mubr.f32.gmra.mrb[140].mxu1 %v6767_v44 }
 0x1a9   : > { %v721_v1 = vpop.f32.mrb[20].mxu0  ;;  %1733 = vmatprep.mubr.f32.mxu1 %v5741_v3 }
 0x1aa   : > { %v723_v24 = vpop.f32.mrb[21].mxu0  ;;  %4920 = vmatmul.mubr.f32.gmra.mrb[126].mxu0 %v6566_v61  ;;  %v7066_v8 = vadd.f32 %v6937_v50, %v721_v1 }
 0x1ab   : > { %v1131_v10 = vpop.f32.mrb[36].mxu1 }
 0x1ac   : > { %v7069_v28 = vadd.f32 %v1131_v10, %v6980_v2  ;;  %v1133_v4 = vpop.f32.mrb[37].mxu1  ;;  %1734 = vmatmul.mubr.f32.gmra.mrb[142].mxu1 %v6776_v63 }
 0x1ad   : > { %v726_v47 = vpop.f32.mrb[22].mxu0  ;;  %1738 = vmatprep.mubr.f32.mxu1 %v5742_v9 }
 0x1ae   : > { %v728_v44 = vpop.f32.mrb[23].mxu0  ;;  %v7074_v46 = vadd.f32 %v6934_v21, %v726_v47 }
 0x1af   : > { %v1136_v61 = vpop.f32.mrb[38].mxu1  ;;  %v5747_v44 = vld [vmem:[%s6154_s28 + $0xf8] sm:$0xff] }
 0x1b0   : > { %v7077_v6 = vadd.f32 %v1136_v61, %v6991_v25  ;;  %v1138_v50 = vpop.f32.mrb[39].mxu1  ;;  %1739 = vmatmul.mubr.f32.gmra.mrb[144].mxu1 %v6786_v30 }
 0x1b1   : > { %v731_v2 = vpop.f32.mrb[24].mxu0  ;;  %1743 = vmatprep.mubr.f32.mxu1 %v5743_v54 }
 0x1b2   : > { %v733_v22 = vpop.f32.mrb[25].mxu0  ;;  %v7082_v63 = vadd.f32 %v6945_v37, %v731_v2 }
 0x1b3   : > { %v1141_v49 = vpop.f32.mrb[40].mxu1 }
 0x1b4   : > { %v7085_v11 = vadd.f32 %v1141_v49, %v7002_v5  ;;  %v1143_v21 = vpop.f32.mrb[41].mxu1  ;;  %1744 = vmatmul.mubr.f32.gmra.mrb[146].mxu1 %v6795_v23 }
 0x1b5   : > { %v736_v25 = vpop.f32.mrb[26].mxu0  ;;  %1748 = vmatprep.mubr.f32.mxu1 %v5744_v34 }
 0x1b6   : > { %v738_v17 = vpop.f32.mrb[27].mxu0  ;;  %v7090_v30 = vadd.f32 %v6942_v45, %v736_v25 }
 0x1b7   : > { %v1146_v32 = vpop.f32.mrb[42].mxu1 }
 0x1b8   : > { %v7093_v16 = vadd.f32 %v1146_v32, %v7013_v53  ;;  %v1148_v37 = vpop.f32.mrb[43].mxu1  ;;  %1749 = vmatmul.mubr.f32.gmra.mrb[148].mxu1 %v6805_v14  ;;  %v5746_v53 = vld [vmem:[%s6154_s28 + $0xf0] sm:$0xff] }
 0x1b9   : > { %v741_v5 = vpop.f32.mrb[28].mxu0  ;;  %1753 = vmatprep.mubr.f32.mxu1 %v5745_v20 }
 0x1ba   : > { %v743_v39 = vpop.f32.mrb[29].mxu0  ;;  %v967_v23 = vadd.f32 %v6953_v56, %v741_v5 }
 0x1bb   : > { %v1151_v33 = vpop.f32.mrb[44].mxu1 }
 0x1bc   : > { %v7099_v1 = vadd.f32 %v1151_v33, %v7024_v43  ;;  %v1153_v45 = vpop.f32.mrb[45].mxu1  ;;  %1754 = vmatmul.mubr.f32.gmra.mrb[150].mxu1 %v6814_v52 }
 0x1bd   : > { %v746_v3 = vpop.f32.mrb[30].mxu0  ;;  %1758 = vmatprep.mubr.f32.mxu1 %v5746_v53 }
 0x1be   : > { %v748_v24 = vpop.f32.mrb[31].mxu0  ;;  %v972_v10 = vadd.f32 %v6950_v42, %v746_v3 }
 0x1bf   : > { %v1156_v4 = vpop.f32.mrb[46].mxu1 }
 0x1c0   : > { %v7105_v47 = vadd.f32 %v1156_v4, %v7035_v40  ;;  %v1158_v9 = vpop.f32.mrb[47].mxu1  ;;  %1759 = vmatmul.mubr.f32.gmra.mrb[152].mxu1 %v6824_v29 }
 0x1c1   : > { %v751_v56 = vpop.f32.mrb[32].mxu0  ;;  %1763 = vmatprep.mubr.f32.mxu1 %v5747_v44 }
 0x1c2   : > { %v977_v43 = vadd.f32 %v6963_v62, %v751_v56  ;;  %v753_v61 = vpop.f32.mrb[33].mxu0 }
 0x1c3   : > { %v1161_v50 = vpop.f32.mrb[48].mxu1 }
 0x1c4   : > { %v7111_v2 = vadd.f32 %v1161_v50, %v7046_v51  ;;  %v1163_v54 = vpop.f32.mrb[49].mxu1  ;;  %1764 = vmatmul.mubr.f32.gmra.mrb[154].mxu1 %v6833_v36 }
 0x1c5   : > { %v756_v42 = vpop.f32.mrb[34].mxu0  ;;  %1768 = vmatprep.mubr.f32.mxu1 %v5744_v34 }
 0x1c6   : > { %v982_v40 = vadd.f32 %v6960_v13, %v756_v42  ;;  %v758_v22 = vpop.f32.mrb[35].mxu0 }
 0x1c7   : > { %v1166_v49 = vpop.f32.mrb[50].mxu1 }
 0x1c8   : > { %v7116_v29 = vadd.f32 %v1166_v49, %v7056_v38  ;;  %v1168_v21 = vpop.f32.mrb[51].mxu1  ;;  %1769 = vmatmul.mubr.f32.gmra.mrb[156].mxu1 %v6805_v14 }
 0x1c9   : > { %v761_v62 = vpop.f32.mrb[36].mxu0  ;;  %1773 = vmatprep.mubr.f32.mxu1 %v5745_v20 }
 0x1ca   : > { %v987_v51 = vadd.f32 %v6974_v0, %v761_v62  ;;  %v763_v25 = vpop.f32.mrb[37].mxu0 }
 0x1cb   : > { %v1171_v17 = vpop.f32.mrb[52].mxu1 }
 0x1cc   : > { %v7121_v36 = vadd.f32 %v1171_v17, %v7066_v8  ;;  %v1173_v34 = vpop.f32.mrb[53].mxu1  ;;  %1774 = vmatmul.mubr.f32.gmra.mrb[158].mxu1 %v6814_v52 }
 0x1cd   : > { %v766_v13 = vpop.f32.mrb[38].mxu0 }
 0x1ce   : > { %v992_v32 = vadd.f32 %v6971_v58, %v766_v13  ;;  %v768_v38 = vpop.f32.mrb[39].mxu0 }
 0x1cf   : > { %v1176_v37 = vpop.f32.mrb[54].mxu1 }
 0x1d0   : > { %v7126_v5 = vadd.f32 %v1176_v37, %v7074_v46  ;;  %v1178_v14 = vpop.f32.mrb[55].mxu1 }
 0x1d1   : > { %v771_v20 = vpop.f32.mrb[40].mxu0 }
 0x1d2   : > { %v997_v0 = vadd.f32 %v6985_v35, %v771_v20  ;;  %v773_v39 = vpop.f32.mrb[41].mxu0 }
 0x1d3   : > { %v1181_v33 = vpop.f32.mrb[56].mxu1 }
 0x1d4   : > { %v7130_v8 = vadd.f32 %v1181_v33, %v7082_v63  ;;  %v1183_v45 = vpop.f32.mrb[57].mxu1 }
 0x1d5   : > { %v776_v3 = vpop.f32.mrb[42].mxu0 }
 0x1d6   : > { %v1002_v52 = vadd.f32 %v6982_v60, %v776_v3  ;;  %v778_v53 = vpop.f32.mrb[43].mxu0 }
 0x1d7   : > { %v1186_v58 = vpop.f32.mrb[58].mxu1 }
 0x1d8   : > { %v7134_v24 = vadd.f32 %v1186_v58, %v7090_v30  ;;  %v1188_v46 = vpop.f32.mrb[59].mxu1 }
 0x1d9   : > { %v781_v4 = vpop.f32.mrb[44].mxu0 }
 0x1da   : > { %v1007_v9 = vadd.f32 %v6996_v15, %v781_v4  ;;  %v783_v56 = vpop.f32.mrb[45].mxu0 }
 0x1db   : > { %v1191_v35 = vpop.f32.mrb[60].mxu1 }
 0x1dc   : > { %v7137_v44 = vadd.f32 %v1191_v35, %v967_v23  ;;  %v1193_v61 = vpop.f32.mrb[61].mxu1 }
 0x1dd   : > { %v786_v63 = vpop.f32.mrb[46].mxu0 }
 0x1de   : > { %v1012_v50 = vadd.f32 %v6993_v41, %v786_v63  ;;  %v788_v54 = vpop.f32.mrb[47].mxu0 }
 0x1df   : > { %v1196_v42 = vpop.f32.mrb[62].mxu1 }
 0x1e0   : > { %v7140_v60 = vadd.f32 %v1196_v42, %v972_v10  ;;  %v1198_v22 = vpop.f32.mrb[63].mxu1 }
 0x1e1   : > { %v791_v49 = vpop.f32.mrb[48].mxu0 }
 0x1e2   : > { %v1017_v30 = vadd.f32 %v7007_v19, %v791_v49  ;;  %v793_v21 = vpop.f32.mrb[49].mxu0 }
 0x1e3   : > { %v1201_v62 = vpop.f32.mrb[64].mxu1 }
 0x1e4   : > { %v7143_v25 = vadd.f32 %v1201_v62, %v977_v43  ;;  %v1203_v15 = vpop.f32.mrb[65].mxu1 }
 0x1e5   : > { %v796_v17 = vpop.f32.mrb[50].mxu0 }
 0x1e6   : > { %v1022_v23 = vadd.f32 %v7004_v57, %v796_v17  ;;  %v798_v34 = vpop.f32.mrb[51].mxu0 }
 0x1e7   : > { %v1206_v13 = vpop.f32.mrb[66].mxu1 }
 0x1e8   : > { %v7146_v38 = vadd.f32 %v1206_v13, %v982_v40  ;;  %v1208_v41 = vpop.f32.mrb[67].mxu1 }
 0x1e9   : > { %v801_v37 = vpop.f32.mrb[52].mxu0 }
 0x1ea   : > { %v1027_v10 = vadd.f32 %v7018_v55, %v801_v37  ;;  %v803_v14 = vpop.f32.mrb[53].mxu0 }
 0x1eb   : > { %v1211_v20 = vpop.f32.mrb[68].mxu1 }
 0x1ec   : > { %v7149_v39 = vadd.f32 %v1211_v20, %v987_v51  ;;  %v1213_v19 = vpop.f32.mrb[69].mxu1 }
 0x1ed   : > { %v806_v33 = vpop.f32.mrb[54].mxu0 }
 0x1ee   : > { %v7152_v43 = vadd.f32 %v7015_v7, %v806_v33  ;;  %v808_v45 = vpop.f32.mrb[55].mxu0 }
 0x1ef   : > { %v1216_v3 = vpop.f32.mrb[70].mxu1 }
 0x1f0   : > { %v7154_v57 = vadd.f32 %v1216_v3, %v992_v32  ;;  %v1218_v53 = vpop.f32.mrb[71].mxu1 }
 0x1f1   : > { %v811_v40 = vpop.f32.mrb[56].mxu0 }
 0x1f2   : > { %v7157_v58 = vadd.f32 %v7029_v26, %v811_v40  ;;  %v813_v46 = vpop.f32.mrb[57].mxu0  ;;  %v2550_v40 = vld [vmem:[#allocation7 + $0x188] sm:$0xff] }
 0x1f3   : > { %v1221_v55 = vpop.f32.mrb[72].mxu1 }
 0x1f4   : > { %v7159_v4 = vadd.f32 %v1221_v55, %v997_v0  ;;  %v1223_v51 = vpop.f32.mrb[73].mxu1 }
 0x1f5   : > { %v816_v56 = vpop.f32.mrb[58].mxu0 }
 0x1f6   : > { %v7162_v35 = vadd.f32 %v7026_v48, %v816_v56  ;;  %v818_v7 = vpop.f32.mrb[59].mxu0 }
 0x1f7   : > { %v1226_v61 = vpop.f32.mrb[74].mxu1 }
 0x1f8   : > { %v7164_v63 = vadd.f32 %v1226_v61, %v1002_v52  ;;  %v1228_v32 = vpop.f32.mrb[75].mxu1  ;;  %v2581_v61 = vld [vmem:[#allocation7 + $0x280] sm:$0xff] }
 0x1f9   : > { %v821_v54 = vpop.f32.mrb[60].mxu0  ;;  %v2551_v32 = vld [vmem:[#allocation7 + $0x190] sm:$0xff] }
 0x1fa   : > { %v7167_v42 = vadd.f32 %v7040_v18, %v821_v54  ;;  %v823_v26 = vpop.f32.mrb[61].mxu0 }
 0x1fb   : > { %v1231_v22 = vpop.f32.mrb[76].mxu1 }
 0x1fc   : > { %v7169_v49 = vadd.f32 %v1231_v22, %v1007_v9  ;;  %v1233_v0 = vpop.f32.mrb[77].mxu1  ;;  %v2552_v22 = vld [vmem:[#allocation7 + $0x198] sm:$0xff] }
 0x1fd   : > { %v826_v21 = vpop.f32.mrb[62].mxu0 }
 0x1fe   : > { %v7172_v62 = vadd.f32 %v7037_v59, %v826_v21  ;;  %v828_v48 = vpop.f32.mrb[63].mxu0  ;;  %v5406_v21 = vpack.c.bf16 %v2552_v22, %v2551_v32 }
 0x1ff   : > { %v1236_v15 = vpop.f32.mrb[78].mxu1 }
 0x200   : > { %v7174_v17 = vadd.f32 %v1236_v15, %v1012_v50  ;;  %v1238_v52 = vpop.f32.mrb[79].mxu1 }
 0x201   : > { %v4796_v34 = vpop.f32.mrb[64].mxu0  ;;  %v2553_v52 = vld [vmem:[#allocation7 + $0x1a0] sm:$0xff] }
 0x202   : > { %v7177_v13 = vadd.f32 %v4796_v34, %v7060_v12  ;;  %v1346_v18 = vpop.f32.mrb[65].mxu0  ;;  %v2554_v34 = vld [vmem:[#allocation7 + $0x1a8] sm:$0xff] }
 0x203   : > { %v1241_v41 = vpop.f32.mrb[80].mxu1  ;;  %v7180_v37 = vadd.f32 %v1346_v18, %v7050_v31 }
 0x204   : > { %v7182_v9 = vadd.f32 %v1241_v41, %v1017_v30  ;;  %v1243_v14 = vpop.f32.mrb[81].mxu1  ;;  %v2549_v30 = vld [vmem:[#allocation7 + $0x180] sm:$0xff] }
 0x205   : > { %v4799_v20 = vpop.f32.mrb[66].mxu0 }
 0x206   : > { %v7185_v59 = vadd.f32 %v4799_v20, %v7077_v6  ;;  %v1356_v19 = vpop.f32.mrb[67].mxu0  ;;  %v5403_v6 = vpack.c.bf16 %v2550_v40, %v2549_v30 }
 0x207   : > { %v1246_v50 = vpop.f32.mrb[82].mxu1  ;;  %v7188_v33 = vadd.f32 %v1356_v19, %v7069_v28 }
 0x208   : > { %v7190_v45 = vadd.f32 %v1246_v50, %v1022_v23  ;;  %v1248_v12 = vpop.f32.mrb[83].mxu1  ;;  %5404 = vmatpush1.bf16.msra.mxu0 %v5403_v6  ;;  %v2555_v50 = vld [vmem:[#allocation7 + $0x1b0] sm:$0xff]  ;;  %v2557_v6 = vld [vmem:[#allocation7 + $0x1c0] sm:$0xff] }
 0x209   : > { %v4802_v3 = vpop.f32.mrb[68].mxu0  ;;  %5405 = vmatprep.subr.bf16.mxu0 %v9332_v27  ;;  %v2556_v12 = vld [vmem:[#allocation7 + $0x1b8] sm:$0xff] }
 0x20a   : > { %v7193_v53 = vadd.f32 %v4802_v3, %v7093_v16  ;;  %v1366_v31 = vpop.f32.mrb[69].mxu0  ;;  %v2582_v16 = vld [vmem:[#allocation7 + $0x288] sm:$0xff] }
 0x20b   : > { %v1251_v46 = vpop.f32.mrb[84].mxu1  ;;  %v7196_v55 = vadd.f32 %v1366_v31, %v7085_v11  ;;  %v5450_v11 = vpack.c.bf16 %v2582_v16, %v2581_v61 }
 0x20c   : > { %v7198_v51 = vadd.f32 %v1251_v46, %v1027_v10  ;;  %v1253_v56 = vpop.f32.mrb[85].mxu1  ;;  %5407 = vmatpush1.bf16.msra.mxu0 %v5406_v21 }
 0x20d   : > { %v4805_v28 = vpop.f32.mrb[70].mxu0  ;;  %5451 = vmatprep.subr.bf16.mxu1 %v5450_v11  ;;  %5408 = vmatprep.subr.bf16.mxu0 %v9332_v27  ;;  %v2558_v56 = vld [vmem:[#allocation7 + $0x1c8] sm:$0xff] }
 0x20e   : > { %v7201_v23 = vadd.f32 %v4805_v28, %v7105_v47  ;;  %v1376_v7 = vpop.f32.mrb[71].mxu0  ;;  %5453 = vmatpush3.bf16.msra.mxu1 %v5450_v11  ;;  %v2584_v11 = vld [vmem:[#allocation7 + $0x298] sm:$0xff] }
 0x20f   : > { %v1256_v54 = vpop.f32.mrb[86].mxu1  ;;  %v7205_v26 = vadd.f32 %v1376_v7, %v7099_v1 }
 0x210   : > { %v7208_v10 = vadd.f32 %v1256_v54, %v7152_v43  ;;  %v1258_v0 = vpop.f32.mrb[87].mxu1  ;;  %v5409_v43 = vpack.c.bf16 %v2554_v34, %v2553_v52  ;;  %v2583_v54 = vld [vmem:[#allocation7 + $0x290] sm:$0xff] }
 0x211   : > { %v4808_v48 = vpop.f32.mrb[72].mxu0 }
 0x212   : > { %v7211_v47 = vadd.f32 %v4808_v48, %v7116_v29  ;;  %v1386_v15 = vpop.f32.mrb[73].mxu0  ;;  %5410 = vmatpush1.bf16.msra.mxu0 %v5409_v43 }
 0x213   : > { %v1261_v18 = vpop.f32.mrb[88].mxu1  ;;  %v7214_v1 = vadd.f32 %v1386_v15, %v7111_v2  ;;  %5411 = vmatprep.subr.bf16.mxu0 %v9332_v27  ;;  %v5412_v2 = vpack.c.bf16 %v2556_v12, %v2555_v50 }
 0x214   : > { %v7218_v41 = vadd.f32 %v1261_v18, %v7157_v58  ;;  %v1263_v14 = vpop.f32.mrb[89].mxu1 }
 0x215   : > { %v4811_v20 = vpop.f32.mrb[74].mxu0 }
 0x216   : > { %v7221_v29 = vadd.f32 %v4811_v20, %v7126_v5  ;;  %v1396_v19 = vpop.f32.mrb[75].mxu0  ;;  %5413 = vmatpush1.bf16.msra.mxu0 %v5412_v2  ;;  %v2559_v2 = vld [vmem:[#allocation7 + $0x1d0] sm:$0xff] }
 0x217   : > { %v1266_v3 = vpop.f32.mrb[90].mxu1  ;;  %v7224_v31 = vadd.f32 %v1396_v19, %v7121_v36  ;;  %5414 = vmatprep.subr.bf16.mxu0 %v9332_v27  ;;  %v5415_v36 = vpack.c.bf16 %v2558_v56, %v2557_v6 }
 0x218   : > { %v7228_v30 = vadd.f32 %v1266_v3, %v7162_v35  ;;  %v1268_v58 = vpop.f32.mrb[91].mxu1 }
 0x219   : > { %v4814_v40 = vpop.f32.mrb[76].mxu0 }
 0x21a   : > { %v7231_v46 = vadd.f32 %v4814_v40, %v7134_v24  ;;  %v1406_v5 = vpop.f32.mrb[77].mxu0  ;;  %5416 = vmatpush1.bf16.msra.mxu0 %v5415_v36 }
 0x21b   : > { %v1271_v28 = vpop.f32.mrb[92].mxu1  ;;  %v7234_v7 = vadd.f32 %v1406_v5, %v7130_v8  ;;  %v5454_v8 = vpack.c.bf16 %v2584_v11, %v2583_v54  ;;  %5417 = vmatprep.subr.bf16.mxu0 %v9332_v27 }
 0x21c   : > { %v7238_v61 = vadd.f32 %v1271_v28, %v7167_v42  ;;  %v1273_v35 = vpop.f32.mrb[93].mxu1  ;;  %v2562_v28 = vld [vmem:[#allocation7 + $0x1e8] sm:$0xff] }
 0x21d   : > { %v4817_v16 = vpop.f32.mrb[78].mxu0  ;;  %5455 = vmatprep.subr.bf16.mxu1 %v5454_v8 }
 0x21e   : > { %v7241_v32 = vadd.f32 %v4817_v16, %v7140_v60  ;;  %v1416_v24 = vpop.f32.mrb[79].mxu0  ;;  %5457 = vmatpush3.bf16.msra.mxu1 %v5454_v8 }
 0x21f   : > { %v1276_v22 = vpop.f32.mrb[94].mxu1  ;;  %v7244_v0 = vadd.f32 %v1416_v24, %v7137_v44 }
 0x220   : > { %v7248_v21 = vadd.f32 %v1276_v22, %v7172_v62  ;;  %v1278_v42 = vpop.f32.mrb[95].mxu1  ;;  %v2564_v22 = vld [vmem:[#allocation7 + $0x1f8] sm:$0xff] }
 0x221   : > { %v4820_v48 = vpop.f32.mrb[80].mxu0 }
 0x222   : > { %v7251_v60 = vadd.f32 %v4820_v48, %v7146_v38  ;;  %v1426_v15 = vpop.f32.mrb[81].mxu0 }
 0x223   : > { %v7254_v52 = vadd.f32 %v1426_v15, %v7143_v25  ;;  %v7256_v34 = vpop.f32.mrb[96].mxu1 }
 0x224   : > { %v1622_v44 = vpop.f32.mrb[97].mxu1 }
 0x225   : > { %v4823_v18 = vpop.f32.mrb[82].mxu0 }
 0x226   : > { %v7259_v43 = vadd.f32 %v4823_v18, %v7154_v57  ;;  %v1436_v62 = vpop.f32.mrb[83].mxu0  ;;  %v2560_v57 = vld [vmem:[#allocation7 + $0x1d8] sm:$0xff] }
 0x227   : > { %v7262_v14 = vadd.f32 %v1436_v62, %v7149_v39  ;;  %v7264_v20 = vpop.f32.mrb[98].mxu1  ;;  %v5418_v40 = vpack.c.bf16 %v2560_v57, %v2559_v2  ;;  %v2566_v62 = vld [vmem:[#allocation7 + $0x208] sm:$0xff] }
 0x228   : > { %v1627_v38 = vpop.f32.mrb[99].mxu1 }
 0x229   : > { %v4826_v19 = vpop.f32.mrb[84].mxu0  ;;  %5419 = vmatpush1.bf16.msra.mxu0 %v5418_v40  ;;  %v2568_v40 = vld [vmem:[#allocation7 + $0x218] sm:$0xff] }
 0x22a   : > { %v7267_v50 = vadd.f32 %v4826_v19, %v7164_v63  ;;  %v1446_v25 = vpop.f32.mrb[85].mxu0  ;;  %5420 = vmatprep.subr.bf16.mxu0 %v9332_v27 }
 0x22b   : > { %v7270_v12 = vadd.f32 %v1446_v25, %v7159_v4  ;;  %v7272_v3 = vpop.f32.mrb[100].mxu1  ;;  %v2561_v4 = vld [vmem:[#allocation7 + $0x1e0] sm:$0xff] }
 0x22c   : > { %v1632_v58 = vpop.f32.mrb[101].mxu1  ;;  %v5421_v35 = vpack.c.bf16 %v2562_v28, %v2561_v4 }
 0x22d   : > { %v4829_v5 = vpop.f32.mrb[86].mxu0 }
 0x22e   : > { %v7275_v39 = vadd.f32 %v4829_v5, %v7174_v17  ;;  %v1456_v6 = vpop.f32.mrb[87].mxu0  ;;  %5422 = vmatpush1.bf16.msra.mxu0 %v5421_v35 }
 0x22f   : > { %v7278_v56 = vadd.f32 %v1456_v6, %v7169_v49  ;;  %v7280_v63 = vpop.f32.mrb[102].mxu1  ;;  %5423 = vmatprep.subr.bf16.mxu0 %v9332_v27  ;;  %v2563_v49 = vld [vmem:[#allocation7 + $0x1f0] sm:$0xff] }
 0x230   : > { %v1637_v36 = vpop.f32.mrb[103].mxu1  ;;  %v5424_v42 = vpack.c.bf16 %v2564_v22, %v2563_v49 }
 0x231   : > { %v4832_v16 = vpop.f32.mrb[88].mxu0 }
 0x232   : > { %v7284_v24 = vadd.f32 %v4832_v16, %v7190_v45  ;;  %v1466_v54 = vpop.f32.mrb[89].mxu0  ;;  %5425 = vmatpush1.bf16.msra.mxu0 %v5424_v42  ;;  %v2586_v16 = vld [vmem:[#allocation7 + $0x2a8] sm:$0xff] }
 0x233   : > { %v7287_v17 = vadd.f32 %v1466_v54, %v7182_v9  ;;  %v7289_v11 = vpop.f32.mrb[104].mxu1  ;;  %5426 = vmatprep.subr.bf16.mxu0 %v9332_v27  ;;  %v2565_v9 = vld [vmem:[#allocation7 + $0x200] sm:$0xff] }
 0x234   : > { %v1642_v8 = vpop.f32.mrb[105].mxu1  ;;  %v5427_v19 = vpack.c.bf16 %v2566_v62, %v2565_v9  ;;  %v2569_v54 = vld [vmem:[#allocation7 + $0x220] sm:$0xff]  ;;  %v2571_v62 = vld [vmem:[#allocation7 + $0x230] sm:$0xff] }
 0x235   : > { %v4835_v48 = vpop.f32.mrb[90].mxu0  ;;  %v2570_v8 = vld [vmem:[#allocation7 + $0x228] sm:$0xff] }
 0x236   : > { %v7293_v15 = vadd.f32 %v4835_v48, %v7208_v10  ;;  %v1476_v44 = vpop.f32.mrb[91].mxu0  ;;  %5428 = vmatpush1.bf16.msra.mxu0 %v5427_v19  ;;  %v5433_v48 = vpack.c.bf16 %v2570_v8, %v2569_v54  ;;  %v2587_v19 = vld [vmem:[#allocation7 + $0x2b0] sm:$0xff]  ;;  %v2573_v54 = vld [vmem:[#allocation7 + $0x240] sm:$0xff] }
 0x237   : > { %v7296_v45 = vadd.f32 %v1476_v44, %v7198_v51  ;;  %v7298_v18 = vpop.f32.mrb[106].mxu1  ;;  %5429 = vmatprep.subr.bf16.mxu0 %v9332_v27  ;;  %v2567_v51 = vld [vmem:[#allocation7 + $0x210] sm:$0xff] }
 0x238   : > { %v1647_v38 = vpop.f32.mrb[107].mxu1  ;;  %v5430_v6 = vpack.c.bf16 %v2568_v40, %v2567_v51  ;;  %v2588_v40 = vld [vmem:[#allocation7 + $0x2b8] sm:$0xff] }
 0x239   : > { %v4838_v25 = vpop.f32.mrb[92].mxu0  ;;  %v2572_v38 = vld [vmem:[#allocation7 + $0x238] sm:$0xff] }
 0x23a   : > { %v7302_v2 = vadd.f32 %v4838_v25, %v7228_v30  ;;  %v1486_v57 = vpop.f32.mrb[93].mxu0  ;;  %5431 = vmatpush1.bf16.msra.mxu0 %v5430_v6  ;;  %v5436_v51 = vpack.c.bf16 %v2572_v38, %v2571_v62  ;;  %v5462_v6 = vpack.c.bf16 %v2588_v40, %v2587_v19  ;;  %v2575_v40 = vld [vmem:[#allocation7 + $0x250] sm:$0xff] }
 0x23b   : > { %v7305_v10 = vadd.f32 %v1486_v57, %v7218_v41  ;;  %v7307_v58 = vpop.f32.mrb[108].mxu1  ;;  %v2585_v41 = vld [vmem:[#allocation7 + $0x2a0] sm:$0xff]  ;;  %5432 = vmatprep.subr.bf16.mxu0 %v9332_v27 }
 0x23c   : > { %v1652_v5 = vpop.f32.mrb[109].mxu1  ;;  %v5458_v22 = vpack.c.bf16 %v2586_v16, %v2585_v41 }
 0x23d   : > { %v4841_v4 = vpop.f32.mrb[94].mxu0 }
 0x23e   : > { %v7311_v28 = vadd.f32 %v4841_v4, %v7248_v21  ;;  %v1496_v36 = vpop.f32.mrb[95].mxu0  ;;  %5459 = vmatprep.subr.bf16.mxu1 %v5458_v22  ;;  %5434 = vmatpush1.bf16.msra.mxu0 %v5433_v48 }
 0x23f   : > { %v7314_v30 = vadd.f32 %v1496_v36, %v7238_v61  ;;  %v7316_v35 = vpop.f32.mrb[110].mxu1  ;;  %5461 = vmatpush3.bf16.msra.mxu1 %v5458_v22  ;;  %5435 = vmatprep.subr.bf16.mxu0 %v9332_v27 }
 0x240   : > { %v1657_v49 = vpop.f32.mrb[111].mxu1  ;;  %5463 = vmatprep.subr.bf16.mxu1 %v5462_v6 }
 0x241   : > { %v4876_v42 = vpop.f32.mrb[96].mxu0  ;;  %v2589_v49 = vld [vmem:[#allocation7 + $0x2c0] sm:$0xff] }
 0x242   : > { %v1851_v21 = vadd.f32 %v4876_v42, %v7264_v20  ;;  %v1845_v44 = vpop.f32.mrb[97].mxu0  ;;  %5437 = vmatpush1.bf16.msra.mxu0 %v5436_v51  ;;  %v2590_v42 = vld [vmem:[#allocation7 + $0x2c8] sm:$0xff] }
 0x243   : > { %v7320_v9 = vpop.f32.mrb[112].mxu1  ;;  %v1846_v61 = vadd.f32 %v1845_v44, %v7256_v34  ;;  %5465 = vmatpush3.bf16.msra.mxu1 %v5462_v6  ;;  %5438 = vmatprep.subr.bf16.mxu0 %v9332_v27  ;;  %v5466_v44 = vpack.c.bf16 %v2590_v42, %v2589_v49 }
 0x244   : > { %v7324_v25 = vadd.f32 %v1851_v21, %v7177_v13  ;;  %v1662_v57 = vpop.f32.mrb[113].mxu1 }
 0x245   : > { %v7328_v20 = vadd.f32 %v1846_v61, %v7180_v37  ;;  %v4879_v5 = vpop.f32.mrb[98].mxu0  ;;  %v2574_v37 = vld [vmem:[#allocation7 + $0x248] sm:$0xff]  ;;  %5467 = vmatprep.subr.bf16.mxu1 %v5466_v44 }
 0x246   : > { %v2074_v34 = vmul.f32 %v7324_v25, %v7324_v25  ;;  %v1861_v4 = vadd.f32 %v4879_v5, %v7280_v63  ;;  %v1855_v36 = vpop.f32.mrb[99].mxu0  ;;  %v5439_v63 = vpack.c.bf16 %v2574_v37, %v2573_v54  ;;  %v2591_v5 = vld [vmem:[#allocation7 + $0x2d0] sm:$0xff] }
 0x247   : > { %v2073_v13 = vmul.f32 %v7328_v20, %v7328_v20  ;;  %v7335_v41 = vpop.f32.mrb[114].mxu1  ;;  %v1856_v16 = vadd.f32 %v1855_v36, %v7272_v3  ;;  %v2036_v48 = vadd.f32 %v7324_v25, %v7328_v20  ;;  %5469 = vmatpush3.bf16.msra.mxu1 %v5466_v44  ;;  %v2592_v36 = vld [vmem:[#allocation7 + $0x2d8] sm:$0xff]  ;;  %v2577_v44 = vld [vmem:[#allocation7 + $0x260] sm:$0xff] }
 0x248   : > { %v7339_v22 = vadd.f32 %v1861_v4, %v7185_v59  ;;  %v1667_v8 = vpop.f32.mrb[115].mxu1  ;;  %5440 = vmatpush1.bf16.msra.mxu0 %v5439_v63  ;;  %v5470_v37 = vpack.c.bf16 %v2592_v36, %v2591_v5 }
 0x249   : > { %v7345_v21 = vadd.f32 %v1856_v16, %v7188_v33  ;;  %v4882_v3 = vpop.f32.mrb[100].mxu0  ;;  %v2105_v61 = vadd.f32 %v2074_v34, %v2073_v13  ;;  %v2576_v33 = vld [vmem:[#allocation7 + $0x258] sm:$0xff]  ;;  %5441 = vmatprep.subr.bf16.mxu0 %v9332_v27 }
 0x24a   : > { %v1871_v62 = vadd.f32 %v4882_v3, %v7298_v18  ;;  %v1865_v38 = vpop.f32.mrb[101].mxu0  ;;  %v2076_v6 = vmul.f32 %v7339_v22, %v7339_v22  ;;  %v5442_v4 = vpack.c.bf16 %v2576_v33, %v2575_v40  ;;  %5471 = vmatprep.subr.bf16.mxu1 %v5470_v37 }
 0x24b   : > { %v2037_v59 = vadd.f32 %v2036_v48, %v7345_v21  ;;  %v2075_v19 = vmul.f32 %v7345_v21, %v7345_v21  ;;  %v7351_v57 = vpop.f32.mrb[116].mxu1  ;;  %v1866_v51 = vadd.f32 %v1865_v38, %v7289_v11  ;;  %5473 = vmatpush3.bf16.msra.mxu1 %v5470_v37 }
 0x24c   : > { %v7357_v18 = vadd.f32 %v1871_v62, %v7193_v53  ;;  %v1672_v34 = vpop.f32.mrb[117].mxu1  ;;  %5443 = vmatpush1.bf16.msra.mxu0 %v5442_v4 }
 0x24d   : > { %v2106_v13 = vadd.f32 %v2105_v61, %v2075_v19  ;;  %v7361_v11 = vadd.f32 %v1866_v51, %v7196_v55  ;;  %v2038_v16 = vadd.f32 %v2037_v59, %v7339_v22  ;;  %v4885_v54 = vpop.f32.mrb[102].mxu0  ;;  %v2578_v55 = vld [vmem:[#allocation7 + $0x268] sm:$0xff]  ;;  %v2593_v61 = vld [vmem:[#allocation7 + $0x2e0] sm:$0xff]  ;;  %5444 = vmatprep.subr.bf16.mxu0 %v9332_v27 }
 0x24e   : > { %v1881_v49 = vadd.f32 %v4885_v54, %v7316_v35  ;;  %v1875_v8 = vpop.f32.mrb[103].mxu0  ;;  %v2078_v62 = vmul.f32 %v7357_v18, %v7357_v18  ;;  %v5445_v59 = vpack.c.bf16 %v2578_v55, %v2577_v44  ;;  %v2594_v19 = vld [vmem:[#allocation7 + $0x2e8] sm:$0xff]  ;;  %v2580_v54 = vld [vmem:[#allocation7 + $0x278] sm:$0xff] }
 0x24f   : > { %v2039_v53 = vadd.f32 %v2038_v16, %v7361_v11  ;;  %v2077_v63 = vmul.f32 %v7361_v11, %v7361_v11  ;;  %v2107_v42 = vadd.f32 %v2106_v13, %v2076_v6  ;;  %v1675_v48 = vpop.f32.mrb[118].mxu1  ;;  %v1876_v3 = vadd.f32 %v1875_v8, %v7307_v58  ;;  %v2596_v44 = vld [vmem:[#allocation7 + $0x2f8] sm:$0xff] }
 0x250   : > { %v7372_v38 = vadd.f32 %v1881_v49, %v7201_v23  ;;  %v1677_v35 = vpop.f32.mrb[119].mxu1  ;;  %v5474_v5 = vpack.c.bf16 %v2594_v19, %v2593_v61  ;;  %5446 = vmatpush1.bf16.msra.mxu0 %v5445_v59 }
 0x251   : > { %v2108_v51 = vadd.f32 %v2107_v42, %v2077_v63  ;;  %v7376_v40 = vadd.f32 %v1876_v3, %v7205_v26  ;;  %v2040_v58 = vadd.f32 %v2039_v53, %v7357_v18  ;;  %v4888_v33 = vpop.f32.mrb[104].mxu0  ;;  %v2579_v26 = vld [vmem:[#allocation7 + $0x270] sm:$0xff]  ;;  %5447 = vmatprep.subr.bf16.mxu0 %v9332_v27 }
 0x252   : > { %v1891_v6 = vadd.f32 %v4888_v33, %v7335_v41  ;;  %v1885_v34 = vpop.f32.mrb[105].mxu0  ;;  %5475 = vmatprep.subr.bf16.mxu1 %v5474_v5  ;;  %v5448_v41 = vpack.c.bf16 %v2580_v54, %v2579_v26  ;;  %v2080_v8 = vmul.f32 %v7372_v38, %v7372_v38  ;;  %v2595_v3 = vld [vmem:[#allocation7 + $0x2f0] sm:$0xff]  ;;  %v2532_v26 = vld [vmem:[#allocation7 + $0x100] sm:$0xff]  ;;  %v2533_v54 = vld [vmem:[#allocation7 + $0x108] sm:$0xff] }
 0x253   : > { %v2041_v23 = vadd.f32 %v2040_v58, %v7376_v40  ;;  %v2079_v4 = vmul.f32 %v7376_v40, %v7376_v40  ;;  %v2109_v36 = vadd.f32 %v2108_v51, %v2078_v62  ;;  %v1680_v13 = vpop.f32.mrb[120].mxu1  ;;  %v1886_v16 = vadd.f32 %v1885_v34, %v7320_v9  ;;  %5477 = vmatpush3.bf16.msra.mxu1 %v5474_v5 }
 0x254   : > { %v7385_v49 = vadd.f32 %v1891_v6, %v7211_v47  ;;  %v1682_v37 = vpop.f32.mrb[121].mxu1  ;;  %v5478_v61 = vpack.c.bf16 %v2596_v44, %v2595_v3  ;;  %5449 = vmatpush1.bf16.msra.mxu0 %v5448_v41 }
 0x255   : > { %v2110_v53 = vadd.f32 %v2109_v36, %v2079_v4  ;;  %v7391_v63 = vadd.f32 %v1886_v16, %v7214_v1  ;;  %v2042_v9 = vadd.f32 %v2041_v23, %v7372_v38  ;;  %v4891_v42 = vpop.f32.mrb[106].mxu0 }
 0x256   : > { %v1901_v47 = vadd.f32 %v4891_v42, %v1675_v48  ;;  %v1895_v55 = vpop.f32.mrb[107].mxu0  ;;  %5479 = vmatprep.subr.bf16.mxu1 %v5478_v61  ;;  %v2082_v48 = vmul.f32 %v7385_v49, %v7385_v49 }
 0x257   : > { %v2043_v62 = vadd.f32 %v2042_v9, %v7391_v63  ;;  %v2081_v35 = vmul.f32 %v7391_v63, %v7391_v63  ;;  %v2111_v59 = vadd.f32 %v2110_v53, %v2080_v8  ;;  %v1685_v19 = vpop.f32.mrb[122].mxu1  ;;  %v1896_v51 = vadd.f32 %v1895_v55, %v7351_v57  ;;  %5481 = vmatpush3.bf16.msra.mxu1 %v5478_v61 }
 0x258   : > { %v7399_v1 = vadd.f32 %v1901_v47, %v7221_v29  ;;  %v1687_v58 = vpop.f32.mrb[123].mxu1  ;;  %5482 = vmatprep.subr.bf16.mxu1 %v9332_v27  ;;  %v7414_v8 = vpack.c.bf16 %v2533_v54, %v2532_v26 }
 0x259   : > { %v2112_v33 = vadd.f32 %v2111_v59, %v2081_v35  ;;  %v7404_v5 = vadd.f32 %v1896_v51, %v7224_v31  ;;  %v2044_v6 = vadd.f32 %v2043_v62, %v7385_v49  ;;  %v4894_v34 = vpop.f32.mrb[108].mxu0 }
 0x25a   : > { %v1911_v23 = vadd.f32 %v4894_v34, %v1685_v19  ;;  %v1905_v4 = vpop.f32.mrb[109].mxu0  ;;  %5531 = vmatprep.subr.bf16.mxu0 %v7414_v8  ;;  %v2084_v47 = vmul.f32 %v7399_v1, %v7399_v1 }
 0x25b   : > { %v2083_v29 = vmul.f32 %v7404_v5, %v7404_v5  ;;  %v2113_v57 = vadd.f32 %v2112_v33, %v2082_v48  ;;  %v1690_v36 = vpop.f32.mrb[124].mxu1  ;;  %v1906_v16 = vadd.f32 %v1905_v4, %v1680_v13  ;;  %v2045_v37 = vadd.f32 %v2044_v6, %v7404_v5 }
 0x25c   : > { %v7412_v31 = vadd.f32 %v1911_v23, %v7231_v46  ;;  %v1692_v41 = vpop.f32.mrb[125].mxu1 }
 0x25d   : > { %v7417_v53 = vadd.f32 %v1906_v16, %v7234_v7  ;;  %v4897_v9 = vpop.f32.mrb[110].mxu0  ;;  %v2114_v42 = vadd.f32 %v2113_v57, %v2083_v29  ;;  %v2046_v55 = vadd.f32 %v2045_v37, %v7399_v1 }
 0x25e   : > { %v1915_v3 = vpop.f32.mrb[111].mxu0  ;;  %v2086_v57 = vmul.f32 %v7412_v31, %v7412_v31 }
 0x25f   : > { %v1695_v44 = vpop.f32.mrb[126].mxu1  ;;  %v1916_v13 = vadd.f32 %v1915_v3, %v1690_v36  ;;  %v2085_v7 = vmul.f32 %v7417_v53, %v7417_v53  ;;  %v2115_v59 = vadd.f32 %v2114_v42, %v2084_v47  ;;  %v2047_v48 = vadd.f32 %v2046_v55, %v7417_v53 }
 0x260   : > { %v1921_v46 = vadd.f32 %v4897_v9, %v1695_v44  ;;  %v1697_v61 = vpop.f32.mrb[127].mxu1 }
 0x261   : > { %v7424_v62 = vadd.f32 %v1916_v13, %v7244_v0  ;;  %v4900_v35 = vpop.f32.mrb[112].mxu0  ;;  %v2116_v23 = vadd.f32 %v2115_v59, %v2085_v7  ;;  %v2048_v36 = vadd.f32 %v2047_v48, %v7412_v31 }
 0x262   : > { %v7429_v19 = vadd.f32 %v1921_v46, %v7241_v32  ;;  %v1925_v51 = vpop.f32.mrb[113].mxu0 }
 0x263   : > { %v1700_v58 = vpop.f32.mrb[128].mxu1  ;;  %v2087_v54 = vmul.f32 %v7424_v62, %v7424_v62  ;;  %v2117_v37 = vadd.f32 %v2116_v23, %v2086_v57  ;;  %v2049_v42 = vadd.f32 %v2048_v36, %v7424_v62 }
 0x264   : > { %v1926_v33 = vadd.f32 %v1925_v51, %v1700_v58  ;;  %v1702_v6 = vpop.f32.mrb[129].mxu1 }
 0x265   : > { %v4903_v34 = vpop.f32.mrb[114].mxu0  ;;  %v2118_v47 = vadd.f32 %v2117_v37, %v2087_v54  ;;  %v2050_v7 = vadd.f32 %v2049_v42, %v7429_v19 }
 0x266   : > { %v7433_v4 = vadd.f32 %v1926_v33, %v7254_v52  ;;  %v1935_v0 = vpop.f32.mrb[115].mxu0 }
 0x267   : > { %v1705_v29 = vpop.f32.mrb[130].mxu1 }
 0x268   : > { %v1931_v32 = vadd.f32 %v4900_v35, %v1705_v29  ;;  %v1707_v16 = vpop.f32.mrb[131].mxu1  ;;  %v2088_v35 = vmul.f32 %v7429_v19, %v7429_v19  ;;  %v2089_v58 = vmul.f32 %v7433_v4, %v7433_v4  ;;  %v2051_v23 = vadd.f32 %v2050_v7, %v7433_v4 }
 0x269   : > { %v4906_v26 = vpop.f32.mrb[116].mxu0 }
 0x26a   : > { %v7441_v41 = vadd.f32 %v1931_v32, %v7251_v60  ;;  %v1945_v9 = vpop.f32.mrb[117].mxu0  ;;  %v2119_v48 = vadd.f32 %v2118_v47, %v2088_v35 }
 0x26b   : > { %v1710_v52 = vpop.f32.mrb[132].mxu1 }
 0x26c   : > { %v1936_v3 = vadd.f32 %v1935_v0, %v1710_v52  ;;  %v1712_v44 = vpop.f32.mrb[133].mxu1  ;;  %v2090_v0 = vmul.f32 %v7441_v41, %v7441_v41  ;;  %v2052_v32 = vadd.f32 %v2051_v23, %v7441_v41 }
 0x26d   : > { %v4909_v13 = vpop.f32.mrb[118].mxu0 }
 0x26e   : > { %v7445_v55 = vadd.f32 %v1936_v3, %v7262_v14  ;;  %v1955_v46 = vpop.f32.mrb[119].mxu0 }
 0x26f   : > { %v1715_v61 = vpop.f32.mrb[134].mxu1 }
 0x270   : > { %v1941_v60 = vadd.f32 %v4903_v34, %v1715_v61  ;;  %v1717_v59 = vpop.f32.mrb[135].mxu1  ;;  %v2120_v34 = vadd.f32 %v2119_v48, %v2089_v58  ;;  %v2091_v16 = vmul.f32 %v7445_v55, %v7445_v55  ;;  %v2053_v42 = vadd.f32 %v2052_v32, %v7445_v55 }
 0x271   : > { %v4912_v51 = vpop.f32.mrb[120].mxu0 }
 0x272   : > { %v7453_v33 = vadd.f32 %v1941_v60, %v7259_v43  ;;  %v1965_v6 = vpop.f32.mrb[121].mxu0  ;;  %v2121_v52 = vadd.f32 %v2120_v34, %v2090_v0 }
 0x273   : > { %v1720_v14 = vpop.f32.mrb[136].mxu1 }
 0x274   : > { %v1946_v29 = vadd.f32 %v1945_v9, %v1720_v14  ;;  %v1722_v57 = vpop.f32.mrb[137].mxu1  ;;  %v2092_v3 = vmul.f32 %v7453_v33, %v7453_v33  ;;  %v2122_v61 = vadd.f32 %v2121_v52, %v2091_v16  ;;  %v2054_v35 = vadd.f32 %v2053_v42, %v7453_v33 }
 0x275   : > { %v4915_v36 = vpop.f32.mrb[122].mxu0 }
 0x276   : > { %v7462_v54 = vadd.f32 %v1946_v29, %v7270_v12  ;;  %v1975_v43 = vpop.f32.mrb[123].mxu0  ;;  %v2123_v58 = vadd.f32 %v2122_v61, %v2092_v3 }
 0x277   : > { %v1725_v37 = vpop.f32.mrb[138].mxu1 }
 0x278   : > { %v1951_v9 = vadd.f32 %v4906_v26, %v1725_v37  ;;  %v1727_v44 = vpop.f32.mrb[139].mxu1  ;;  %v2093_v7 = vmul.f32 %v7462_v54, %v7462_v54  ;;  %v2055_v48 = vadd.f32 %v2054_v35, %v7462_v54 }
 0x279   : > { %v7467_v47 = vpop.f32.mrb[124].mxu0 }
 0x27a   : > { %v7473_v12 = vadd.f32 %v1951_v9, %v7267_v50  ;;  %v1985_v60 = vpop.f32.mrb[125].mxu0  ;;  %v2124_v29 = vadd.f32 %v2123_v58, %v2093_v7 }
 0x27b   : > { %v1730_v59 = vpop.f32.mrb[140].mxu1 }
 0x27c   : > { %v2094_v26 = vmul.f32 %v7473_v12, %v7473_v12  ;;  %v1956_v14 = vadd.f32 %v1955_v46, %v1730_v59  ;;  %v1732_v23 = vpop.f32.mrb[141].mxu1  ;;  %v2056_v57 = vadd.f32 %v2055_v48, %v7473_v12 }
 0x27d   : > { %v7478_v0 = vpop.f32.mrb[126].mxu0 }
 0x27e   : > { %v7482_v34 = vadd.f32 %v1956_v14, %v7278_v56  ;;  %v1995_v50 = vpop.f32.mrb[127].mxu0  ;;  %v2125_v16 = vadd.f32 %v2124_v29, %v2094_v26 }
 0x27f   : > { %v1735_v32 = vpop.f32.mrb[142].mxu1 }
 0x280   : > { %v2057_v37 = vadd.f32 %v2056_v57, %v7482_v34  ;;  %v2095_v52 = vmul.f32 %v7482_v34, %v7482_v34  ;;  %v1961_v42 = vadd.f32 %v4909_v13, %v1735_v32  ;;  %v1737_v3 = vpop.f32.mrb[143].mxu1 }
 0x282   : > { %v2126_v46 = vadd.f32 %v2125_v16, %v2095_v52  ;;  %v7488_v9 = vadd.f32 %v1961_v42, %v7275_v39 }
 0x283   : > { %v1740_v44 = vpop.f32.mrb[144].mxu1 }
 0x284   : > { %v2058_v61 = vadd.f32 %v2057_v37, %v7488_v9  ;;  %v2096_v56 = vmul.f32 %v7488_v9, %v7488_v9  ;;  %v1966_v35 = vadd.f32 %v1965_v6, %v1740_v44  ;;  %v1742_v7 = vpop.f32.mrb[145].mxu1 }
 0x286   : > { %v2127_v59 = vadd.f32 %v2126_v46, %v2096_v56  ;;  %v7494_v58 = vadd.f32 %v1966_v35, %v7287_v17 }
 0x287   : > { %v1745_v48 = vpop.f32.mrb[146].mxu1 }
 0x288   : > { %v2059_v13 = vadd.f32 %v2058_v61, %v7494_v58  ;;  %v2097_v26 = vmul.f32 %v7494_v58, %v7494_v58  ;;  %v1971_v39 = vadd.f32 %v4912_v51, %v1745_v48  ;;  %v1747_v14 = vpop.f32.mrb[147].mxu1 }
 0x28a   : > { %v2128_v23 = vadd.f32 %v2127_v59, %v2097_v26  ;;  %v7500_v29 = vadd.f32 %v1971_v39, %v7284_v24 }
 0x28b   : > { %v1750_v57 = vpop.f32.mrb[148].mxu1 }
 0x28c   : > { %v2060_v6 = vadd.f32 %v2059_v13, %v7500_v29  ;;  %v2098_v32 = vmul.f32 %v7500_v29, %v7500_v29  ;;  %v1976_v17 = vadd.f32 %v1975_v43, %v1750_v57  ;;  %v1752_v16 = vpop.f32.mrb[149].mxu1 }
 0x28e   : > { %v2129_v37 = vadd.f32 %v2128_v23, %v2098_v32  ;;  %v7506_v52 = vadd.f32 %v1976_v17, %v7296_v45 }
 0x28f   : > { %v1755_v42 = vpop.f32.mrb[150].mxu1 }
 0x290   : > { %v2061_v51 = vadd.f32 %v2060_v6, %v7506_v52  ;;  %v2099_v3 = vmul.f32 %v7506_v52, %v7506_v52  ;;  %v1981_v24 = vadd.f32 %v4915_v36, %v1755_v42  ;;  %v1757_v46 = vpop.f32.mrb[151].mxu1 }
 0x292   : > { %v2130_v44 = vadd.f32 %v2129_v37, %v2099_v3  ;;  %v7512_v61 = vadd.f32 %v1981_v24, %v7293_v15 }
 0x293   : > { %v1760_v56 = vpop.f32.mrb[152].mxu1 }
 0x294   : > { %v2062_v43 = vadd.f32 %v2061_v51, %v7512_v61  ;;  %v2100_v35 = vmul.f32 %v7512_v61, %v7512_v61  ;;  %v1986_v45 = vadd.f32 %v1985_v60, %v1760_v56  ;;  %v1762_v7 = vpop.f32.mrb[153].mxu1 }
 0x296   : > { %v2131_v59 = vadd.f32 %v2130_v44, %v2100_v35  ;;  %v7518_v48 = vadd.f32 %v1986_v45, %v7305_v10 }
 0x297   : > { %v1765_v13 = vpop.f32.mrb[154].mxu1 }
 0x298   : > { %v2063_v36 = vadd.f32 %v2062_v43, %v7518_v48  ;;  %v2101_v26 = vmul.f32 %v7518_v48, %v7518_v48  ;;  %v1991_v15 = vadd.f32 %v7467_v47, %v1765_v13  ;;  %v1767_v39 = vpop.f32.mrb[155].mxu1 }
 0x29a   : > { %v2132_v14 = vadd.f32 %v2131_v59, %v2101_v26  ;;  %v7525_v23 = vadd.f32 %v1991_v15, %v7302_v2 }
 0x29b   : > { %v1770_v57 = vpop.f32.mrb[156].mxu1 }
 0x29c   : > { %v2064_v60 = vadd.f32 %v2063_v36, %v7525_v23  ;;  %v2102_v10 = vmul.f32 %v7525_v23, %v7525_v23  ;;  %v1996_v6 = vadd.f32 %v1995_v50, %v1770_v57  ;;  %v1772_v32 = vpop.f32.mrb[157].mxu1 }
 0x29e   : > { %v2133_v17 = vadd.f32 %v2132_v14, %v2102_v10  ;;  %v7531_v16 = vadd.f32 %v1996_v6, %v7314_v30 }
 0x29f   : > { %v1775_v37 = vpop.f32.mrb[158].mxu1 }
 0x2a0   : > { %v2065_v47 = vadd.f32 %v2064_v60, %v7531_v16  ;;  %v2103_v42 = vmul.f32 %v7531_v16, %v7531_v16  ;;  %v2001_v2 = vadd.f32 %v7478_v0, %v1775_v37  ;;  %v1777_v51 = vpop.f32.mrb[159].mxu1 }
 0x2a2   : > { %v2134_v3 = vadd.f32 %v2133_v17, %v2103_v42  ;;  %v2035_v24 = vadd.f32 %v2001_v2, %v7311_v28 }
 0x2a4   : > { %v2066_v46 = vadd.f32 %v2065_v47, %v2035_v24  ;;  %v2104_v44 = vmul.f32 %v2035_v24, %v2035_v24 }
 0x2a6   : > { %v2067_v50 = vrot.slane %v2066_v46, 4  ;;  %v2135_v56 = vadd.f32 %v2134_v3, %v2104_v44 }
 0x2a8   : > { %v2068_v43 = vadd.f32 %v2067_v50, %v2066_v46  ;;  %v2136_v35 = vrot.slane %v2135_v56, 4 }
 0x2aa   : > { %v2069_v30 = vrot.slane %v2068_v43, 2  ;;  %v2137_v45 = vadd.f32 %v2136_v35, %v2135_v56 }
 0x2ac   : > { %v2070_v7 = vadd.f32 %v2069_v30, %v2068_v43  ;;  %v2138_v59 = vrot.slane %v2137_v45, 2 }
 0x2ae   : > { %v2071_v13 = vrot.slane %v2070_v7, 1  ;;  %v2139_v36 = vadd.f32 %v2138_v59, %v2137_v45 }
 0x2b0   : > { %v2072_v26 = vadd.f32 %v2071_v13, %v2070_v7  ;;  %v2140_v15 = vrot.slane %v2139_v36, 1 }
 0x2b2   : > { %v2141_v39 = vadd.f32 %v2140_v15, %v2139_v36  ;;  %v7538_v0 = vmul.f32 0.00390625, %v2072_v26 }
 0x2b4   : > { %v2143_v14 = vmul.f32 0.00390625, %v2141_v39  ;;  %v2144_v28 = vmul.f32 %v7538_v0, %v7538_v0  ;;  %v2177_v57 = vsub.f32 %v2035_v24, %v7538_v0  ;;  %v2167_v6 = vsub.f32 %v7473_v12, %v7538_v0 }
 0x2b5   : > { %v2168_v32 = vsub.f32 %v7482_v34, %v7538_v0  ;;  %v2169_v17 = vsub.f32 %v7488_v9, %v7538_v0  ;;  %v2170_v37 = vsub.f32 %v7494_v58, %v7538_v0  ;;  %v2171_v47 = vsub.f32 %v7500_v29, %v7538_v0 }
 0x2b6   : > { %v2145_v60 = vsub.f32 %v2143_v14, %v2144_v28  ;;  %v2172_v42 = vsub.f32 %v7506_v52, %v7538_v0  ;;  %v2173_v2 = vsub.f32 %v7512_v61, %v7538_v0  ;;  %v2174_v12 = vsub.f32 %v7518_v48, %v7538_v0 }
 0x2b7   : > { %v2175_v34 = vsub.f32 %v7525_v23, %v7538_v0  ;;  %v2176_v9 = vsub.f32 %v7531_v16, %v7538_v0  ;;  %v2147_v58 = vsub.f32 %v7324_v25, %v7538_v0  ;;  %v2148_v29 = vsub.f32 %v7345_v21, %v7538_v0 }
 0x2b8   : > { %v2178_v10 = vadd.f32 1e-05, %v2145_v60  ;;  %v2149_v52 = vsub.f32 %v7339_v22, %v7538_v0  ;;  %v2150_v61 = vsub.f32 %v7361_v11, %v7538_v0  ;;  %v2151_v48 = vsub.f32 %v7357_v18, %v7538_v0 }
 0x2b9   : > { %v2152_v23 = vsub.f32 %v7376_v40, %v7538_v0  ;;  %v2153_v16 = vsub.f32 %v7372_v38, %v7538_v0  ;;  %v2154_v25 = vsub.f32 %v7391_v63, %v7538_v0  ;;  %v2155_v21 = vsub.f32 %v7385_v49, %v7538_v0 }
 0x2ba   : > { %5714 = vrsqrt.f32 %v2178_v10  ;;  %v2156_v22 = vsub.f32 %v7404_v5, %v7538_v0  ;;  %v2157_v11 = vsub.f32 %v7399_v1, %v7538_v0  ;;  %v2158_v18 = vsub.f32 %v7417_v53, %v7538_v0 }
 0x2bb   : > { %v2159_v40 = vsub.f32 %v7412_v31, %v7538_v0  ;;  %v2160_v38 = vsub.f32 %v7424_v62, %v7538_v0  ;;  %v2161_v63 = vsub.f32 %v7429_v19, %v7538_v0  ;;  %v2162_v49 = vsub.f32 %v7433_v4, %v7538_v0 }
 0x2bc   : > { %v2163_v5 = vsub.f32 %v7441_v41, %v7538_v0  ;;  %v2164_v1 = vsub.f32 %v7445_v55, %v7538_v0  ;;  %v2165_v53 = vsub.f32 %v7453_v33, %v7538_v0  ;;  %v2166_v4 = vsub.f32 %v7462_v54, %v7538_v0 }
 0x2c4   : > { %v5715_v51 = vpop.eup %5714 }
 0x2c5   : > { %v7601_v31 = vmul.f32 %v5715_v51, %v2177_v57  ;;  %v2181_v3 = vmul.f32 %v5715_v51, %v2147_v58  ;;  %v2182_v62 = vmul.f32 %v5715_v51, %v2148_v29  ;;  %v2183_v24 = vmul.f32 %v5715_v51, %v2149_v52 }
 0x2c6   : > { %v2184_v46 = vmul.f32 %v5715_v51, %v2150_v61  ;;  %v2185_v19 = vmul.f32 %v5715_v51, %v2151_v48  ;;  %v2186_v44 = vmul.f32 %v5715_v51, %v2152_v23  ;;  %v2187_v50 = vmul.f32 %v5715_v51, %v2153_v16  ;;  %v2501_v61 = vld [vmem:[#allocation7 + $0x8] sm:$0xff]  ;;  %v2534_v48 = vld [vmem:[#allocation7 + $0x110] sm:$0xff]  ;;  %v2535_v23 = vld [vmem:[#allocation7 + $0x118] sm:$0xff] }
 0x2c7   : > { %v7605_v56 = vmul.f32 %v5715_v51, %v2154_v25  ;;  %v7607_v41 = vmul.f32 %v5715_v51, %v2155_v21  ;;  %v7609_v55 = vmul.f32 %v5715_v51, %v2156_v22  ;;  %v7611_v43 = vmul.f32 %v5715_v51, %v2157_v11 }
 0x2c8   : > { %v7613_v33 = vmul.f32 %v5715_v51, %v2158_v18  ;;  %v7615_v35 = vmul.f32 %v5715_v51, %v2159_v40  ;;  %v7617_v30 = vmul.f32 %v5715_v51, %v2160_v38  ;;  %v7619_v45 = vmul.f32 %v5715_v51, %v2161_v63  ;;  %v2502_v40 = vld [vmem:[#allocation7 + $0x10] sm:$0xff] }
 0x2c9   : > { %v7621_v7 = vmul.f32 %v5715_v51, %v2162_v49  ;;  %v7623_v59 = vmul.f32 %v5715_v51, %v2163_v5  ;;  %v7625_v54 = vmul.f32 %v5715_v51, %v2164_v1  ;;  %v7627_v13 = vmul.f32 %v5715_v51, %v2165_v53  ;;  %v2503_v49 = vld [vmem:[#allocation7 + $0x18] sm:$0xff]  ;;  %v2536_v5 = vld [vmem:[#allocation7 + $0x120] sm:$0xff]  ;;  %v2537_v1 = vld [vmem:[#allocation7 + $0x128] sm:$0xff] }
 0x2ca   : > { %v7629_v36 = vmul.f32 %v5715_v51, %v2166_v4  ;;  %v7631_v26 = vmul.f32 %v5715_v51, %v2167_v6  ;;  %v7633_v15 = vmul.f32 %v5715_v51, %v2168_v32  ;;  %v7635_v39 = vmul.f32 %v5715_v51, %v2169_v17 }
 0x2cb   : > { %v7637_v14 = vmul.f32 %v5715_v51, %v2170_v37  ;;  %v7639_v28 = vmul.f32 %v5715_v51, %v2171_v47  ;;  %v7641_v57 = vmul.f32 %v5715_v51, %v2172_v42  ;;  %v7643_v60 = vmul.f32 %v5715_v51, %v2173_v2 }
 0x2cc   : > { %v7645_v10 = vmul.f32 %v5715_v51, %v2174_v12  ;;  %v7647_v58 = vmul.f32 %v5715_v51, %v2175_v34  ;;  %v7649_v29 = vmul.f32 %v5715_v51, %v2176_v9  ;;  %v7651_v6 = vmax.f32 %v2181_v3, 0.0  ;;  %v2500_v34 = vld [vmem:[#allocation7] sm:$0xff] }
 0x2cd   : > { %v2146_v32 = vsub.f32 %v7328_v20, %v7538_v0  ;;  %v7655_v17 = vmax.f32 %v2182_v62, 0.0  ;;  %v7657_v37 = vmax.f32 %v2183_v24, 0.0  ;;  %v7663_v52 = vmax.f32 %v2184_v46, 0.0 }
 0x2ce   : > { %v2404_v42 = vrot.slane %v7651_v6, 1  ;;  %v2309_v2 = vrot.slane %v7651_v6, 7  ;;  %v7665_v9 = vmax.f32 %v2185_v19, 0.0  ;;  %v5483_v18 = vpack.c.bf16 %v2501_v61, %v2500_v34  ;;  %v2539_v34 = vld [vmem:[#allocation7 + $0x138] sm:$0xff] }
 0x2cf   : > { %v2180_v47 = vmul.f32 %v5715_v51, %v2146_v32  ;;  %v2261_v16 = vrot.slane %v7655_v17, 1  ;;  %v2406_v25 = vrot.slane %v7657_v37, 1  ;;  %v5534_v38 = vpack.c.bf16 %v2535_v23, %v2534_v48 }
 0x2d0   : > { %v7673_v21 = vsel %vm411_vm0, %v2404_v42, %v2309_v2  ;;  %v7681_v63 = vmax.f32 %v2186_v44, 0.0  ;;  %v2312_v51 = vrot.slane %v7657_v37, 7  ;;  %v7686_v53 = vmax.f32 %v2187_v50, 0.0  ;;  %v2504_v50 = vld [vmem:[#allocation7 + $0x20] sm:$0xff] }
 0x2d1   : > { %v7661_v12 = vmax.f32 %v2180_v47, 0.0  ;;  %9400 = vst [vmem:[#allocation12_spill] sm:$0xff] %v7673_v21  ;;  %v7691_v3 = vsel %vm411_vm0, %v2261_v16, %v2406_v25  ;;  %v2262_v62 = vrot.slane %v7663_v52, 1  ;;  %v2408_v24 = vrot.slane %v7665_v9, 1 }
 0x2d2   : > { %v5486_v19 = vpack.c.bf16 %v2503_v49, %v2502_v40  ;;  %v2311_v44 = vrot.slane %v7655_v17, 7  ;;  %v5538_v4 = vpack.c.bf16 %v2537_v1, %v2536_v5  ;;  %v7702_v32 = vmax.f32 %v7605_v56, 0.0  ;;  %v2540_v49 = vld [vmem:[#allocation7 + $0x140] sm:$0xff]  ;;  %v2541_v5 = vld [vmem:[#allocation7 + $0x148] sm:$0xff] }
 0x2d3   : > { %2661 = vmatprep.mubr.f32.mxu0 %v7661_v12  ;;  %v2260_v20 = vrot.slane %v7661_v12, 1  ;;  %v2308_v0 = vrot.slane %v7661_v12, 7  ;;  %v7706_v47 = vsel %vm411_vm0, %v2406_v25, %v2312_v51  ;;  %v7711_v61 = vmax.f32 %v7607_v41, 0.0 }
 0x2d4   : > { %v7718_v56 = vsel %vm411_vm0, %v2262_v62, %v2408_v24  ;;  %v9209_v48 = vrot.slane %v7681_v63, 1  ;;  %v2410_v23 = vrot.slane %v7686_v53, 1  ;;  %v7724_v41 = vsel %vm314_vm1, %v2261_v16, %v2311_v44  ;;  %v2507_v16 = vld [vmem:[#allocation7 + $0x38] sm:$0xff] }
 0x2d5   : > { %v7676_v22 = vsel %vm314_vm1, %v2260_v20, %v2308_v0  ;;  %v7679_v11 = vsel %vm411_vm0, %v2260_v20, %v2404_v42  ;;  %v7698_v46 = vsel %vm314_vm1, %v2308_v0, %v2309_v2  ;;  %v2505_v42 = vld [vmem:[#allocation7 + $0x28] sm:$0xff]  ;;  %v2538_v2 = vld [vmem:[#allocation7 + $0x130] sm:$0xff]  ;;  %9402 = vst [vmem:[#allocation14_spill] sm:$0xff] %v7718_v56  ;;  %v7738_v1 = vmax.f32 %v7611_v43, 0.0 }
 0x2d6   : > { %9401 = vst [vmem:[#allocation13_spill] sm:$0xff] %v7679_v11  ;;  %2662 = vmatmul.mubr.f32.vlgmr.msra.gmra.mrb[128].mxu0 %v7676_v22  ;;  %4954 = vmatprep.mubr.f32.mxu1 %v7679_v11  ;;  %v5489_v20 = vpack.c.bf16 %v2505_v42, %v2504_v50  ;;  %v2506_v0 = vld [vmem:[#allocation7 + $0x30] sm:$0xff]  ;;  %v5542_v25 = vpack.c.bf16 %v2539_v34, %v2538_v2  ;;  %v2314_v42 = vrot.slane %v7663_v52, 7  ;;  %v2508_v2 = vld [vmem:[#allocation7 + $0x40] sm:$0xff] }
 0x2d7   : > { %2666 = vmatprep.mubr.f32.mxu0 %v7651_v6  ;;  %4955 = vmatmul.mubr.f32.vlgmr.msra.gmra.mrb[160].mxu1 %v7673_v21  ;;  %9404 = vst [vmem:[#allocation16_spill] sm:$0xff] %v7738_v1  ;;  %v7751_v43 = vsel %vm314_vm1, %v2311_v44, %v2312_v51  ;;  %v5492_v50 = vpack.c.bf16 %v2507_v16, %v2506_v0  ;;  %v9213_v51 = vrot.slane %v7711_v61, 7  ;;  %v2509_v44 = vld [vmem:[#allocation7 + $0x48] sm:$0xff]  ;;  %v7766_v0 = vmax.f32 %v7615_v35, 0.0  ;;  %v2530_v21 = vld [vmem:[#allocation7 + $0xf0] sm:$0xff] }
 0x2d8   : > { %5533 = vmatpush3.bf16.msra.mxu0 %v7414_v8  ;;  %4957 = vmatprep.mubr.f32.mxu1 %v7691_v3  ;;  %v9210_v8 = vrot.slane %v7665_v9, 7  ;;  %v5546_v34 = vpack.c.bf16 %v2541_v5, %v2540_v49  ;;  %v2414_v16 = vrot.slane %v7738_v1, 1  ;;  %v7781_v35 = vsel %vm314_vm1, %v2262_v62, %v2314_v42  ;;  %v2511_v62 = vld [vmem:[#allocation7 + $0x58] sm:$0xff] }
 0x2d9   : > { %5484 = vmatpush1.bf16.msra.mxu1 %v5483_v18  ;;  %5535 = vmatprep.subr.bf16.mxu0 %v5534_v38  ;;  %v7727_v18 = vmax.f32 %v7609_v55, 0.0  ;;  %v7745_v55 = vsel %vm411_vm0, %v9209_v48, %v2410_v23  ;;  %v7755_v48 = vmax.f32 %v7613_v33, 0.0  ;;  %9407 = vst [vmem:[#allocation19_spill] sm:$0xff] %v7766_v0  ;;  %v5495_v49 = vpack.c.bf16 %v2509_v44, %v2508_v2 }
 0x2da   : > { %2667 = vmatmul.mubr.f32.gmra.mrb[130].mxu0 %v7698_v46  ;;  %5485 = vmatprep.subr.bf16.mxu1 %v9332_v27  ;;  %v7733_v40 = vsel %vm411_vm0, %v2408_v24, %v9210_v8  ;;  %9405 = vst [vmem:[#allocation17_spill] sm:$0xff] %v7745_v55  ;;  %v9212_v24 = vrot.slane %v7702_v32, 1  ;;  %v7795_v2 = vmax.f32 %v7619_v45, 0.0  ;;  %v2416_v44 = vrot.slane %v7766_v0, 1 }
 0x2db   : > { %2671 = vmatprep.mubr.f32.mxu0 %v7655_v17  ;;  %4958 = vmatmul.mubr.f32.gmra.mrb[162].mxu1 %v7706_v47  ;;  %9403 = vst [vmem:[#allocation15_spill] sm:$0xff] %v7733_v40  ;;  %v9411_v45 = vrot.slane %v7665_v9, 7 }
 0x2dc   : > { %4960 = vmatprep.mubr.f32.mxu1 %v7718_v56  ;;  %5537 = vmatpush3.bf16.msra.mxu0 %v5534_v38  ;;  %v9211_v38 = vrot.slane %v7686_v53, 7 }
 0x2dd   : > { %5487 = vmatpush1.bf16.msra.mxu1 %v5486_v19  ;;  %5539 = vmatprep.subr.bf16.mxu0 %v5538_v4  ;;  %v2412_v19 = vrot.slane %v7711_v61, 1 }
 0x2de   : > { %2672 = vmatmul.mubr.f32.gmra.mrb[132].mxu0 %v7724_v41  ;;  %5488 = vmatprep.subr.bf16.mxu1 %v9332_v27  ;;  %v7761_v8 = vsel %vm411_vm0, %v2410_v23, %v9211_v38  ;;  %v9214_v23 = vrot.slane %v7727_v18, 1  ;;  %v7784_v38 = vmax.f32 %v7617_v30, 0.0 }
 0x2df   : > { %2676 = vmatprep.mubr.f32.mxu0 %v7657_v37  ;;  %4961 = vmatmul.mubr.f32.gmra.mrb[164].mxu1 %v7733_v40  ;;  %9406 = vst [vmem:[#allocation18_spill] sm:$0xff] %v7761_v8  ;;  %v7773_v33 = vsel %vm411_vm0, %v9212_v24, %v2412_v19  ;;  %v7790_v24 = vsel %vm411_vm0, %v2412_v19, %v9213_v51  ;;  %v2317_v51 = vrot.slane %v7681_v63, 7  ;;  %v9412_v19 = vrot.slane %v7738_v1, 7  ;;  %v2527_v40 = vld [vmem:[#allocation7 + $0xd8] sm:$0xff] }
 0x2e0   : > { %4963 = vmatprep.mubr.f32.mxu1 %v7745_v55  ;;  %5541 = vmatpush3.bf16.msra.mxu0 %v5538_v4  ;;  %v2542_v4 = vld [vmem:[#allocation7 + $0x150] sm:$0xff]  ;;  %9408 = vst [vmem:[#allocation20_spill] sm:$0xff] %v7773_v33  ;;  %9409 = vst [vmem:[#allocation21_spill] sm:$0xff] %v7790_v24  ;;  %v7802_v30 = vsel %vm411_vm0, %v9214_v23, %v2414_v16  ;;  %v2545_v23 = vld [vmem:[#allocation7 + $0x168] sm:$0xff]  ;;  %v7992_v55 = vmax.f32 %v7645_v10, 0.0 }
 0x2e1   : > { %5490 = vmatpush1.bf16.msra.mxu1 %v5489_v20  ;;  %5543 = vmatprep.subr.bf16.mxu0 %v5542_v25  ;;  %v2543_v20 = vld [vmem:[#allocation7 + $0x158] sm:$0xff]  ;;  %9410 = vst [vmem:[#allocation22_spill] sm:$0xff] %v7802_v30 }
 0x2e2   : > { %2677 = vmatmul.mubr.f32.gmra.mrb[134].mxu0 %v7751_v43  ;;  %5491 = vmatprep.subr.bf16.mxu1 %v9332_v27  ;;  %v5550_v5 = vpack.c.bf16 %v2543_v20, %v2542_v4  ;;  %v7810_v4 = vsel %vm314_vm1, %v2314_v42, %v9411_v45 }
 0x2e3   : > { %2681 = vmatprep.mubr.f32.mxu0 %v7663_v52  ;;  %4964 = vmatmul.mubr.f32.gmra.mrb[166].mxu1 %v7761_v8  ;;  %v2547_v8 = vld [vmem:[#allocation7 + $0x178] sm:$0xff] }
 0x2e4   : > { %4966 = vmatprep.mubr.f32.mxu1 %v7773_v33  ;;  %5545 = vmatpush3.bf16.msra.mxu0 %v5542_v25  ;;  %v2544_v25 = vld [vmem:[#allocation7 + $0x160] sm:$0xff]  ;;  %v2546_v33 = vld [vmem:[#allocation7 + $0x170] sm:$0xff] }
 0x2e5   : > { %5493 = vmatpush1.bf16.msra.mxu1 %v5492_v50  ;;  %5547 = vmatprep.subr.bf16.mxu0 %v5546_v34  ;;  %v2510_v50 = vld [vmem:[#allocation7 + $0x50] sm:$0xff]  ;;  %v5554_v42 = vpack.c.bf16 %v2545_v23, %v2544_v25  ;;  %v2515_v25 = vld [vmem:[#allocation7 + $0x78] sm:$0xff] }
 0x2e6   : > { %2682 = vmatmul.mubr.f32.gmra.mrb[136].mxu0 %v7781_v35  ;;  %5494 = vmatprep.subr.bf16.mxu1 %v9332_v27  ;;  %v5498_v20 = vpack.c.bf16 %v2511_v62, %v2510_v50  ;;  %v2513_v50 = vld [vmem:[#allocation7 + $0x68] sm:$0xff]  ;;  %v7825_v62 = vmax.f32 %v7623_v59, 0.0  ;;  %v9417_v59 = vrot.slane %v7681_v63, 1 }
 0x2e7   : > { %2686 = vmatprep.mubr.f32.mxu0 %v7665_v9  ;;  %4967 = vmatmul.mubr.f32.gmra.mrb[168].mxu1 %v7790_v24  ;;  %v7814_v24 = vmax.f32 %v7621_v7, 0.0  ;;  %v9415_v7 = vrot.slane %v7755_v48, 1 }
 0x2e8   : > { %4969 = vmatprep.mubr.f32.mxu1 %v7802_v30  ;;  %5549 = vmatpush3.bf16.msra.mxu0 %v5546_v34  ;;  %v7820_v34 = vsel %vm411_vm0, %v2414_v16, %v9412_v19  ;;  %9414 = vst [vmem:[#allocation24_spill] sm:$0xff] %v7825_v62  ;;  %v2418_v19 = vrot.slane %v7795_v2, 1  ;;  %v7840_v30 = vsel %vm314_vm1, %v9417_v59, %v2317_v51  ;;  %v9419_v16 = vrot.slane %v7766_v0, 7 }
 0x2e9   : > { %5496 = vmatpush1.bf16.msra.mxu1 %v5495_v49  ;;  %5551 = vmatprep.subr.bf16.mxu0 %v5550_v5  ;;  %9413 = vst [vmem:[#allocation23_spill] sm:$0xff] %v7820_v34  ;;  %v2512_v49 = vld [vmem:[#allocation7 + $0x60] sm:$0xff]  ;;  %v7832_v45 = vsel %vm411_vm0, %v9415_v7, %v2416_v44  ;;  %v7843_v7 = vmax.f32 %v7625_v54, 0.0  ;;  %v9422_v54 = vrot.slane %v7784_v38, 1 }
 0x2ea   : > { %2687 = vmatmul.mubr.f32.gmra.mrb[138].mxu0 %v7810_v4  ;;  %5497 = vmatprep.subr.bf16.mxu1 %v9332_v27  ;;  %9416 = vst [vmem:[#allocation25_spill] sm:$0xff] %v7832_v45 }
 0x2eb   : > { %2691 = vmatprep.mubr.f32.mxu0 %v7681_v63  ;;  %4970 = vmatmul.mubr.f32.gmra.mrb[170].mxu1 %v7820_v34  ;;  %v5501_v34 = vpack.c.bf16 %v2513_v50, %v2512_v49  ;;  %9418 = vst [vmem:[#allocation26_spill] sm:$0xff] %v7843_v7  ;;  %v7861_v49 = vsel %vm411_vm0, %v9422_v54, %v2418_v19  ;;  %v2420_v50 = vrot.slane %v7825_v62, 1  ;;  %v7873_v54 = vmax.f32 %v7629_v36, 0.0 }
 0x2ec   : > { %4972 = vmatprep.mubr.f32.mxu1 %v7832_v45  ;;  %5553 = vmatpush3.bf16.msra.mxu0 %v5550_v5  ;;  %v7849_v45 = vsel %vm411_vm0, %v2416_v44, %v9419_v16  ;;  %v2514_v5 = vld [vmem:[#allocation7 + $0x70] sm:$0xff]  ;;  %9423 = vst [vmem:[#allocation29_spill] sm:$0xff] %v7861_v49  ;;  %v5558_v16 = vpack.c.bf16 %v2547_v8, %v2546_v33  ;;  %v9426_v44 = vrot.slane %v7795_v2, 7  ;;  %v9233_v8 = vrot.slane %v7825_v62, 7  ;;  %v2517_v33 = vld [vmem:[#allocation7 + $0x88] sm:$0xff] }
 0x2ed   : > { %5499 = vmatpush1.bf16.msra.mxu1 %v5498_v20  ;;  %9420 = vst [vmem:[#allocation27_spill] sm:$0xff] %v7849_v45  ;;  %v7854_v20 = vmax.f32 %v7627_v13, 0.0  ;;  %5555 = vmatprep.subr.bf16.mxu0 %v5554_v42  ;;  %v9424_v13 = vrot.slane %v7686_v53, 7  ;;  %v5504_v23 = vpack.c.bf16 %v2515_v25, %v2514_v5  ;;  %9425 = vst [vmem:[#allocation30_spill] sm:$0xff] %v7873_v54  ;;  %v9429_v36 = vrot.slane %v7814_v24, 1 }
 0x2ee   : > { %2692 = vmatmul.mubr.f32.gmra.mrb[140].mxu0 %v7840_v30  ;;  %5500 = vmatprep.subr.bf16.mxu1 %v9332_v27 }
 0x2ef   : > { %9421 = vst [vmem:[#allocation28_spill] sm:$0xff] %v7854_v20  ;;  %2696 = vmatprep.mubr.f32.mxu0 %v7686_v53  ;;  %4973 = vmatmul.mubr.f32.gmra.mrb[172].mxu1 %v7849_v45  ;;  %v7869_v59 = vsel %vm314_vm1, %v2317_v51, %v9424_v13  ;;  %v2320_v45 = vrot.slane %v7702_v32, 7  ;;  %v2516_v51 = vld [vmem:[#allocation7 + $0x80] sm:$0xff]  ;;  %v2422_v5 = vrot.slane %v7854_v20, 1  ;;  %v7902_v13 = vmax.f32 %v7633_v15, 0.0 }
 0x2f0   : > { %4975 = vmatprep.mubr.f32.mxu1 %v7861_v49  ;;  %5557 = vmatpush3.bf16.msra.mxu0 %v5554_v42  ;;  %v7879_v49 = vsel %vm411_vm0, %v2418_v19, %v9426_v44  ;;  %v7891_v42 = vsel %vm411_vm0, %v9429_v36, %v2420_v50  ;;  %v5507_v44 = vpack.c.bf16 %v2517_v33, %v2516_v51  ;;  %v2518_v19 = vld [vmem:[#allocation7 + $0x90] sm:$0xff]  ;;  %v9435_v15 = vrot.slane %v7843_v7, 1 }
 0x2f1   : > { %5502 = vmatpush1.bf16.msra.mxu1 %v5501_v34  ;;  %9427 = vst [vmem:[#allocation31_spill] sm:$0xff] %v7879_v49  ;;  %v7884_v34 = vmax.f32 %v7631_v26, 0.0  ;;  %9430 = vst [vmem:[#allocation33_spill] sm:$0xff] %v7891_v42  ;;  %5559 = vmatprep.subr.bf16.mxu0 %v5558_v16  ;;  %v9431_v26 = vrot.slane %v7702_v32, 1  ;;  %v7908_v36 = vsel %vm411_vm0, %v2420_v50, %v9233_v8  ;;  %v9439_v50 = vrot.slane %v7854_v20, 7 }
 0x2f2   : > { %2697 = vmatmul.mubr.f32.gmra.mrb[142].mxu0 %v7869_v59  ;;  %5503 = vmatprep.subr.bf16.mxu1 %v9332_v27  ;;  %9432 = vst [vmem:[#allocation34_spill] sm:$0xff] %v7902_v13  ;;  %9433 = vst [vmem:[#allocation35_spill] sm:$0xff] %v7908_v36 }
 0x2f3   : > { %9428 = vst [vmem:[#allocation32_spill] sm:$0xff] %v7884_v34  ;;  %2701 = vmatprep.mubr.f32.mxu0 %v7702_v32  ;;  %4976 = vmatmul.mubr.f32.gmra.mrb[174].mxu1 %v7879_v49  ;;  %v7899_v25 = vsel %vm314_vm1, %v9431_v26, %v2320_v45  ;;  %v7913_v26 = vmax.f32 %v7635_v39, 0.0  ;;  %v2424_v51 = vrot.slane %v7884_v34, 1  ;;  %v9437_v39 = vrot.slane %v7711_v61, 7  ;;  %v2523_v49 = vld [vmem:[#allocation7 + $0xb8] sm:$0xff] }
 0x2f4   : > { %4978 = vmatprep.mubr.f32.mxu1 %v7891_v42  ;;  %5561 = vmatpush3.bf16.msra.mxu0 %v5558_v16  ;;  %v2519_v42 = vld [vmem:[#allocation7 + $0x98] sm:$0xff]  ;;  %v7920_v16 = vsel %vm411_vm0, %v9435_v15, %v2422_v5  ;;  %v7933_v15 = vmax.f32 %v7637_v14, 0.0  ;;  %v9442_v14 = vrot.slane %v7873_v54, 1 }
 0x2f5   : > { %5505 = vmatpush1.bf16.msra.mxu1 %v5504_v23  ;;  %9434 = vst [vmem:[#allocation36_spill] sm:$0xff] %v7913_v26  ;;  %9436 = vst [vmem:[#allocation37_spill] sm:$0xff] %v7920_v16  ;;  %5562 = vmatprep.subr.bf16.mxu0 %v9332_v27  ;;  %v7929_v33 = vsel %vm314_vm1, %v2320_v45, %v9437_v39  ;;  %v5510_v8 = vpack.c.bf16 %v2519_v42, %v2518_v19  ;;  %v2323_v23 = vrot.slane %v7727_v18, 7  ;;  %v2521_v45 = vld [vmem:[#allocation7 + $0xa8] sm:$0xff] }
 0x2f6   : > { %2702 = vmatmul.mubr.f32.gmra.mrb[144].mxu0 %v7899_v25  ;;  %5506 = vmatprep.subr.bf16.mxu1 %v9332_v27  ;;  %9438 = vst [vmem:[#allocation38_spill] sm:$0xff] %v7933_v15  ;;  %v7944_v42 = vmax.f32 %v7639_v28, 0.0  ;;  %v7951_v19 = vsel %vm411_vm0, %v9442_v14, %v2424_v51  ;;  %v9444_v39 = vrot.slane %v7727_v18, 1  ;;  %v9447_v14 = vrot.slane %v7884_v34, 7 }
 0x2f7   : > { %2706 = vmatprep.mubr.f32.mxu0 %v7711_v61  ;;  %4979 = vmatmul.mubr.f32.gmra.mrb[176].mxu1 %v7908_v36  ;;  %v2520_v36 = vld [vmem:[#allocation7 + $0xa0] sm:$0xff]  ;;  %9443 = vst [vmem:[#allocation41_spill] sm:$0xff] %v7951_v19  ;;  %v9456_v10 = vrot.slane %v7933_v15, 1 }
 0x2f8   : > { %4981 = vmatprep.mubr.f32.mxu1 %v7920_v16  ;;  %v7939_v16 = vsel %vm411_vm0, %v2422_v5, %v9439_v50  ;;  %9441 = vst [vmem:[#allocation40_spill] sm:$0xff] %v7944_v42  ;;  %v2426_v50 = vrot.slane %v7913_v26, 1  ;;  %v7959_v28 = vsel %vm314_vm1, %v9444_v39, %v2323_v23  ;;  %v7968_v5 = vsel %vm411_vm0, %v2424_v51, %v9447_v14 }
 0x2f9   : > { %5508 = vmatpush1.bf16.msra.mxu1 %v5507_v44  ;;  %9440 = vst [vmem:[#allocation39_spill] sm:$0xff] %v7939_v16  ;;  %9445 = vst [vmem:[#allocation42_spill] sm:$0xff] %v7959_v28  ;;  %v5513_v44 = vpack.c.bf16 %v2521_v45, %v2520_v36  ;;  %v7973_v39 = vmax.f32 %v7643_v60, 0.0  ;;  %v2428_v45 = vrot.slane %v7944_v42, 1  ;;  %v9452_v14 = vrot.slane %v7738_v1, 7 }
 0x2fa   : > { %2707 = vmatmul.mubr.f32.gmra.mrb[146].mxu0 %v7929_v33  ;;  %5509 = vmatprep.subr.bf16.mxu1 %v9332_v27  ;;  %9448 = vst [vmem:[#allocation44_spill] sm:$0xff] %v7968_v5 }
 0x2fb   : > { %2711 = vmatprep.mubr.f32.mxu0 %v7727_v18  ;;  %4982 = vmatmul.mubr.f32.gmra.mrb[178].mxu1 %v7939_v16  ;;  %v7962_v16 = vmax.f32 %v7641_v57, 0.0  ;;  %9449 = vst [vmem:[#allocation45_spill] sm:$0xff] %v7973_v39  ;;  %v9450_v57 = vrot.slane %v7902_v13, 1  ;;  %v7988_v60 = vsel %vm314_vm1, %v2323_v23, %v9452_v14  ;;  %v2525_v23 = vld [vmem:[#allocation7 + $0xc8] sm:$0xff]  ;;  %v2430_v14 = vrot.slane %v7973_v39, 1 }
 0x2fc   : > { %4984 = vmatprep.mubr.f32.mxu1 %v7951_v19  ;;  %v2522_v19 = vld [vmem:[#allocation7 + $0xb0] sm:$0xff]  ;;  %9453 = vst [vmem:[#allocation47_spill] sm:$0xff] %v7988_v60 }
 0x2fd   : > { %5511 = vmatpush1.bf16.msra.mxu1 %v5510_v8  ;;  %9446 = vst [vmem:[#allocation43_spill] sm:$0xff] %v7962_v16  ;;  %v7980_v36 = vsel %vm411_vm0, %v9450_v57, %v2426_v50  ;;  %v5516_v8 = vpack.c.bf16 %v2523_v49, %v2522_v19  ;;  %v9454_v57 = vrot.slane %v7913_v26, 7  ;;  %v8003_v49 = vmax.f32 %v7647_v58, 0.0 }
 0x2fe   : > { %2712 = vmatmul.mubr.f32.gmra.mrb[148].mxu0 %v7959_v28  ;;  %5512 = vmatprep.subr.bf16.mxu1 %v9332_v27  ;;  %9451 = vst [vmem:[#allocation46_spill] sm:$0xff] %v7980_v36  ;;  %v8010_v19 = vsel %vm411_vm0, %v9456_v10, %v2428_v45  ;;  %v9461_v10 = vrot.slane %v7944_v42, 7 }
 0x2ff   : > { %2716 = vmatprep.mubr.f32.mxu0 %v7738_v1  ;;  %4985 = vmatmul.mubr.f32.gmra.mrb[180].mxu1 %v7968_v5  ;;  %v2326_v5 = vrot.slane %v7755_v48, 7  ;;  %v7998_v51 = vsel %vm411_vm0, %v2426_v50, %v9454_v57  ;;  %9457 = vst [vmem:[#allocation49_spill] sm:$0xff] %v8010_v19  ;;  %v9458_v57 = vrot.slane %v7755_v48, 1 }
 0x300   : > { %4987 = vmatprep.mubr.f32.mxu1 %v7980_v36  ;;  %9455 = vst [vmem:[#allocation48_spill] sm:$0xff] %v7998_v51  ;;  %v2524_v36 = vld [vmem:[#allocation7 + $0xc0] sm:$0xff]  ;;  %v8027_v50 = vsel %vm411_vm0, %v2428_v45, %v9461_v10  ;;  %v9466_v10 = vrot.slane %v7766_v0, 7 }
 0x301   : > { %5514 = vmatpush1.bf16.msra.mxu1 %v5513_v44  ;;  %v8018_v58 = vsel %vm314_vm1, %v9458_v57, %v2326_v5  ;;  %v5519_v44 = vpack.c.bf16 %v2525_v23, %v2524_v36  ;;  %9462 = vst [vmem:[#allocation52_spill] sm:$0xff] %v8027_v50  ;;  %v8032_v57 = vmax.f32 %v7649_v29, 0.0  ;;  %v2432_v23 = vrot.slane %v8003_v49, 1 }
 0x302   : > { %2717 = vmatmul.mubr.f32.gmra.mrb[150].mxu0 %v7988_v60  ;;  %5515 = vmatprep.subr.bf16.mxu1 %v9332_v27  ;;  %9459 = vst [vmem:[#allocation50_spill] sm:$0xff] %v8018_v58  ;;  %v8047_v29 = vsel %vm314_vm1, %v2326_v5, %v9466_v10  ;;  %v9471_v10 = vrot.slane %v7784_v38, 1 }
 0x303   : > { %2721 = vmatprep.mubr.f32.mxu0 %v7755_v48  ;;  %4988 = vmatmul.mubr.f32.gmra.mrb[182].mxu1 %v7998_v51  ;;  %v8021_v51 = vmax.f32 %v7601_v31, 0.0  ;;  %9463 = vst [vmem:[#allocation53_spill] sm:$0xff] %v8032_v57  ;;  %v9464_v31 = vrot.slane %v7962_v16, 1 }
 0x304   : > { %4990 = vmatprep.mubr.f32.mxu1 %v8010_v19  ;;  %v2526_v19 = vld [vmem:[#allocation7 + $0xd0] sm:$0xff] }
 0x305   : > { %5517 = vmatpush1.bf16.msra.mxu1 %v5516_v8  ;;  %9460 = vst [vmem:[#allocation51_spill] sm:$0xff] %v8021_v51  ;;  %v8039_v36 = vsel %vm411_vm0, %v9464_v31, %v2430_v14  ;;  %v5522_v8 = vpack.c.bf16 %v2527_v40, %v2526_v19  ;;  %v9467_v31 = vrot.slane %v7973_v39, 7  ;;  %v9469_v40 = vrot.slane %v7992_v55, 1 }
 0x306   : > { %2722 = vmatmul.mubr.f32.gmra.mrb[152].mxu0 %v8018_v58  ;;  %5518 = vmatprep.subr.bf16.mxu1 %v9332_v27  ;;  %9465 = vst [vmem:[#allocation54_spill] sm:$0xff] %v8039_v36 }
 0x307   : > { %2726 = vmatprep.mubr.f32.mxu0 %v7766_v0  ;;  %4991 = vmatmul.mubr.f32.gmra.mrb[184].mxu1 %v8027_v50  ;;  %v2329_v50 = vrot.slane %v7784_v38, 7  ;;  %v8054_v56 = vsel %vm411_vm0, %v2430_v14, %v9467_v31  ;;  %v8063_v5 = vsel %vm411_vm0, %v9469_v40, %v2432_v23  ;;  %v2434_v14 = vrot.slane %v8021_v51, 1 }
 0x308   : > { %4993 = vmatprep.mubr.f32.mxu1 %v8039_v36  ;;  %9468 = vst [vmem:[#allocation55_spill] sm:$0xff] %v8054_v56  ;;  %v2529_v36 = vld [vmem:[#allocation7 + $0xe8] sm:$0xff]  ;;  %9470 = vst [vmem:[#allocation56_spill] sm:$0xff] %v8063_v5 }
 0x309   : > { %5520 = vmatpush1.bf16.msra.mxu1 %v5519_v44  ;;  %v2528_v44 = vld [vmem:[#allocation7 + $0xe0] sm:$0xff]  ;;  %v8071_v31 = vsel %vm314_vm1, %v9471_v10, %v2329_v50  ;;  %v3531_v10 = vld [vmem:[#allocation7 + $0x408] sm:$0xff] }
 0x30a   : > { %2727 = vmatmul.mubr.f32.gmra.mrb[154].mxu0 %v8047_v29  ;;  %5521 = vmatprep.subr.bf16.mxu1 %v9332_v27  ;;  %9472 = vst [vmem:[#allocation57_spill] sm:$0xff] %v8071_v31  ;;  %v5525_v45 = vpack.c.bf16 %v2529_v36, %v2528_v44  ;;  %v3530_v44 = vld [vmem:[#allocation7 + $0x400] sm:$0xff] }
 0x30b   : > { %2731 = vmatprep.mubr.f32.mxu0 %v7784_v38  ;;  %4994 = vmatmul.mubr.f32.gmra.mrb[186].mxu1 %v8054_v56  ;;  %v9473_v56 = vrot.slane %v8003_v49, 7  ;;  %v5610_v11 = vpack.c.bf16 %v3531_v10, %v3530_v44  ;;  %v3535_v44 = vld [vmem:[#allocation7 + $0x428] sm:$0xff]  ;;  %v9482_v10 = vrot.slane %v7825_v62, 7 }
 0x30c   : > { %4996 = vmatprep.mubr.f32.mxu1 %v8063_v5  ;;  %v2531_v5 = vld [vmem:[#allocation7 + $0xf8] sm:$0xff] }
 0x30d   : > { %5523 = vmatpush1.bf16.msra.mxu1 %v5522_v8  ;;  %v8077_v40 = vsel %vm411_vm0, %v2432_v23, %v9473_v56  ;;  %v9475_v8 = vrot.slane %v8032_v57, 1  ;;  %v9477_v56 = vrot.slane %v7795_v2, 7  ;;  %v5528_v19 = vpack.c.bf16 %v2531_v5, %v2530_v21 }
 0x30e   : > { %2732 = vmatmul.mubr.f32.gmra.mrb[156].mxu0 %v8071_v31  ;;  %9474 = vst [vmem:[#allocation58_spill] sm:$0xff] %v8077_v40  ;;  %5524 = vmatprep.subr.bf16.mxu1 %v9332_v27  ;;  %v2332_v31 = vrot.slane %v7814_v24, 7  ;;  %v9480_v21 = vrot.slane %v7814_v24, 1 }
 0x30f   : > { %2736 = vmatprep.mubr.f32.mxu0 %v7795_v2  ;;  %4997 = vmatmul.mubr.f32.gmra.mrb[188].mxu1 %v8077_v40  ;;  %v8086_v36 = vsel %vm411_vm0, %v9475_v8, %v2434_v14  ;;  %v8092_v23 = vsel %vm314_vm1, %v2329_v50, %v9477_v56  ;;  %v9478_v40 = vrot.slane %v8021_v51, 7  ;;  %v3533_v50 = vld [vmem:[#allocation7 + $0x418] sm:$0xff]  ;;  %v2335_v56 = vrot.slane %v7843_v7, 7 }
 0x310   : > { %9476 = vst [vmem:[#allocation59_spill] sm:$0xff] %v8086_v36  ;;  %4999 = vmatprep.mubr.f32.mxu1 %v8086_v36  ;;  %v8108_v5 = vsel %vm314_vm1, %v9480_v21, %v2332_v31  ;;  %v3537_v21 = vld [vmem:[#allocation7 + $0x438] sm:$0xff]  ;;  %v2353_v36 = vrot.slane %v8032_v57, 7 }
 0x311   : > { %5526 = vmatpush1.bf16.msra.mxu1 %v5525_v45  ;;  %v8099_v8 = vsel %vm411_vm0, %v2434_v14, %v9478_v40  ;;  %v3532_v45 = vld [vmem:[#allocation7 + $0x410] sm:$0xff]  ;;  %9481 = vst [vmem:[#allocation61_spill] sm:$0xff] %v8108_v5  ;;  %v3534_v40 = vld [vmem:[#allocation7 + $0x420] sm:$0xff] }
 0x312   : > { %2737 = vmatmul.mubr.f32.gmra.mrb[158].mxu0 %v8092_v23  ;;  %9479 = vst [vmem:[#allocation60_spill] sm:$0xff] %v8099_v8  ;;  %5527 = vmatprep.subr.bf16.mxu1 %v9332_v27  ;;  %v5614_v14 = vpack.c.bf16 %v3533_v50, %v3532_v45  ;;  %v5618_v45 = vpack.c.bf16 %v3535_v44, %v3534_v40  ;;  %v3536_v50 = vld [vmem:[#allocation7 + $0x430] sm:$0xff]  ;;  %v3538_v40 = vld [vmem:[#allocation7 + $0x440] sm:$0xff]  ;;  %v3539_v44 = vld [vmem:[#allocation7 + $0x448] sm:$0xff] }
 0x313   : > { %2741 = vmatprep.mubr.f32.mxu0 %v7814_v24  ;;  %5000 = vmatmul.mubr.f32.gmra.mrb[190].mxu1 %v8099_v8  ;;  %v9484_v8 = vrot.slane %v7843_v7, 1 }
 0x314   : > { %3111 = vmatprep.mubr.f32.mxu1 %v7655_v17 }
 0x315   : > { %5529 = vmatpush1.bf16.msra.mxu1 %v5528_v19  ;;  %v8117_v19 = vsel %vm314_vm1, %v2332_v31, %v9482_v10  ;;  %v8127_v31 = vsel %vm314_vm1, %v9484_v8, %v2335_v56  ;;  %v2338_v8 = vrot.slane %v7873_v54, 7 }
 0x316   : > { %2742 = vmatmul.mubr.f32.gmra.mrb[160].mxu0 %v8108_v5  ;;  %5611 = vmatprep.subr.bf16.mxu1 %v5610_v11  ;;  %9483 = vst [vmem:[#allocation62_spill] sm:$0xff] %v8117_v19  ;;  %9485 = vst [vmem:[#allocation63_spill] sm:$0xff] %v8127_v31 }
 0x317   : > { %2746 = vmatprep.mubr.f32.mxu0 %v7825_v62 }
 0x318   : > { %3112 = vmatmul.mubr.f32.vlgmr.msra.gmra.mrb[192].mxu1 %v7724_v41 }
 0x319   : > { %3116 = vmatprep.mubr.f32.mxu1 %v7657_v37  ;;  %5613 = vmatpush3.bf16.msra.mxu1 %v5610_v11  ;;  %v5622_v11 = vpack.c.bf16 %v3537_v21, %v3536_v50  ;;  %v3540_v50 = vld [vmem:[#allocation7 + $0x450] sm:$0xff]  ;;  %v3541_v21 = vld [vmem:[#allocation7 + $0x458] sm:$0xff] }
 0x31a   : > { %2747 = vmatmul.mubr.f32.gmra.mrb[162].mxu0 %v8117_v19  ;;  %5615 = vmatprep.subr.bf16.mxu1 %v5614_v14 }
 0x31b   : > { %2751 = vmatprep.mubr.f32.mxu0 %v7843_v7 }
 0x31c   : > { %3117 = vmatmul.mubr.f32.gmra.mrb[194].mxu1 %v7751_v43 }
 0x31d   : > { %3121 = vmatprep.mubr.f32.mxu1 %v7661_v12  ;;  %5617 = vmatpush3.bf16.msra.mxu1 %v5614_v14  ;;  %v9486_v12 = vrot.slane %v7854_v20, 7  ;;  %v5626_v14 = vpack.c.bf16 %v3539_v44, %v3538_v40  ;;  %v3543_v40 = vld [vmem:[#allocation7 + $0x468] sm:$0xff] }
 0x31e   : > { %2752 = vmatmul.mubr.f32.gmra.mrb[164].mxu0 %v8127_v31  ;;  %5619 = vmatprep.subr.bf16.mxu1 %v5618_v45 }
 0x31f   : > { %2756 = vmatprep.mubr.f32.mxu0 %v7854_v20  ;;  %v8136_v10 = vsel %vm314_vm1, %v2335_v56, %v9486_v12  ;;  %v5630_v56 = vpack.c.bf16 %v3541_v21, %v3540_v50  ;;  %v2341_v12 = vrot.slane %v7902_v13, 7  ;;  %v3544_v50 = vld [vmem:[#allocation7 + $0x470] sm:$0xff]  ;;  %v3545_v21 = vld [vmem:[#allocation7 + $0x478] sm:$0xff] }
 0x320   : > { %3122 = vmatmul.mubr.f32.gmra.mrb[196].mxu1 %v7676_v22  ;;  %9487 = vst [vmem:[#allocation64_spill] sm:$0xff] %v8136_v10 }
 0x321   : > { %3126 = vmatprep.mubr.f32.mxu1 %v7651_v6  ;;  %5621 = vmatpush3.bf16.msra.mxu1 %v5618_v45  ;;  %v9488_v6 = vrot.slane %v7873_v54, 1  ;;  %v3542_v45 = vld [vmem:[#allocation7 + $0x460] sm:$0xff] }
 0x322   : > { %2757 = vmatmul.mubr.f32.gmra.mrb[166].mxu0 %v8136_v10  ;;  %5623 = vmatprep.subr.bf16.mxu1 %v5622_v11 }
 0x323   : > { %2761 = vmatprep.mubr.f32.mxu0 %v7873_v54  ;;  %v8146_v22 = vsel %vm314_vm1, %v9488_v6, %v2338_v8  ;;  %v9492_v6 = vrot.slane %v7902_v13, 1 }
 0x324   : > { %3127 = vmatmul.mubr.f32.gmra.mrb[198].mxu1 %v7698_v46  ;;  %9489 = vst [vmem:[#allocation65_spill] sm:$0xff] %v8146_v22  ;;  %v9490_v46 = vrot.slane %v7884_v34, 7 }
 0x325   : > { %3131 = vmatprep.mubr.f32.mxu1 %v7655_v17  ;;  %5625 = vmatpush3.bf16.msra.mxu1 %v5622_v11  ;;  %v5634_v11 = vpack.c.bf16 %v3543_v40, %v3542_v45  ;;  %v9494_v45 = vrot.slane %v7913_v26, 7 }
 0x326   : > { %2762 = vmatmul.mubr.f32.gmra.mrb[168].mxu0 %v8146_v22  ;;  %5627 = vmatprep.subr.bf16.mxu1 %v5626_v14  ;;  %v8155_v44 = vsel %vm314_vm1, %v2338_v8, %v9490_v46  ;;  %v8165_v8 = vsel %vm314_vm1, %v9492_v6, %v2341_v12  ;;  %v2344_v46 = vrot.slane %v7933_v15, 7  ;;  %v9500_v6 = vrot.slane %v7962_v16, 1 }
 0x327   : > { %2766 = vmatprep.mubr.f32.mxu0 %v7884_v34  ;;  %9491 = vst [vmem:[#allocation66_spill] sm:$0xff] %v8155_v44  ;;  %9493 = vst [vmem:[#allocation67_spill] sm:$0xff] %v8165_v8  ;;  %v8174_v40 = vsel %vm314_vm1, %v2341_v12, %v9494_v45  ;;  %v9498_v12 = vrot.slane %v7944_v42, 7  ;;  %v9502_v45 = vrot.slane %v7973_v39, 7 }
 0x328   : > { %3132 = vmatmul.mubr.f32.gmra.mrb[200].mxu1 %v7724_v41  ;;  %9495 = vst [vmem:[#allocation68_spill] sm:$0xff] %v8174_v40 }
 0x329   : > { %3136 = vmatprep.mubr.f32.mxu1 %v7657_v37  ;;  %5629 = vmatpush3.bf16.msra.mxu1 %v5626_v14  ;;  %v5638_v14 = vpack.c.bf16 %v3545_v21, %v3544_v50  ;;  %v2347_v21 = vrot.slane %v7962_v16, 7 }
 0x32a   : > { %2767 = vmatmul.mubr.f32.gmra.mrb[170].mxu0 %v8155_v44  ;;  %5631 = vmatprep.subr.bf16.mxu1 %v5630_v56 }
 0x32b   : > { %2771 = vmatprep.mubr.f32.mxu0 %v7902_v13 }
 0x32c   : > { %3137 = vmatmul.mubr.f32.gmra.mrb[202].mxu1 %v7751_v43 }
 0x32d   : > { %3141 = vmatprep.mubr.f32.mxu1 %v7663_v52  ;;  %5633 = vmatpush3.bf16.msra.mxu1 %v5630_v56  ;;  %v9496_v56 = vrot.slane %v7933_v15, 1 }
 0x32e   : > { %2772 = vmatmul.mubr.f32.gmra.mrb[172].mxu0 %v8165_v8  ;;  %5635 = vmatprep.subr.bf16.mxu1 %v5634_v11 }
 0x32f   : > { %2776 = vmatprep.mubr.f32.mxu0 %v7913_v26  ;;  %v8184_v50 = vsel %vm314_vm1, %v9496_v56, %v2344_v46  ;;  %v2350_v56 = vrot.slane %v7992_v55, 7 }
 0x330   : > { %3142 = vmatmul.mubr.f32.gmra.mrb[204].mxu1 %v7781_v35  ;;  %9497 = vst [vmem:[#allocation69_spill] sm:$0xff] %v8184_v50 }
 0x331   : > { %3146 = vmatprep.mubr.f32.mxu1 %v7665_v9  ;;  %5637 = vmatpush3.bf16.msra.mxu1 %v5634_v11  ;;  %v8193_v11 = vsel %vm314_vm1, %v2344_v46, %v9498_v12  ;;  %v8212_v46 = vsel %vm314_vm1, %v2347_v21, %v9502_v45  ;;  %v9503_v12 = vrot.slane %v7992_v55, 1 }
 0x332   : > { %2777 = vmatmul.mubr.f32.gmra.mrb[174].mxu0 %v8174_v40  ;;  %5639 = vmatprep.subr.bf16.mxu1 %v5638_v14  ;;  %9499 = vst [vmem:[#allocation70_spill] sm:$0xff] %v8193_v11 }
 0x333   : > { %2781 = vmatprep.mubr.f32.mxu0 %v7933_v15 }
 0x334   : > { %3147 = vmatmul.mubr.f32.gmra.mrb[206].mxu1 %v7810_v4 }
 0x335   : > { %3151 = vmatprep.mubr.f32.mxu1 %v7681_v63  ;;  %5641 = vmatpush3.bf16.msra.mxu1 %v5638_v14  ;;  %v8203_v14 = vsel %vm314_vm1, %v9500_v6, %v2347_v21  ;;  %v8222_v6 = vsel %vm314_vm1, %v9503_v12, %v2350_v56  ;;  %v9504_v21 = vrot.slane %v8003_v49, 7  ;;  %v9505_v12 = vrot.slane %v8032_v57, 1 }
 0x336   : > { %2782 = vmatmul.mubr.f32.gmra.mrb[176].mxu0 %v8184_v50  ;;  %9501 = vst [vmem:[#allocation71_spill] sm:$0xff] %v8203_v14 }
 0x337   : > { %2786 = vmatprep.mubr.f32.mxu0 %v7944_v42  ;;  %v8231_v45 = vsel %vm314_vm1, %v2350_v56, %v9504_v21  ;;  %v3498_v56 = vld [vmem:[#allocation7 + $0x300] sm:$0xff]  ;;  %v3499_v21 = vld [vmem:[#allocation7 + $0x308] sm:$0xff] }
 0x338   : > { %3152 = vmatmul.mubr.f32.gmra.mrb[208].mxu1 %v7840_v30 }
 0x339   : > { %3156 = vmatprep.mubr.f32.mxu1 %v7686_v53 }
 0x33a   : > { %2787 = vmatmul.mubr.f32.gmra.mrb[178].mxu0 %v8193_v11 }
 0x33b   : > { %2791 = vmatprep.mubr.f32.mxu0 %v7962_v16 }
 0x33c   : > { %3157 = vmatmul.mubr.f32.gmra.mrb[210].mxu1 %v7869_v59 }
 0x33d   : > { %3161 = vmatprep.mubr.f32.mxu1 %v7702_v32 }
 0x33e   : > { %2792 = vmatmul.mubr.f32.gmra.mrb[180].mxu0 %v8203_v14 }
 0x33f   : > { %2796 = vmatprep.mubr.f32.mxu0 %v7973_v39 }
 0x340   : > { %3162 = vmatmul.mubr.f32.gmra.mrb[212].mxu1 %v7899_v25 }
 0x341   : > { %3166 = vmatprep.mubr.f32.mxu1 %v7711_v61 }
 0x342   : > { %2797 = vmatmul.mubr.f32.gmra.mrb[182].mxu0 %v8212_v46 }
 0x343   : > { %2801 = vmatprep.mubr.f32.mxu0 %v7992_v55 }
 0x344   : > { %3167 = vmatmul.mubr.f32.gmra.mrb[214].mxu1 %v7929_v33 }
 0x345   : > { %3171 = vmatprep.mubr.f32.mxu1 %v7727_v18 }
 0x346   : > { %2802 = vmatmul.mubr.f32.gmra.mrb[184].mxu0 %v8222_v6 }
 0x347   : > { %2806 = vmatprep.mubr.f32.mxu0 %v8003_v49 }
 0x348   : > { %3172 = vmatmul.mubr.f32.gmra.mrb[216].mxu1 %v7959_v28  ;;  %v8241_v28 = vsel %vm314_vm1, %v9505_v12, %v2353_v36  ;;  %v5563_v12 = vpack.c.bf16 %v3499_v21, %v3498_v56  ;;  %v9511_v56 = vld [vmem:[#allocation12_spill] sm:$0xff] }
 0x349   : > { %3176 = vmatprep.mubr.f32.mxu1 %v7738_v1  ;;  %9506 = vst [vmem:[#allocation72_spill] sm:$0xff] %v8241_v28  ;;  %v9507_v1 = vrot.slane %v8021_v51, 7 }
 0x34a   : > { %2807 = vmatmul.mubr.f32.gmra.mrb[186].mxu0 %v8231_v45 }
 0x34b   : > { %2811 = vmatprep.mubr.f32.mxu0 %v8032_v57  ;;  %v3501_v57 = vld [vmem:[#allocation7 + $0x318] sm:$0xff] }
 0x34c   : > { %3177 = vmatmul.mubr.f32.gmra.mrb[218].mxu1 %v7988_v60  ;;  %v8250_v60 = vsel %vm314_vm1, %v2353_v36, %v9507_v1  ;;  %v3502_v1 = vld [vmem:[#allocation7 + $0x320] sm:$0xff]  ;;  %v3503_v36 = vld [vmem:[#allocation7 + $0x328] sm:$0xff] }
 0x34d   : > { %3181 = vmatprep.mubr.f32.mxu1 %v7755_v48  ;;  %9508 = vst [vmem:[#allocation73_spill] sm:$0xff] %v8250_v60  ;;  %v5569_v21 = vpack.c.bf16 %v3503_v36, %v3502_v1  ;;  %v3507_v1 = vld [vmem:[#allocation7 + $0x348] sm:$0xff]  ;;  %v9513_v36 = vld [vmem:[#allocation15_spill] sm:$0xff] }
 0x34e   : > { %2812 = vmatmul.mubr.f32.gmra.mrb[188].mxu0 %v8241_v28  ;;  %v3500_v28 = vld [vmem:[#allocation7 + $0x310] sm:$0xff] }
 0x34f   : > { %2816 = vmatprep.mubr.f32.mxu0 %v8021_v51  ;;  %v5566_v51 = vpack.c.bf16 %v3501_v57, %v3500_v28  ;;  %v3505_v28 = vld [vmem:[#allocation7 + $0x338] sm:$0xff]  ;;  %v9512_v57 = vld [vmem:[#allocation14_spill] sm:$0xff] }
 0x350   : > { %3182 = vmatmul.mubr.f32.gmra.mrb[220].mxu1 %v8018_v58  ;;  %v9509_v58 = vld [vmem:[#allocation13_spill] sm:$0xff] }
 0x351   : > { %3186 = vmatprep.mubr.f32.mxu1 %v7766_v0  ;;  %v9510_v0 = vld [vmem:[#allocation57_spill] sm:$0xff] }
 0x352   : > { %2817 = vmatmul.mubr.f32.gmra.mrb[190].mxu0 %v8250_v60 }
 0x353   : > { %5034 = vmatprep.mubr.f32.mxu0 %v7691_v3 }
 0x354   : > { %3187 = vmatmul.mubr.f32.gmra.mrb[222].mxu1 %v8047_v29 }
 0x355   : > { %3191 = vmatprep.mubr.f32.mxu1 %v7784_v38 }
 0x356   : > { %5035 = vmatmul.mubr.f32.vlgmr.msra.gmra.mrb[192].mxu0 %v7706_v47 }
 0x357   : > { %5037 = vmatprep.mubr.f32.mxu0 %v9509_v58  ;;  %5564 = vmatpush1.bf16.msra.mxu0 %v5563_v12  ;;  %v3504_v58 = vld [vmem:[#allocation7 + $0x330] sm:$0xff] }
 0x358   : > { %3192 = vmatmul.mubr.f32.gmra.mrb[224].mxu1 %v9510_v0  ;;  %5565 = vmatprep.subr.bf16.mxu0 %v9332_v27  ;;  %v5572_v12 = vpack.c.bf16 %v3505_v28, %v3504_v58  ;;  %v3509_v58 = vld [vmem:[#allocation7 + $0x358] sm:$0xff]  ;;  %v9515_v28 = vld [vmem:[#allocation18_spill] sm:$0xff] }
 0x359   : > { %3196 = vmatprep.mubr.f32.mxu1 %v7795_v2 }
 0x35a   : > { %5038 = vmatmul.mubr.f32.gmra.mrb[194].mxu0 %v9511_v56  ;;  %v9514_v56 = vld [vmem:[#allocation17_spill] sm:$0xff] }
 0x35b   : > { %5040 = vmatprep.mubr.f32.mxu0 %v7691_v3  ;;  %5567 = vmatpush1.bf16.msra.mxu0 %v5566_v51  ;;  %v3506_v51 = vld [vmem:[#allocation7 + $0x340] sm:$0xff] }
 0x35c   : > { %3197 = vmatmul.mubr.f32.gmra.mrb[226].mxu1 %v8092_v23  ;;  %5568 = vmatprep.subr.bf16.mxu0 %v9332_v27  ;;  %v5575_v60 = vpack.c.bf16 %v3507_v1, %v3506_v51  ;;  %v3511_v51 = vld [vmem:[#allocation7 + $0x368] sm:$0xff] }
 0x35d   : > { %3201 = vmatprep.mubr.f32.mxu1 %v7814_v24  ;;  %v9517_v1 = vld [vmem:[#allocation21_spill] sm:$0xff] }
 0x35e   : > { %5041 = vmatmul.mubr.f32.gmra.mrb[196].mxu0 %v7706_v47 }
 0x35f   : > { %5043 = vmatprep.mubr.f32.mxu0 %v9512_v57  ;;  %5570 = vmatpush1.bf16.msra.mxu0 %v5569_v21  ;;  %v3508_v21 = vld [vmem:[#allocation7 + $0x350] sm:$0xff] }
 0x360   : > { %3202 = vmatmul.mubr.f32.gmra.mrb[228].mxu1 %v8108_v5  ;;  %5571 = vmatprep.subr.bf16.mxu0 %v9332_v27  ;;  %v9516_v5 = vld [vmem:[#allocation20_spill] sm:$0xff] }
 0x361   : > { %3206 = vmatprep.mubr.f32.mxu1 %v7825_v62  ;;  %v5578_v62 = vpack.c.bf16 %v3509_v58, %v3508_v21  ;;  %v3513_v21 = vld [vmem:[#allocation7 + $0x378] sm:$0xff] }
 0x362   : > { %5044 = vmatmul.mubr.f32.gmra.mrb[198].mxu0 %v9513_v36  ;;  %v9519_v58 = vld [vmem:[#allocation23_spill] sm:$0xff] }
 0x363   : > { %5046 = vmatprep.mubr.f32.mxu0 %v9514_v56  ;;  %5573 = vmatpush1.bf16.msra.mxu0 %v5572_v12  ;;  %v3510_v12 = vld [vmem:[#allocation7 + $0x360] sm:$0xff] }
 0x364   : > { %3207 = vmatmul.mubr.f32.gmra.mrb[230].mxu1 %v8117_v19  ;;  %5574 = vmatprep.subr.bf16.mxu0 %v9332_v27  ;;  %v9518_v19 = vld [vmem:[#allocation22_spill] sm:$0xff] }
 0x365   : > { %3211 = vmatprep.mubr.f32.mxu1 %v7843_v7  ;;  %v5581_v7 = vpack.c.bf16 %v3511_v51, %v3510_v12  ;;  %v3515_v12 = vld [vmem:[#allocation7 + $0x388] sm:$0xff]  ;;  %v9521_v51 = vld [vmem:[#allocation27_spill] sm:$0xff] }
 0x366   : > { %5047 = vmatmul.mubr.f32.gmra.mrb[200].mxu0 %v9515_v28 }
 0x367   : > { %5049 = vmatprep.mubr.f32.mxu0 %v9516_v5  ;;  %5576 = vmatpush1.bf16.msra.mxu0 %v5575_v60  ;;  %v3512_v60 = vld [vmem:[#allocation7 + $0x370] sm:$0xff] }
 0x368   : > { %3212 = vmatmul.mubr.f32.gmra.mrb[232].mxu1 %v8127_v31  ;;  %5577 = vmatprep.subr.bf16.mxu0 %v9332_v27  ;;  %v9520_v31 = vld [vmem:[#allocation25_spill] sm:$0xff] }
 0x369   : > { %3216 = vmatprep.mubr.f32.mxu1 %v7854_v20  ;;  %v5584_v20 = vpack.c.bf16 %v3513_v21, %v3512_v60  ;;  %v3517_v60 = vld [vmem:[#allocation7 + $0x398] sm:$0xff] }
 0x36a   : > { %5050 = vmatmul.mubr.f32.gmra.mrb[202].mxu0 %v9517_v1  ;;  %v9523_v21 = vld [vmem:[#allocation31_spill] sm:$0xff] }
 0x36b   : > { %5052 = vmatprep.mubr.f32.mxu0 %v9518_v19  ;;  %5579 = vmatpush1.bf16.msra.mxu0 %v5578_v62  ;;  %v3514_v62 = vld [vmem:[#allocation7 + $0x380] sm:$0xff] }
 0x36c   : > { %3217 = vmatmul.mubr.f32.gmra.mrb[234].mxu1 %v8136_v10  ;;  %5580 = vmatprep.subr.bf16.mxu0 %v9332_v27  ;;  %v9522_v10 = vld [vmem:[#allocation29_spill] sm:$0xff] }
 0x36d   : > { %3221 = vmatprep.mubr.f32.mxu1 %v7873_v54  ;;  %v5587_v54 = vpack.c.bf16 %v3515_v12, %v3514_v62  ;;  %v3519_v62 = vld [vmem:[#allocation7 + $0x3a8] sm:$0xff]  ;;  %v9525_v12 = vld [vmem:[#allocation35_spill] sm:$0xff] }
 0x36e   : > { %5053 = vmatmul.mubr.f32.gmra.mrb[204].mxu0 %v9519_v58 }
 0x36f   : > { %5055 = vmatprep.mubr.f32.mxu0 %v9520_v31  ;;  %5582 = vmatpush1.bf16.msra.mxu0 %v5581_v7  ;;  %v3516_v7 = vld [vmem:[#allocation7 + $0x390] sm:$0xff] }
 0x370   : > { %3222 = vmatmul.mubr.f32.gmra.mrb[236].mxu1 %v8146_v22  ;;  %5583 = vmatprep.subr.bf16.mxu0 %v9332_v27  ;;  %v9524_v22 = vld [vmem:[#allocation33_spill] sm:$0xff] }
 0x371   : > { %3226 = vmatprep.mubr.f32.mxu1 %v7884_v34  ;;  %v5590_v34 = vpack.c.bf16 %v3517_v60, %v3516_v7  ;;  %v3521_v7 = vld [vmem:[#allocation7 + $0x3b8] sm:$0xff] }
 0x372   : > { %5056 = vmatmul.mubr.f32.gmra.mrb[206].mxu0 %v9521_v51  ;;  %v9527_v60 = vld [vmem:[#allocation39_spill] sm:$0xff] }
 0x373   : > { %5058 = vmatprep.mubr.f32.mxu0 %v9522_v10  ;;  %5585 = vmatpush1.bf16.msra.mxu0 %v5584_v20  ;;  %v3518_v20 = vld [vmem:[#allocation7 + $0x3a0] sm:$0xff] }
 0x374   : > { %3227 = vmatmul.mubr.f32.gmra.mrb[238].mxu1 %v8155_v44  ;;  %5586 = vmatprep.subr.bf16.mxu0 %v9332_v27  ;;  %v9526_v44 = vld [vmem:[#allocation37_spill] sm:$0xff] }
 0x375   : > { %3231 = vmatprep.mubr.f32.mxu1 %v7902_v13  ;;  %v5593_v13 = vpack.c.bf16 %v3519_v62, %v3518_v20  ;;  %v3523_v20 = vld [vmem:[#allocation7 + $0x3c8] sm:$0xff]  ;;  %v9529_v62 = vld [vmem:[#allocation44_spill] sm:$0xff] }
 0x376   : > { %5059 = vmatmul.mubr.f32.gmra.mrb[208].mxu0 %v9523_v21 }
 0x377   : > { %5061 = vmatprep.mubr.f32.mxu0 %v9524_v22  ;;  %5588 = vmatpush1.bf16.msra.mxu0 %v5587_v54  ;;  %v3520_v54 = vld [vmem:[#allocation7 + $0x3b0] sm:$0xff] }
 0x378   : > { %3232 = vmatmul.mubr.f32.gmra.mrb[240].mxu1 %v8165_v8  ;;  %5589 = vmatprep.subr.bf16.mxu0 %v9332_v27  ;;  %v9528_v8 = vld [vmem:[#allocation41_spill] sm:$0xff] }
 0x379   : > { %3236 = vmatprep.mubr.f32.mxu1 %v7913_v26  ;;  %v5596_v26 = vpack.c.bf16 %v3521_v7, %v3520_v54  ;;  %v3525_v54 = vld [vmem:[#allocation7 + $0x3d8] sm:$0xff]  ;;  %v9531_v7 = vld [vmem:[#allocation48_spill] sm:$0xff] }
 0x37a   : > { %5062 = vmatmul.mubr.f32.gmra.mrb[210].mxu0 %v9525_v12 }
 0x37b   : > { %5064 = vmatprep.mubr.f32.mxu0 %v9526_v44  ;;  %5591 = vmatpush1.bf16.msra.mxu0 %v5590_v34  ;;  %v3522_v34 = vld [vmem:[#allocation7 + $0x3c0] sm:$0xff] }
 0x37c   : > { %3237 = vmatmul.mubr.f32.gmra.mrb[242].mxu1 %v8174_v40  ;;  %5592 = vmatprep.subr.bf16.mxu0 %v9332_v27  ;;  %v9530_v40 = vld [vmem:[#allocation46_spill] sm:$0xff] }
 0x37d   : > { %3241 = vmatprep.mubr.f32.mxu1 %v7933_v15  ;;  %v5599_v15 = vpack.c.bf16 %v3523_v20, %v3522_v34  ;;  %v3527_v34 = vld [vmem:[#allocation7 + $0x3e8] sm:$0xff]  ;;  %v9533_v20 = vld [vmem:[#allocation52_spill] sm:$0xff] }
 0x37e   : > { %5065 = vmatmul.mubr.f32.gmra.mrb[212].mxu0 %v9527_v60 }
 0x37f   : > { %5067 = vmatprep.mubr.f32.mxu0 %v9528_v8  ;;  %5594 = vmatpush1.bf16.msra.mxu0 %v5593_v13  ;;  %v3524_v13 = vld [vmem:[#allocation7 + $0x3d0] sm:$0xff] }
 0x380   : > { %3242 = vmatmul.mubr.f32.gmra.mrb[244].mxu1 %v8184_v50  ;;  %5595 = vmatprep.subr.bf16.mxu0 %v9332_v27  ;;  %v9532_v50 = vld [vmem:[#allocation49_spill] sm:$0xff] }
 0x381   : > { %3246 = vmatprep.mubr.f32.mxu1 %v7944_v42  ;;  %v5602_v42 = vpack.c.bf16 %v3525_v54, %v3524_v13  ;;  %v3529_v13 = vld [vmem:[#allocation7 + $0x3f8] sm:$0xff] }
 0x382   : > { %5068 = vmatmul.mubr.f32.gmra.mrb[214].mxu0 %v9529_v62  ;;  %v9535_v54 = vld [vmem:[#allocation55_spill] sm:$0xff] }
 0x383   : > { %5070 = vmatprep.mubr.f32.mxu0 %v9530_v40  ;;  %5597 = vmatpush1.bf16.msra.mxu0 %v5596_v26  ;;  %v3526_v26 = vld [vmem:[#allocation7 + $0x3e0] sm:$0xff] }
 0x384   : > { %3247 = vmatmul.mubr.f32.gmra.mrb[246].mxu1 %v8193_v11  ;;  %5598 = vmatprep.subr.bf16.mxu0 %v9332_v27  ;;  %v9534_v11 = vld [vmem:[#allocation54_spill] sm:$0xff] }
 0x385   : > { %3251 = vmatprep.mubr.f32.mxu1 %v7962_v16  ;;  %v5605_v16 = vpack.c.bf16 %v3527_v34, %v3526_v26 }
 0x386   : > { %5071 = vmatmul.mubr.f32.gmra.mrb[216].mxu0 %v9531_v7 }
 0x387   : > { %5073 = vmatprep.mubr.f32.mxu0 %v9532_v50  ;;  %5600 = vmatpush1.bf16.msra.mxu0 %v5599_v15  ;;  %v3528_v15 = vld [vmem:[#allocation7 + $0x3f0] sm:$0xff] }
 0x388   : > { %3252 = vmatmul.mubr.f32.gmra.mrb[248].mxu1 %v8203_v14  ;;  %5601 = vmatprep.subr.bf16.mxu0 %v9332_v27  ;;  %v9536_v14 = vld [vmem:[#allocation56_spill] sm:$0xff] }
 0x389   : > { %3256 = vmatprep.mubr.f32.mxu1 %v7973_v39  ;;  %v5608_v39 = vpack.c.bf16 %v3529_v13, %v3528_v15 }
 0x38a   : > { %5074 = vmatmul.mubr.f32.gmra.mrb[218].mxu0 %v9533_v20 }
 0x38b   : > { %5076 = vmatprep.mubr.f32.mxu0 %v9534_v11  ;;  %5603 = vmatpush1.bf16.msra.mxu0 %v5602_v42  ;;  %v9537_v42 = vld [vmem:[#allocation58_spill] sm:$0xff] }
 0x38c   : > { %3257 = vmatmul.mubr.f32.gmra.mrb[250].mxu1 %v8212_v46  ;;  %5604 = vmatprep.subr.bf16.mxu0 %v9332_v27 }
 0x38d   : > { %3261 = vmatprep.mubr.f32.mxu1 %v7992_v55 }
 0x38e   : > { %5077 = vmatmul.mubr.f32.gmra.mrb[220].mxu0 %v9535_v54 }
 0x38f   : > { %5079 = vmatprep.mubr.f32.mxu0 %v9536_v14  ;;  %5606 = vmatpush1.bf16.msra.mxu0 %v5605_v16 }
 0x390   : > { %3262 = vmatmul.mubr.f32.gmra.mrb[252].mxu1 %v8222_v6  ;;  %5607 = vmatprep.subr.bf16.mxu0 %v9332_v27 }
 0x391   : > { %3266 = vmatprep.mubr.f32.mxu1 %v8003_v49 }
 0x392   : > { %5080 = vmatmul.mubr.f32.gmra.mrb[222].mxu0 %v9537_v42 }
 0x393   : > { %5609 = vmatpush1.bf16.msra.mxu0 %v5608_v39  ;;  %3610 = vmatprep.mubr.f32.mxu0 %v7655_v17  ;;  %v9538_v39 = vld [vmem:[#allocation42_spill] sm:$0xff] }
 0x394   : > { %3267 = vmatmul.mubr.f32.gmra.mrb[254].mxu1 %v8231_v45 }
 0x395   : > { %5114 = vmatprep.mubr.f32.mxu1 %v7691_v3 }
 0x396   : > { %3611 = vmatmul.mubr.f32.vlgmr.msra.gmra.mrb[224].mxu0 %v7724_v41 }
 0x397   : > { %3615 = vmatprep.mubr.f32.mxu0 %v7657_v37 }
 0x398   : > { %5115 = vmatmul.mubr.f32.vlgmr.msra.gmra.mrb[0].mxu1 %v7706_v47 }
 0x399   : > { %5117 = vmatprep.mubr.f32.mxu1 %v9512_v57 }
 0x39a   : > { %3616 = vmatmul.mubr.f32.gmra.mrb[226].mxu0 %v7751_v43 }
 0x39b   : > { %3620 = vmatprep.mubr.f32.mxu0 %v7663_v52 }
 0x39c   : > { %5118 = vmatmul.mubr.f32.gmra.mrb[2].mxu1 %v9513_v36 }
 0x39d   : > { %5120 = vmatprep.mubr.f32.mxu1 %v9514_v56 }
 0x39e   : > { %3621 = vmatmul.mubr.f32.gmra.mrb[228].mxu0 %v7781_v35 }
 0x39f   : > { %3625 = vmatprep.mubr.f32.mxu0 %v7665_v9 }
 0x3a0   : > { %5121 = vmatmul.mubr.f32.gmra.mrb[4].mxu1 %v9515_v28 }
 0x3a1   : > { %5123 = vmatprep.mubr.f32.mxu1 %v9516_v5 }
 0x3a2   : > { %3626 = vmatmul.mubr.f32.gmra.mrb[230].mxu0 %v7810_v4 }
 0x3a3   : > { %3630 = vmatprep.mubr.f32.mxu0 %v7681_v63 }
 0x3a4   : > { %5124 = vmatmul.mubr.f32.gmra.mrb[6].mxu1 %v9517_v1 }
 0x3a5   : > { %5126 = vmatprep.mubr.f32.mxu1 %v9518_v19  ;;  %v9539_v19 = vld [vmem:[#allocation16_spill] sm:$0xff] }
 0x3a6   : > { %3631 = vmatmul.mubr.f32.gmra.mrb[232].mxu0 %v7840_v30 }
 0x3a7   : > { %3635 = vmatprep.mubr.f32.mxu0 %v7686_v53 }
 0x3a8   : > { %5127 = vmatmul.mubr.f32.gmra.mrb[8].mxu1 %v9519_v58  ;;  %v9542_v58 = vld [vmem:[#allocation19_spill] sm:$0xff] }
 0x3a9   : > { %5129 = vmatprep.mubr.f32.mxu1 %v9520_v31  ;;  %v2663_v27 = vpop.f32.mrb[128].mxu0 }
 0x3aa   : > { %v2665_v17 = vpop.f32.mrb[129].mxu0  ;;  %v4956_v37 = vpop.f32.mrb[160].mxu1  ;;  %3636 = vmatmul.mubr.f32.gmra.mrb[234].mxu0 %v7869_v59 }
 0x3ab   : > { %v2888_v52 = vpop.f32.mrb[161].mxu1  ;;  %3640 = vmatprep.mubr.f32.mxu0 %v7702_v32 }
 0x3ac   : > { %v8357_v9 = vadd.f32 %v2888_v52, %v2663_v27  ;;  %5130 = vmatmul.mubr.f32.gmra.mrb[10].mxu1 %v9521_v51  ;;  %v9544_v27 = vld [vmem:[#allocation61_spill] sm:$0xff] }
 0x3ad   : > { %5132 = vmatprep.mubr.f32.mxu1 %v9522_v10  ;;  %v2668_v63 = vpop.f32.mrb[130].mxu0 }
 0x3ae   : > { %v8361_v53 = vadd.f32 %v4956_v37, %v2668_v63  ;;  %v2670_v3 = vpop.f32.mrb[131].mxu0  ;;  %v4959_v47 = vpop.f32.mrb[162].mxu1  ;;  %3641 = vmatmul.mubr.f32.gmra.mrb[236].mxu0 %v7899_v25  ;;  %v9545_v37 = vld [vmem:[#allocation24_spill] sm:$0xff] }
 0x3af   : > { %v2898_v41 = vpop.f32.mrb[163].mxu1  ;;  %3645 = vmatprep.mubr.f32.mxu0 %v7711_v61 }
 0x3b0   : > { %5133 = vmatmul.mubr.f32.gmra.mrb[12].mxu1 %v9523_v21 }
 0x3b1   : > { %5135 = vmatprep.mubr.f32.mxu1 %v9524_v22  ;;  %v2673_v32 = vpop.f32.mrb[132].mxu0  ;;  %v9540_v22 = vld [vmem:[#allocation47_spill] sm:$0xff] }
 0x3b2   : > { %v8367_v43 = vadd.f32 %v2898_v41, %v2673_v32  ;;  %v2675_v35 = vpop.f32.mrb[133].mxu0  ;;  %v4962_v30 = vpop.f32.mrb[164].mxu1  ;;  %3646 = vmatmul.mubr.f32.gmra.mrb[238].mxu0 %v7929_v33  ;;  %v9548_v32 = vld [vmem:[#allocation26_spill] sm:$0xff] }
 0x3b3   : > { %v2908_v4 = vpop.f32.mrb[165].mxu1  ;;  %3650 = vmatprep.mubr.f32.mxu0 %v7727_v18 }
 0x3b4   : > { %5136 = vmatmul.mubr.f32.gmra.mrb[14].mxu1 %v9525_v12 }
 0x3b5   : > { %5138 = vmatprep.mubr.f32.mxu1 %v9526_v44  ;;  %v2678_v59 = vpop.f32.mrb[134].mxu0 }
 0x3b6   : > { %v8373_v61 = vadd.f32 %v4959_v47, %v2678_v59  ;;  %v2680_v25 = vpop.f32.mrb[135].mxu0  ;;  %v4965_v16 = vpop.f32.mrb[166].mxu1  ;;  %3651 = vmatmul.mubr.f32.gmra.mrb[240].mxu0 %v9538_v39  ;;  %v9547_v47 = vld [vmem:[#allocation62_spill] sm:$0xff] }
 0x3b7   : > { %v2918_v5 = vpop.f32.mrb[167].mxu1  ;;  %3655 = vmatprep.mubr.f32.mxu0 %v9539_v19 }
 0x3b8   : > { %5139 = vmatmul.mubr.f32.gmra.mrb[16].mxu1 %v9527_v60 }
 0x3b9   : > { %5141 = vmatprep.mubr.f32.mxu1 %v9528_v8  ;;  %v2683_v33 = vpop.f32.mrb[136].mxu0  ;;  %v9541_v8 = vld [vmem:[#allocation50_spill] sm:$0xff] }
 0x3ba   : > { %v8379_v18 = vadd.f32 %v2908_v4, %v2683_v33  ;;  %v2685_v31 = vpop.f32.mrb[137].mxu0  ;;  %v4968_v10 = vpop.f32.mrb[168].mxu1  ;;  %3656 = vmatmul.mubr.f32.gmra.mrb[242].mxu0 %v9540_v22 }
 0x3bb   : > { %v2928_v44 = vpop.f32.mrb[169].mxu1  ;;  %3660 = vmatprep.mubr.f32.mxu0 %v7755_v48  ;;  %v9551_v31 = vld [vmem:[#allocation64_spill] sm:$0xff] }
 0x3bc   : > { %5142 = vmatmul.mubr.f32.gmra.mrb[18].mxu1 %v9529_v62 }
 0x3bd   : > { %5144 = vmatprep.mubr.f32.mxu1 %v9530_v40  ;;  %v2688_v57 = vpop.f32.mrb[138].mxu0 }
 0x3be   : > { %v8385_v36 = vadd.f32 %v4962_v30, %v2688_v57  ;;  %v2690_v56 = vpop.f32.mrb[139].mxu0  ;;  %v4971_v28 = vpop.f32.mrb[170].mxu1  ;;  %3661 = vmatmul.mubr.f32.gmra.mrb[244].mxu0 %v9541_v8 }
 0x3bf   : > { %v2938_v1 = vpop.f32.mrb[171].mxu1  ;;  %3665 = vmatprep.mubr.f32.mxu0 %v9542_v58 }
 0x3c0   : > { %5145 = vmatmul.mubr.f32.gmra.mrb[20].mxu1 %v9531_v7 }
 0x3c1   : > { %5147 = vmatprep.mubr.f32.mxu1 %v9532_v50  ;;  %v2693_v51 = vpop.f32.mrb[140].mxu0 }
 0x3c2   : > { %v8391_v48 = vadd.f32 %v2918_v5, %v2693_v51  ;;  %v2695_v21 = vpop.f32.mrb[141].mxu0  ;;  %v4974_v12 = vpop.f32.mrb[172].mxu1  ;;  %3666 = vmatmul.mubr.f32.gmra.mrb[246].mxu0 %v8047_v29 }
 0x3c3   : > { %v2948_v40 = vpop.f32.mrb[173].mxu1  ;;  %3670 = vmatprep.mubr.f32.mxu0 %v7784_v38 }
 0x3c4   : > { %5148 = vmatmul.mubr.f32.gmra.mrb[22].mxu1 %v9533_v20 }
 0x3c5   : > { %5150 = vmatprep.mubr.f32.mxu1 %v9534_v11  ;;  %v2698_v60 = vpop.f32.mrb[142].mxu0 }
 0x3c6   : > { %v8397_v62 = vadd.f32 %v4965_v16, %v2698_v60  ;;  %v2700_v7 = vpop.f32.mrb[143].mxu0  ;;  %v4977_v26 = vpop.f32.mrb[174].mxu1  ;;  %3671 = vmatmul.mubr.f32.gmra.mrb[248].mxu0 %v9510_v0  ;;  %v9543_v0 = vld [vmem:[#allocation59_spill] sm:$0xff]  ;;  %v9550_v16 = vld [vmem:[#allocation28_spill] sm:$0xff]  ;;  %v9555_v60 = vld [vmem:[#allocation66_spill] sm:$0xff] }
 0x3c7   : > { %v2958_v50 = vpop.f32.mrb[175].mxu1  ;;  %3675 = vmatprep.mubr.f32.mxu0 %v7795_v2 }
 0x3c8   : > { %5151 = vmatmul.mubr.f32.gmra.mrb[24].mxu1 %v9535_v54 }
 0x3c9   : > { %5153 = vmatprep.mubr.f32.mxu1 %v9536_v14  ;;  %v2703_v29 = vpop.f32.mrb[144].mxu0 }
 0x3ca   : > { %v8403_v38 = vadd.f32 %v2928_v44, %v2703_v29  ;;  %v2705_v34 = vpop.f32.mrb[145].mxu0  ;;  %v8405_v20 = vpop.f32.mrb[176].mxu1  ;;  %3676 = vmatmul.mubr.f32.gmra.mrb[250].mxu0 %v8092_v23  ;;  %v9546_v23 = vld [vmem:[#allocation60_spill] sm:$0xff] }
 0x3cb   : > { %v2968_v11 = vpop.f32.mrb[177].mxu1  ;;  %3680 = vmatprep.mubr.f32.mxu0 %v7814_v24 }
 0x3cc   : > { %5154 = vmatmul.mubr.f32.gmra.mrb[26].mxu1 %v9537_v42 }
 0x3cd   : > { %5156 = vmatprep.mubr.f32.mxu1 %v9543_v0  ;;  %v2708_v2 = vpop.f32.mrb[146].mxu0 }
 0x3ce   : > { %v8411_v15 = vadd.f32 %v4968_v10, %v2708_v2  ;;  %v2710_v13 = vpop.f32.mrb[147].mxu0  ;;  %v8413_v54 = vpop.f32.mrb[178].mxu1  ;;  %3681 = vmatmul.mubr.f32.gmra.mrb[252].mxu0 %v9544_v27  ;;  %v9552_v10 = vld [vmem:[#allocation30_spill] sm:$0xff] }
 0x3cf   : > { %v8416_v17 = vpop.f32.mrb[179].mxu1  ;;  %3685 = vmatprep.mubr.f32.mxu0 %v9545_v37  ;;  %v9557_v13 = vld [vmem:[#allocation67_spill] sm:$0xff] }
 0x3d0   : > { %5157 = vmatmul.mubr.f32.gmra.mrb[28].mxu1 %v9546_v23 }
 0x3d1   : > { %5159 = vmatprep.mubr.f32.mxu1 %v9536_v14  ;;  %v2713_v24 = vpop.f32.mrb[148].mxu0  ;;  %v9549_v14 = vld [vmem:[#allocation63_spill] sm:$0xff] }
 0x3d2   : > { %v8421_v52 = vadd.f32 %v2938_v1, %v2713_v24  ;;  %v2715_v63 = vpop.f32.mrb[149].mxu0  ;;  %v8423_v3 = vpop.f32.mrb[180].mxu1  ;;  %3686 = vmatmul.mubr.f32.gmra.mrb[254].mxu0 %v9547_v47  ;;  %v9554_v1 = vld [vmem:[#allocation32_spill] sm:$0xff] }
 0x3d3   : > { %v8426_v41 = vpop.f32.mrb[181].mxu1  ;;  %3690 = vmatprep.mubr.f32.mxu0 %v9548_v32  ;;  %v9559_v63 = vld [vmem:[#allocation68_spill] sm:$0xff]  ;;  %v9560_v32 = vld [vmem:[#allocation38_spill] sm:$0xff] }
 0x3d4   : > { %5160 = vmatmul.mubr.f32.gmra.mrb[30].mxu1 %v9537_v42 }
 0x3d5   : > { %v2718_v35 = vpop.f32.mrb[150].mxu0 }
 0x3d6   : > { %v8430_v30 = vadd.f32 %v4971_v28, %v2718_v35  ;;  %v2720_v4 = vpop.f32.mrb[151].mxu0  ;;  %v8432_v59 = vpop.f32.mrb[182].mxu1  ;;  %3691 = vmatmul.mubr.f32.gmra.mrb[0].mxu0 %v9549_v14  ;;  %v9553_v28 = vld [vmem:[#allocation65_spill] sm:$0xff] }
 0x3d7   : > { %v8435_v25 = vpop.f32.mrb[183].mxu1  ;;  %3695 = vmatprep.mubr.f32.mxu0 %v9550_v16 }
 0x3d9   : > { %v2723_v39 = vpop.f32.mrb[152].mxu0 }
 0x3da   : > { %v8438_v5 = vadd.f32 %v2948_v40, %v2723_v39  ;;  %v2725_v19 = vpop.f32.mrb[153].mxu0  ;;  %v8440_v33 = vpop.f32.mrb[184].mxu1  ;;  %3696 = vmatmul.mubr.f32.gmra.mrb[2].mxu0 %v9551_v31  ;;  %v9561_v39 = vld [vmem:[#allocation69_spill] sm:$0xff] }
 0x3db   : > { %v8443_v42 = vpop.f32.mrb[185].mxu1  ;;  %3700 = vmatprep.mubr.f32.mxu0 %v9552_v10 }
 0x3dd   : > { %v2728_v22 = vpop.f32.mrb[154].mxu0 }
 0x3de   : > { %v8446_v44 = vadd.f32 %v4974_v12, %v2728_v22  ;;  %v2730_v57 = vpop.f32.mrb[155].mxu0  ;;  %v8448_v56 = vpop.f32.mrb[186].mxu1  ;;  %3701 = vmatmul.mubr.f32.gmra.mrb[4].mxu0 %v9553_v28  ;;  %v9556_v12 = vld [vmem:[#allocation34_spill] sm:$0xff] }
 0x3df   : > { %v8451_v8 = vpop.f32.mrb[187].mxu1  ;;  %3705 = vmatprep.mubr.f32.mxu0 %v9554_v1  ;;  %v9563_v28 = vld [vmem:[#allocation70_spill] sm:$0xff] }
 0x3e1   : > { %v2733_v58 = vpop.f32.mrb[156].mxu0 }
 0x3e2   : > { %v8454_v51 = vadd.f32 %v2958_v50, %v2733_v58  ;;  %v2735_v21 = vpop.f32.mrb[157].mxu0  ;;  %v8456_v40 = vpop.f32.mrb[188].mxu1  ;;  %3706 = vmatmul.mubr.f32.gmra.mrb[6].mxu0 %v9555_v60  ;;  %v9558_v50 = vld [vmem:[#allocation36_spill] sm:$0xff] }
 0x3e3   : > { %v8459_v7 = vpop.f32.mrb[189].mxu1  ;;  %3710 = vmatprep.mubr.f32.mxu0 %v9556_v12 }
 0x3e5   : > { %v2738_v29 = vpop.f32.mrb[158].mxu0 }
 0x3e6   : > { %v8462_v34 = vadd.f32 %v4977_v26, %v2738_v29  ;;  %v2740_v0 = vpop.f32.mrb[159].mxu0  ;;  %v8464_v2 = vpop.f32.mrb[190].mxu1  ;;  %3711 = vmatmul.mubr.f32.gmra.mrb[8].mxu0 %v9557_v13  ;;  %v9565_v29 = vld [vmem:[#allocation71_spill] sm:$0xff] }
 0x3e7   : > { %v8467_v27 = vpop.f32.mrb[191].mxu1  ;;  %3715 = vmatprep.mubr.f32.mxu0 %v9558_v50 }
 0x3e9   : > { %v2743_v37 = vpop.f32.mrb[160].mxu0 }
 0x3ea   : > { %v8470_v23 = vadd.f32 %v2968_v11, %v2743_v37  ;;  %v2745_v24 = vpop.f32.mrb[161].mxu0  ;;  %3716 = vmatmul.mubr.f32.gmra.mrb[10].mxu0 %v9559_v63  ;;  %v9562_v11 = vld [vmem:[#allocation40_spill] sm:$0xff] }
 0x3eb   : > { %v3113_v47 = vpop.f32.mrb[192].mxu1  ;;  %3720 = vmatprep.mubr.f32.mxu0 %v9560_v32 }
 0x3ec   : > { %v8475_v26 = vadd.f32 %v3113_v47, %v8357_v9  ;;  %v3115_v35 = vpop.f32.mrb[193].mxu1 }
 0x3ed   : > { %v2748_v4 = vpop.f32.mrb[162].mxu0 }
 0x3ee   : > { %v8478_v14 = vadd.f32 %v8405_v20, %v2748_v4  ;;  %v2750_v16 = vpop.f32.mrb[163].mxu0  ;;  %3721 = vmatmul.mubr.f32.gmra.mrb[12].mxu0 %v9561_v39  ;;  %v9564_v20 = vld [vmem:[#allocation43_spill] sm:$0xff] }
 0x3ef   : > { %v3118_v19 = vpop.f32.mrb[194].mxu1  ;;  %3725 = vmatprep.mubr.f32.mxu0 %v9562_v11 }
 0x3f0   : > { %v8483_v31 = vadd.f32 %v3118_v19, %v8361_v53  ;;  %v3120_v10 = vpop.f32.mrb[195].mxu1 }
 0x3f1   : > { %v2753_v22 = vpop.f32.mrb[164].mxu0 }
 0x3f2   : > { %v8486_v57 = vadd.f32 %v8416_v17, %v2753_v22  ;;  %v2755_v9 = vpop.f32.mrb[165].mxu0  ;;  %3726 = vmatmul.mubr.f32.gmra.mrb[14].mxu0 %v9563_v28  ;;  %v9566_v17 = vld [vmem:[#allocation45_spill] sm:$0xff]  ;;  %v9568_v28 = vld [vmem:[#allocation72_spill] sm:$0xff] }
 0x3f3   : > { %v3123_v1 = vpop.f32.mrb[196].mxu1  ;;  %3730 = vmatprep.mubr.f32.mxu0 %v9564_v20 }
 0x3f4   : > { %v8491_v58 = vadd.f32 %v3123_v1, %v8367_v43  ;;  %v3125_v21 = vpop.f32.mrb[197].mxu1 }
 0x3f5   : > { %v2758_v60 = vpop.f32.mrb[166].mxu0 }
 0x3f6   : > { %v8494_v12 = vadd.f32 %v8413_v54, %v2758_v60  ;;  %v2760_v53 = vpop.f32.mrb[167].mxu0  ;;  %3731 = vmatmul.mubr.f32.gmra.mrb[16].mxu0 %v9565_v29  ;;  %v9570_v29 = vld [vmem:[#allocation73_spill] sm:$0xff] }
 0x3f7   : > { %v3128_v0 = vpop.f32.mrb[198].mxu1  ;;  %3735 = vmatprep.mubr.f32.mxu0 %v9566_v17 }
 0x3f8   : > { %v8499_v13 = vadd.f32 %v3128_v0, %v8373_v61  ;;  %v3130_v50 = vpop.f32.mrb[199].mxu1 }
 0x3f9   : > { %v2763_v37 = vpop.f32.mrb[168].mxu0 }
 0x3fa   : > { %v8502_v24 = vadd.f32 %v8426_v41, %v2763_v37  ;;  %v2765_v43 = vpop.f32.mrb[169].mxu0  ;;  %3736 = vmatmul.mubr.f32.gmra.mrb[18].mxu0 %v8212_v46 }
 0x3fb   : > { %v3133_v63 = vpop.f32.mrb[200].mxu1  ;;  %3740 = vmatprep.mubr.f32.mxu0 %v7992_v55 }
 0x3fc   : > { %v8507_v54 = vadd.f32 %v3133_v63, %v8379_v18  ;;  %v3135_v47 = vpop.f32.mrb[201].mxu1 }
 0x3fd   : > { %v2768_v32 = vpop.f32.mrb[170].mxu0 }
 0x3fe   : > { %v8510_v35 = vadd.f32 %v8423_v3, %v2768_v32  ;;  %v2770_v61 = vpop.f32.mrb[171].mxu0  ;;  %3741 = vmatmul.mubr.f32.gmra.mrb[20].mxu0 %v8222_v6  ;;  %v9567_v3 = vld [vmem:[#allocation53_spill] sm:$0xff] }
 0x3ff   : > { %v3138_v4 = vpop.f32.mrb[202].mxu1  ;;  %3745 = vmatprep.mubr.f32.mxu0 %v8003_v49 }
 0x400   : > { %v8515_v41 = vadd.f32 %v3138_v4, %v8385_v36  ;;  %v3140_v46 = vpop.f32.mrb[203].mxu1 }
 0x401   : > { %v2773_v16 = vpop.f32.mrb[172].mxu0 }
 0x402   : > { %v8518_v39 = vadd.f32 %v8435_v25, %v2773_v16  ;;  %v2775_v18 = vpop.f32.mrb[173].mxu0  ;;  %3746 = vmatmul.mubr.f32.gmra.mrb[22].mxu0 %v8231_v45  ;;  %v9569_v25 = vld [vmem:[#allocation51_spill] sm:$0xff] }
 0x403   : > { %v3143_v19 = vpop.f32.mrb[204].mxu1  ;;  %3750 = vmatprep.mubr.f32.mxu0 %v9567_v3 }
 0x404   : > { %v8523_v11 = vadd.f32 %v3143_v19, %v8391_v48  ;;  %v3145_v10 = vpop.f32.mrb[205].mxu1 }
 0x405   : > { %v2778_v22 = vpop.f32.mrb[174].mxu0 }
 0x406   : > { %v8526_v9 = vadd.f32 %v8432_v59, %v2778_v22  ;;  %v2780_v36 = vpop.f32.mrb[175].mxu0  ;;  %3751 = vmatmul.mubr.f32.gmra.mrb[24].mxu0 %v9568_v28 }
 0x407   : > { %v3148_v1 = vpop.f32.mrb[206].mxu1  ;;  %3755 = vmatprep.mubr.f32.mxu0 %v9569_v25 }
 0x408   : > { %v8531_v20 = vadd.f32 %v3148_v1, %v8397_v62  ;;  %v3150_v21 = vpop.f32.mrb[207].mxu1 }
 0x409   : > { %v2783_v60 = vpop.f32.mrb[176].mxu0 }
 0x40a   : > { %v8534_v53 = vadd.f32 %v8443_v42, %v2783_v60  ;;  %v2785_v48 = vpop.f32.mrb[177].mxu0  ;;  %3756 = vmatmul.mubr.f32.gmra.mrb[26].mxu0 %v9570_v29 }
 0x40b   : > { %v3153_v0 = vpop.f32.mrb[208].mxu1  ;;  %3760 = vmatprep.mubr.f32.mxu0 %v7992_v55 }
 0x40c   : > { %v8539_v59 = vadd.f32 %v3153_v0, %v8403_v38  ;;  %v3155_v17 = vpop.f32.mrb[209].mxu1 }
 0x40d   : > { %v2788_v50 = vpop.f32.mrb[178].mxu0 }
 0x40e   : > { %v8542_v37 = vadd.f32 %v8440_v33, %v2788_v50  ;;  %v2790_v62 = vpop.f32.mrb[179].mxu0  ;;  %3761 = vmatmul.mubr.f32.gmra.mrb[28].mxu0 %v8222_v6 }
 0x40f   : > { %v3158_v43 = vpop.f32.mrb[210].mxu1  ;;  %3765 = vmatprep.mubr.f32.mxu0 %v8003_v49 }
 0x410   : > { %v8547_v42 = vadd.f32 %v3158_v43, %v8411_v15  ;;  %v3160_v63 = vpop.f32.mrb[211].mxu1 }
 0x411   : > { %v2793_v47 = vpop.f32.mrb[180].mxu0 }
 0x412   : > { %v8550_v55 = vadd.f32 %v8451_v8, %v2793_v47  ;;  %v2795_v38 = vpop.f32.mrb[181].mxu0  ;;  %3766 = vmatmul.mubr.f32.gmra.mrb[30].mxu0 %v8231_v45 }
 0x413   : > { %v3163_v32 = vpop.f32.mrb[212].mxu1 }
 0x414   : > { %v8554_v33 = vadd.f32 %v3163_v32, %v8421_v52  ;;  %v3165_v61 = vpop.f32.mrb[213].mxu1 }
 0x415   : > { %v2798_v6 = vpop.f32.mrb[182].mxu0 }
 0x416   : > { %v8557_v4 = vadd.f32 %v8448_v56, %v2798_v6  ;;  %v2800_v49 = vpop.f32.mrb[183].mxu0 }
 0x417   : > { %v3168_v15 = vpop.f32.mrb[214].mxu1 }
 0x418   : > { %v3169_v46 = vadd.f32 %v3168_v15, %v8430_v30  ;;  %v3170_v16 = vpop.f32.mrb[215].mxu1 }
 0x419   : > { %v2803_v18 = vpop.f32.mrb[184].mxu0 }
 0x41a   : > { %v8561_v8 = vadd.f32 %v8459_v7, %v2803_v18  ;;  %v2805_v19 = vpop.f32.mrb[185].mxu0 }
 0x41b   : > { %v3173_v45 = vpop.f32.mrb[216].mxu1 }
 0x41c   : > { %v8564_v3 = vadd.f32 %v3173_v45, %v8438_v5  ;;  %v3175_v52 = vpop.f32.mrb[217].mxu1 }
 0x41d   : > { %v2808_v10 = vpop.f32.mrb[186].mxu0 }
 0x41e   : > { %v8567_v22 = vadd.f32 %v8456_v40, %v2808_v10  ;;  %v2810_v56 = vpop.f32.mrb[187].mxu0 }
 0x41f   : > { %v3178_v36 = vpop.f32.mrb[218].mxu1 }
 0x420   : > { %v3179_v28 = vadd.f32 %v3178_v36, %v8446_v44  ;;  %v3180_v30 = vpop.f32.mrb[219].mxu1 }
 0x421   : > { %v2813_v1 = vpop.f32.mrb[188].mxu0 }
 0x422   : > { %v8571_v25 = vadd.f32 %v8467_v27, %v2813_v1  ;;  %v2815_v7 = vpop.f32.mrb[189].mxu0 }
 0x423   : > { %v3183_v21 = vpop.f32.mrb[220].mxu1 }
 0x424   : > { %v3184_v60 = vadd.f32 %v3183_v21, %v8454_v51  ;;  %v3185_v5 = vpop.f32.mrb[221].mxu1 }
 0x425   : > { %v2818_v48 = vpop.f32.mrb[190].mxu0 }
 0x426   : > { %v8575_v29 = vadd.f32 %v8464_v2, %v2818_v48  ;;  %v2820_v40 = vpop.f32.mrb[191].mxu0 }
 0x427   : > { %v3188_v0 = vpop.f32.mrb[222].mxu1 }
 0x428   : > { %v3189_v17 = vadd.f32 %v3188_v0, %v8462_v34  ;;  %v3190_v50 = vpop.f32.mrb[223].mxu1 }
 0x429   : > { %v5036_v44 = vpop.f32.mrb[192].mxu0 }
 0x42a   : > { %v8579_v62 = vadd.f32 %v5036_v44, %v8483_v31  ;;  %v3338_v27 = vpop.f32.mrb[193].mxu0 }
 0x42b   : > { %v3193_v43 = vpop.f32.mrb[224].mxu1  ;;  %v8582_v63 = vadd.f32 %v3338_v27, %v8475_v26 }
 0x42c   : > { %v3194_v51 = vadd.f32 %v3193_v43, %v8470_v23  ;;  %v3195_v47 = vpop.f32.mrb[225].mxu1 }
 0x42d   : > { %v5039_v38 = vpop.f32.mrb[194].mxu0 }
 0x42e   : > { %v8586_v2 = vadd.f32 %v5039_v38, %v8499_v13  ;;  %v3348_v32 = vpop.f32.mrb[195].mxu0 }
 0x42f   : > { %v3198_v61 = vpop.f32.mrb[226].mxu1  ;;  %v8589_v34 = vadd.f32 %v3348_v32, %v8491_v58 }
 0x430   : > { %v3199_v31 = vadd.f32 %v3198_v61, %v8478_v14  ;;  %v3200_v6 = vpop.f32.mrb[227].mxu1 }
 0x431   : > { %v5042_v49 = vpop.f32.mrb[196].mxu0 }
 0x432   : > { %v8593_v15 = vadd.f32 %v5042_v49, %v8515_v41  ;;  %v3358_v26 = vpop.f32.mrb[197].mxu0 }
 0x433   : > { %v3203_v16 = vpop.f32.mrb[228].mxu1  ;;  %v8596_v23 = vadd.f32 %v3358_v26, %v8507_v54 }
 0x434   : > { %v3204_v13 = vadd.f32 %v3203_v16, %v8486_v57  ;;  %v3205_v18 = vpop.f32.mrb[229].mxu1 }
 0x435   : > { %v5045_v19 = vpop.f32.mrb[198].mxu0 }
 0x436   : > { %v8600_v45 = vadd.f32 %v5045_v19, %v8531_v20  ;;  %v3368_v58 = vpop.f32.mrb[199].mxu0 }
 0x437   : > { %v3208_v52 = vpop.f32.mrb[230].mxu1  ;;  %v8603_v14 = vadd.f32 %v3368_v58, %v8523_v11 }
 0x438   : > { %v3209_v41 = vadd.f32 %v3208_v52, %v8494_v12  ;;  %v3210_v10 = vpop.f32.mrb[231].mxu1 }
 0x439   : > { %v5048_v56 = vpop.f32.mrb[200].mxu0 }
 0x43a   : > { %v8607_v36 = vadd.f32 %v5048_v56, %v8547_v42  ;;  %v3378_v54 = vpop.f32.mrb[201].mxu0 }
 0x43b   : > { %v3213_v30 = vpop.f32.mrb[232].mxu1  ;;  %v8610_v57 = vadd.f32 %v3378_v54, %v8539_v59 }
 0x43c   : > { %v3214_v20 = vadd.f32 %v3213_v30, %v8502_v24  ;;  %v3215_v1 = vpop.f32.mrb[233].mxu1 }
 0x43d   : > { %v5051_v7 = vpop.f32.mrb[202].mxu0 }
 0x43e   : > { %v8613_v21 = vadd.f32 %v5051_v7, %v3169_v46  ;;  %v3388_v11 = vpop.f32.mrb[203].mxu0 }
 0x43f   : > { %v3218_v5 = vpop.f32.mrb[234].mxu1  ;;  %v8616_v12 = vadd.f32 %v3388_v11, %v8554_v33 }
 0x440   : > { %v3219_v48 = vadd.f32 %v3218_v5, %v8510_v35  ;;  %v3220_v42 = vpop.f32.mrb[235].mxu1 }
 0x441   : > { %v5054_v40 = vpop.f32.mrb[204].mxu0 }
 0x442   : > { %v8619_v0 = vadd.f32 %v5054_v40, %v3179_v28  ;;  %v3398_v50 = vpop.f32.mrb[205].mxu0 }
 0x443   : > { %v3223_v59 = vpop.f32.mrb[236].mxu1  ;;  %v8622_v44 = vadd.f32 %v3398_v50, %v8564_v3 }
 0x444   : > { %v3224_v24 = vadd.f32 %v3223_v59, %v8518_v39  ;;  %v3225_v46 = vpop.f32.mrb[237].mxu1 }
 0x445   : > { %v5057_v27 = vpop.f32.mrb[206].mxu0 }
 0x446   : > { %v8625_v43 = vadd.f32 %v5057_v27, %v3189_v17  ;;  %v3408_v47 = vpop.f32.mrb[207].mxu0 }
 0x447   : > { %v3228_v33 = vpop.f32.mrb[238].mxu1  ;;  %v8627_v38 = vadd.f32 %v3408_v47, %v3184_v60 }
 0x448   : > { %v3229_v35 = vadd.f32 %v3228_v33, %v8526_v9  ;;  %v3230_v32 = vpop.f32.mrb[239].mxu1 }
 0x449   : > { %v5060_v28 = vpop.f32.mrb[208].mxu0 }
 0x44a   : > { %v8630_v61 = vadd.f32 %v5060_v28, %v3199_v31  ;;  %v3418_v6 = vpop.f32.mrb[209].mxu0 }
 0x44b   : > { %v3233_v49 = vpop.f32.mrb[240].mxu1  ;;  %v8632_v3 = vadd.f32 %v3418_v6, %v3194_v51 }
 0x44c   : > { %v3234_v39 = vadd.f32 %v3233_v49, %v8534_v53  ;;  %v3235_v26 = vpop.f32.mrb[241].mxu1 }
 0x44d   : > { %v5063_v16 = vpop.f32.mrb[210].mxu0 }
 0x44e   : > { %v8635_v17 = vadd.f32 %v5063_v16, %v3209_v41  ;;  %v3428_v18 = vpop.f32.mrb[211].mxu0 }
 0x44f   : > { %v3238_v19 = vpop.f32.mrb[242].mxu1  ;;  %v8637_v60 = vadd.f32 %v3428_v18, %v3204_v13 }
 0x450   : > { %v3239_v9 = vadd.f32 %v3238_v19, %v8542_v37  ;;  %v3240_v58 = vpop.f32.mrb[243].mxu1 }
 0x451   : > { %v5066_v52 = vpop.f32.mrb[212].mxu0 }
 0x452   : > { %v8640_v31 = vadd.f32 %v5066_v52, %v3219_v48  ;;  %v3438_v10 = vpop.f32.mrb[213].mxu0 }
 0x453   : > { %v3243_v56 = vpop.f32.mrb[244].mxu1  ;;  %v8642_v51 = vadd.f32 %v3438_v10, %v3214_v20 }
 0x454   : > { %v3244_v53 = vadd.f32 %v3243_v56, %v8550_v55  ;;  %v3245_v54 = vpop.f32.mrb[245].mxu1 }
 0x455   : > { %v5069_v30 = vpop.f32.mrb[214].mxu0 }
 0x456   : > { %v8645_v41 = vadd.f32 %v5069_v30, %v3229_v35  ;;  %v3448_v1 = vpop.f32.mrb[215].mxu0 }
 0x457   : > { %v3248_v7 = vpop.f32.mrb[246].mxu1  ;;  %v8647_v13 = vadd.f32 %v3448_v1, %v3224_v24 }
 0x458   : > { %v3249_v37 = vadd.f32 %v3248_v7, %v8557_v4  ;;  %v3250_v11 = vpop.f32.mrb[247].mxu1 }
 0x459   : > { %v5072_v5 = vpop.f32.mrb[216].mxu0 }
 0x45a   : > { %v8650_v48 = vadd.f32 %v5072_v5, %v3239_v9  ;;  %v3458_v42 = vpop.f32.mrb[217].mxu0 }
 0x45b   : > { %v3253_v40 = vpop.f32.mrb[248].mxu1  ;;  %v8652_v20 = vadd.f32 %v3458_v42, %v3234_v39 }
 0x45c   : > { %v3254_v55 = vadd.f32 %v3253_v40, %v8561_v8  ;;  %v3255_v50 = vpop.f32.mrb[249].mxu1 }
 0x45d   : > { %v5075_v59 = vpop.f32.mrb[218].mxu0 }
 0x45e   : > { %v8655_v46 = vadd.f32 %v5075_v59, %v3249_v37  ;;  %v3468_v27 = vpop.f32.mrb[219].mxu0 }
 0x45f   : > { %v3258_v47 = vpop.f32.mrb[250].mxu1  ;;  %v8657_v24 = vadd.f32 %v3468_v27, %v3244_v53 }
 0x460   : > { %v3259_v4 = vadd.f32 %v3258_v47, %v8567_v22  ;;  %v3260_v33 = vpop.f32.mrb[251].mxu1 }
 0x461   : > { %v5078_v35 = vpop.f32.mrb[220].mxu0 }
 0x462   : > { %v8660_v32 = vadd.f32 %v5078_v35, %v3259_v4  ;;  %v3478_v28 = vpop.f32.mrb[221].mxu0 }
 0x463   : > { %v3263_v6 = vpop.f32.mrb[252].mxu1  ;;  %v8662_v49 = vadd.f32 %v3478_v28, %v3254_v55 }
 0x464   : > { %v3264_v8 = vadd.f32 %v3263_v6, %v8571_v25  ;;  %v3265_v39 = vpop.f32.mrb[253].mxu1 }
 0x465   : > { %v5081_v26 = vpop.f32.mrb[222].mxu0 }
 0x466   : > { %v3488_v16 = vpop.f32.mrb[223].mxu0 }
 0x467   : > { %v3268_v18 = vpop.f32.mrb[254].mxu1  ;;  %v8665_v19 = vadd.f32 %v3488_v16, %v3264_v8 }
 0x468   : > { %v3269_v9 = vadd.f32 %v3268_v18, %v8575_v29  ;;  %v3270_v58 = vpop.f32.mrb[255].mxu1 }
 0x469   : > { %v3612_v22 = vpop.f32.mrb[224].mxu0 }
 0x46a   : > { %v8668_v52 = vadd.f32 %v5081_v26, %v3269_v9  ;;  %v3614_v10 = vpop.f32.mrb[225].mxu0 }
 0x46b   : > { %v5116_v56 = vpop.f32.mrb[0].mxu1 }
 0x46c   : > { %v3837_v53 = vpop.f32.mrb[1].mxu1 }
 0x46d   : > { %v3838_v54 = vadd.f32 %v3837_v53, %v3612_v22  ;;  %v3617_v30 = vpop.f32.mrb[226].mxu0 }
 0x46e   : > { %v3843_v1 = vadd.f32 %v5116_v56, %v3617_v30  ;;  %v3619_v7 = vpop.f32.mrb[227].mxu0 }
 0x46f   : > { %v8671_v25 = vadd.f32 %v3838_v54, %v8582_v63  ;;  %v5119_v37 = vpop.f32.mrb[2].mxu1 }
 0x470   : > { %v8674_v11 = vadd.f32 %v3843_v1, %v8579_v62  ;;  %v3847_v5 = vpop.f32.mrb[3].mxu1 }
 0x471   : > { %v3622_v29 = vpop.f32.mrb[228].mxu0 }
 0x472   : > { %v3848_v42 = vadd.f32 %v3847_v5, %v3622_v29  ;;  %v3624_v40 = vpop.f32.mrb[229].mxu0 }
 0x473   : > { %v5122_v55 = vpop.f32.mrb[4].mxu1 }
 0x474   : > { %v8677_v50 = vadd.f32 %v3848_v42, %v8589_v34  ;;  %v3857_v59 = vpop.f32.mrb[5].mxu1 }
 0x475   : > { %v3627_v27 = vpop.f32.mrb[230].mxu0 }
 0x476   : > { %v3853_v47 = vadd.f32 %v5119_v37, %v3627_v27  ;;  %v3629_v4 = vpop.f32.mrb[231].mxu0 }
 0x477   : > { %v5125_v33 = vpop.f32.mrb[6].mxu1 }
 0x478   : > { %v8680_v63 = vadd.f32 %v3853_v47, %v8586_v2  ;;  %v3867_v35 = vpop.f32.mrb[7].mxu1 }
 0x479   : > { %v3632_v28 = vpop.f32.mrb[232].mxu0 }
 0x47a   : > { %v3858_v62 = vadd.f32 %v3857_v59, %v3632_v28  ;;  %v3634_v6 = vpop.f32.mrb[233].mxu0 }
 0x47b   : > { %v5128_v8 = vpop.f32.mrb[8].mxu1 }
 0x47c   : > { %v8683_v39 = vadd.f32 %v3858_v62, %v8596_v23  ;;  %v3877_v26 = vpop.f32.mrb[9].mxu1 }
 0x47d   : > { %v3637_v16 = vpop.f32.mrb[234].mxu0 }
 0x47e   : > { %v3863_v34 = vadd.f32 %v5122_v55, %v3637_v16  ;;  %v3639_v18 = vpop.f32.mrb[235].mxu0 }
 0x47f   : > { %v5131_v9 = vpop.f32.mrb[10].mxu1 }
 0x480   : > { %v8686_v58 = vadd.f32 %v3863_v34, %v8593_v15  ;;  %v3887_v22 = vpop.f32.mrb[11].mxu1 }
 0x481   : > { %v3642_v10 = vpop.f32.mrb[236].mxu0 }
 0x482   : > { %v3868_v2 = vadd.f32 %v3867_v35, %v3642_v10  ;;  %v3644_v56 = vpop.f32.mrb[237].mxu0 }
 0x483   : > { %v5134_v53 = vpop.f32.mrb[12].mxu1 }
 0x484   : > { %v8689_v54 = vadd.f32 %v3868_v2, %v8603_v14  ;;  %v3897_v30 = vpop.f32.mrb[13].mxu1 }
 0x485   : > { %v3647_v1 = vpop.f32.mrb[238].mxu0 }
 0x486   : > { %v3873_v23 = vadd.f32 %v5125_v33, %v3647_v1  ;;  %v3649_v7 = vpop.f32.mrb[239].mxu0  ;;  %v4028_v1 = vadd.f32 %v8674_v11, %v8671_v25 }
 0x487   : > { %v8691_v37 = vpop.f32.mrb[14].mxu1 }
 0x488   : > { %v8694_v5 = vadd.f32 %v3873_v23, %v8600_v45  ;;  %v3907_v29 = vpop.f32.mrb[15].mxu1 }
 0x489   : > { %v3652_v15 = vpop.f32.mrb[240].mxu0 }
 0x48a   : > { %v3878_v42 = vadd.f32 %v3877_v26, %v3652_v15  ;;  %v3654_v40 = vpop.f32.mrb[241].mxu0 }
 0x48b   : > { %v8696_v55 = vpop.f32.mrb[16].mxu1  ;;  %v4068_v40 = vmul.f32 %v8680_v63, %v8680_v63 }
 0x48c   : > { %v8699_v59 = vadd.f32 %v3878_v42, %v8610_v57  ;;  %v8701_v14 = vpop.f32.mrb[17].mxu1 }
 0x48d   : > { %v3657_v27 = vpop.f32.mrb[242].mxu0 }
 0x48e   : > { %v3883_v47 = vadd.f32 %v5128_v8, %v3657_v27  ;;  %v3659_v4 = vpop.f32.mrb[243].mxu0 }
 0x48f   : > { %v8703_v33 = vpop.f32.mrb[18].mxu1 }
 0x490   : > { %v8706_v35 = vadd.f32 %v3883_v47, %v8607_v36  ;;  %v8708_v45 = vpop.f32.mrb[19].mxu1  ;;  %v4066_v36 = vmul.f32 %v8674_v11, %v8674_v11 }
 0x491   : > { %v3662_v28 = vpop.f32.mrb[244].mxu0 }
 0x492   : > { %v3888_v62 = vadd.f32 %v3887_v22, %v3662_v28  ;;  %v3664_v6 = vpop.f32.mrb[245].mxu0 }
 0x493   : > { %v8710_v26 = vpop.f32.mrb[20].mxu1 }
 0x494   : > { %v8713_v57 = vadd.f32 %v3888_v62, %v8616_v12  ;;  %v8715_v16 = vpop.f32.mrb[21].mxu1  ;;  %v4065_v12 = vmul.f32 %v8671_v25, %v8671_v25 }
 0x495   : > { %v3667_v34 = vpop.f32.mrb[246].mxu0 }
 0x496   : > { %v3893_v8 = vadd.f32 %v5131_v9, %v3667_v34  ;;  %v3669_v18 = vpop.f32.mrb[247].mxu0  ;;  %v4067_v9 = vmul.f32 %v8677_v50, %v8677_v50  ;;  %v4097_v42 = vadd.f32 %v4066_v36, %v4065_v12 }
 0x497   : > { %v8717_v10 = vpop.f32.mrb[22].mxu1 }
 0x498   : > { %v8722_v2 = vadd.f32 %v3893_v8, %v8613_v21  ;;  %v8724_v22 = vpop.f32.mrb[23].mxu1  ;;  %v4029_v21 = vadd.f32 %v4028_v1, %v8677_v50  ;;  %v4098_v28 = vadd.f32 %v4097_v42, %v4067_v9 }
 0x499   : > { %v3672_v56 = vpop.f32.mrb[248].mxu0 }
 0x49a   : > { %v3898_v23 = vadd.f32 %v3897_v30, %v3672_v56  ;;  %v3674_v7 = vpop.f32.mrb[249].mxu0  ;;  %v4030_v62 = vadd.f32 %v4029_v21, %v8680_v63  ;;  %v4069_v30 = vmul.f32 %v8683_v39, %v8683_v39  ;;  %v4099_v18 = vadd.f32 %v4098_v28, %v4068_v40 }
 0x49b   : > { %v8732_v15 = vpop.f32.mrb[24].mxu1 }
 0x49c   : > { %v8738_v27 = vadd.f32 %v3898_v23, %v8622_v44  ;;  %v8740_v47 = vpop.f32.mrb[25].mxu1  ;;  %v4031_v36 = vadd.f32 %v4030_v62, %v8683_v39  ;;  %v4070_v44 = vmul.f32 %v8686_v58, %v8686_v58  ;;  %v4100_v9 = vadd.f32 %v4099_v18, %v4069_v30 }
 0x49d   : > { %v3677_v4 = vpop.f32.mrb[250].mxu0 }
 0x49e   : > { %v3903_v6 = vadd.f32 %v5134_v53, %v3677_v4  ;;  %v3679_v34 = vpop.f32.mrb[251].mxu0  ;;  %v4032_v23 = vadd.f32 %v4031_v36, %v8686_v58  ;;  %v4071_v53 = vmul.f32 %v8689_v54, %v8689_v54  ;;  %v4101_v40 = vadd.f32 %v4100_v9, %v4070_v44 }
 0x49f   : > { %v8745_v8 = vpop.f32.mrb[26].mxu1 }
 0x4a0   : > { %v8751_v56 = vadd.f32 %v3903_v6, %v8619_v0  ;;  %v8753_v12 = vpop.f32.mrb[27].mxu1  ;;  %v4033_v4 = vadd.f32 %v4032_v23, %v8689_v54  ;;  %v4072_v0 = vmul.f32 %v8694_v5, %v8694_v5  ;;  %v4102_v6 = vadd.f32 %v4101_v40, %v4071_v53 }
 0x4a1   : > { %v3682_v1 = vpop.f32.mrb[252].mxu0 }
 0x4a2   : > { %v3908_v7 = vadd.f32 %v3907_v29, %v3682_v1  ;;  %v3684_v42 = vpop.f32.mrb[253].mxu0  ;;  %v4034_v34 = vadd.f32 %v4033_v4, %v8694_v5  ;;  %v4073_v29 = vmul.f32 %v8699_v59, %v8699_v59  ;;  %v4103_v1 = vadd.f32 %v4102_v6, %v4072_v0 }
 0x4a3   : > { %v8758_v21 = vpop.f32.mrb[28].mxu1 }
 0x4a4   : > { %v8764_v28 = vadd.f32 %v3908_v7, %v8627_v38  ;;  %v8766_v62 = vpop.f32.mrb[29].mxu1  ;;  %v4035_v9 = vadd.f32 %v4034_v34, %v8699_v59  ;;  %v4074_v38 = vmul.f32 %v8706_v35, %v8706_v35  ;;  %v4104_v42 = vadd.f32 %v4103_v1, %v4073_v29 }
 0x4a5   : > { %v3687_v30 = vpop.f32.mrb[254].mxu0  ;;  %v4076_v34 = vmul.f32 %v8722_v2, %v8722_v2  ;;  %v4077_v1 = vmul.f32 %v8738_v27, %v8738_v27 }
 0x4a6   : > { %v3913_v18 = vadd.f32 %v8691_v37, %v3687_v30  ;;  %v3689_v36 = vpop.f32.mrb[255].mxu0  ;;  %v4036_v40 = vadd.f32 %v4035_v9, %v8706_v35  ;;  %v4075_v37 = vmul.f32 %v8713_v57, %v8713_v57  ;;  %v4105_v30 = vadd.f32 %v4104_v42, %v4074_v38 }
 0x4a7   : > { %v8772_v44 = vpop.f32.mrb[30].mxu1  ;;  %v4078_v42 = vmul.f32 %v8751_v56, %v8751_v56 }
 0x4a8   : > { %v8778_v23 = vadd.f32 %v3913_v18, %v8625_v43  ;;  %v8780_v53 = vpop.f32.mrb[31].mxu1  ;;  %v4037_v6 = vadd.f32 %v4036_v40, %v8713_v57  ;;  %v4106_v36 = vadd.f32 %v4105_v30, %v4075_v37 }
 0x4a9   : > { %v3692_v7 = vpop.f32.mrb[0].mxu0 }
 0x4aa   : > { %v3918_v4 = vadd.f32 %v8701_v14, %v3692_v7  ;;  %v3694_v0 = vpop.f32.mrb[1].mxu0  ;;  %v4038_v29 = vadd.f32 %v4037_v6, %v8722_v2  ;;  %v4107_v7 = vadd.f32 %v4106_v36, %v4076_v34 }
 0x4ab   : > { %v4079_v0 = vmul.f32 %v8764_v28, %v8764_v28 }
 0x4ac   : > { %v8790_v43 = vadd.f32 %v3918_v4, %v8632_v3  ;;  %v4039_v38 = vadd.f32 %v4038_v29, %v8738_v27  ;;  %v4108_v4 = vadd.f32 %v4107_v7, %v4077_v1 }
 0x4ad   : > { %v3697_v18 = vpop.f32.mrb[2].mxu0 }
 0x4ae   : > { %v3923_v9 = vadd.f32 %v8696_v55, %v3697_v18  ;;  %v3699_v14 = vpop.f32.mrb[3].mxu0  ;;  %v4040_v37 = vadd.f32 %v4039_v38, %v8751_v56  ;;  %v4109_v6 = vadd.f32 %v4108_v4, %v4078_v42  ;;  %v4080_v18 = vmul.f32 %v8778_v23, %v8778_v23 }
 0x4b0   : > { %v8800_v40 = vadd.f32 %v3923_v9, %v8630_v61  ;;  %v4041_v34 = vadd.f32 %v4040_v37, %v8764_v28  ;;  %v4110_v29 = vadd.f32 %v4109_v6, %v4079_v0  ;;  %v4081_v9 = vmul.f32 %v8790_v43, %v8790_v43 }
 0x4b1   : > { %v3702_v3 = vpop.f32.mrb[4].mxu0 }
 0x4b2   : > { %v3928_v30 = vadd.f32 %v8708_v45, %v3702_v3  ;;  %v3704_v55 = vpop.f32.mrb[5].mxu0  ;;  %v4042_v1 = vadd.f32 %v4041_v34, %v8778_v23  ;;  %v4111_v7 = vadd.f32 %v4110_v29, %v4080_v18  ;;  %v4082_v42 = vmul.f32 %v8800_v40, %v8800_v40 }
 0x4b4   : > { %v8810_v36 = vadd.f32 %v3928_v30, %v8637_v60  ;;  %v4043_v38 = vadd.f32 %v4042_v1, %v8790_v43  ;;  %v4112_v4 = vadd.f32 %v4111_v7, %v4081_v9 }
 0x4b5   : > { %v3707_v61 = vpop.f32.mrb[6].mxu0 }
 0x4b6   : > { %v3933_v14 = vadd.f32 %v8703_v33, %v3707_v61  ;;  %v3709_v45 = vpop.f32.mrb[7].mxu0  ;;  %v4044_v37 = vadd.f32 %v4043_v38, %v8800_v40  ;;  %v4083_v0 = vmul.f32 %v8810_v36, %v8810_v36  ;;  %v4113_v55 = vadd.f32 %v4112_v4, %v4082_v42 }
 0x4b8   : > { %v8820_v3 = vadd.f32 %v3933_v14, %v8635_v17  ;;  %v4045_v6 = vadd.f32 %v4044_v37, %v8810_v36  ;;  %v4114_v61 = vadd.f32 %v4113_v55, %v4083_v0 }
 0x4b9   : > { %v3712_v60 = vpop.f32.mrb[8].mxu0 }
 0x4ba   : > { %v3938_v30 = vadd.f32 %v8715_v16, %v3712_v60  ;;  %v3714_v33 = vpop.f32.mrb[9].mxu0  ;;  %v4084_v34 = vmul.f32 %v8820_v3, %v8820_v3  ;;  %v4046_v29 = vadd.f32 %v4045_v6, %v8820_v3 }
 0x4bc   : > { %v8830_v18 = vadd.f32 %v3938_v30, %v8642_v51  ;;  %v4115_v14 = vadd.f32 %v4114_v61, %v4084_v34 }
 0x4bd   : > { %v3717_v17 = vpop.f32.mrb[10].mxu0 }
 0x4be   : > { %v4085_v1 = vmul.f32 %v8830_v18, %v8830_v18  ;;  %v3943_v9 = vadd.f32 %v8710_v26, %v3717_v17  ;;  %v3719_v16 = vpop.f32.mrb[11].mxu0  ;;  %v4047_v45 = vadd.f32 %v4046_v29, %v8830_v18 }
 0x4c0   : > { %v8838_v7 = vadd.f32 %v3943_v9, %v8640_v31  ;;  %v4116_v42 = vadd.f32 %v4115_v14, %v4085_v1 }
 0x4c1   : > { %v3722_v38 = vpop.f32.mrb[12].mxu0 }
 0x4c2   : > { %v4048_v51 = vadd.f32 %v4047_v45, %v8838_v7  ;;  %v4086_v60 = vmul.f32 %v8838_v7, %v8838_v7  ;;  %v3948_v4 = vadd.f32 %v8724_v22, %v3722_v38  ;;  %v3724_v37 = vpop.f32.mrb[13].mxu0 }
 0x4c4   : > { %v4117_v0 = vadd.f32 %v4116_v42, %v4086_v60  ;;  %v8845_v26 = vadd.f32 %v3948_v4, %v8647_v13 }
 0x4c5   : > { %v3727_v30 = vpop.f32.mrb[14].mxu0 }
 0x4c6   : > { %v4049_v33 = vadd.f32 %v4048_v51, %v8845_v26  ;;  %v4087_v31 = vmul.f32 %v8845_v26, %v8845_v26  ;;  %v3953_v55 = vadd.f32 %v8717_v10, %v3727_v30  ;;  %v3729_v6 = vpop.f32.mrb[15].mxu0 }
 0x4c8   : > { %v4118_v34 = vadd.f32 %v4117_v0, %v4087_v31  ;;  %v8852_v17 = vadd.f32 %v3953_v55, %v8645_v41 }
 0x4c9   : > { %v3732_v61 = vpop.f32.mrb[16].mxu0 }
 0x4ca   : > { %v4050_v22 = vadd.f32 %v4049_v33, %v8852_v17  ;;  %v4088_v13 = vmul.f32 %v8852_v17, %v8852_v17  ;;  %v3958_v29 = vadd.f32 %v8740_v47, %v3732_v61  ;;  %v3734_v1 = vpop.f32.mrb[17].mxu0 }
 0x4cc   : > { %v4119_v9 = vadd.f32 %v4118_v34, %v4088_v13  ;;  %v8859_v16 = vadd.f32 %v3958_v29, %v8652_v20 }
 0x4cd   : > { %v3737_v14 = vpop.f32.mrb[18].mxu0 }
 0x4ce   : > { %v4051_v10 = vadd.f32 %v4050_v22, %v8859_v16  ;;  %v4089_v41 = vmul.f32 %v8859_v16, %v8859_v16  ;;  %v3963_v45 = vadd.f32 %v8732_v15, %v3737_v14  ;;  %v3739_v38 = vpop.f32.mrb[19].mxu0 }
 0x4d0   : > { %v4120_v42 = vadd.f32 %v4119_v9, %v4089_v41  ;;  %v8866_v51 = vadd.f32 %v3963_v45, %v8650_v48 }
 0x4d1   : > { %v3742_v60 = vpop.f32.mrb[20].mxu0 }
 0x4d2   : > { %v4052_v47 = vadd.f32 %v4051_v10, %v8866_v51  ;;  %v4090_v20 = vmul.f32 %v8866_v51, %v8866_v51  ;;  %v3968_v4 = vadd.f32 %v8753_v12, %v3742_v60  ;;  %v3744_v37 = vpop.f32.mrb[21].mxu0 }
 0x4d4   : > { %v4121_v0 = vadd.f32 %v4120_v42, %v4090_v20  ;;  %v8873_v30 = vadd.f32 %v3968_v4, %v8657_v24 }
 0x4d5   : > { %v3747_v33 = vpop.f32.mrb[22].mxu0 }
 0x4d6   : > { %v4053_v15 = vadd.f32 %v4052_v47, %v8873_v30  ;;  %v4091_v48 = vmul.f32 %v8873_v30, %v8873_v30  ;;  %v3973_v31 = vadd.f32 %v8745_v8, %v3747_v33  ;;  %v3749_v55 = vpop.f32.mrb[23].mxu0 }
 0x4d8   : > { %v4122_v6 = vadd.f32 %v4121_v0, %v4091_v48  ;;  %v8880_v34 = vadd.f32 %v3973_v31, %v8655_v46 }
 0x4d9   : > { %v3752_v61 = vpop.f32.mrb[24].mxu0 }
 0x4da   : > { %v4054_v12 = vadd.f32 %v4053_v15, %v8880_v34  ;;  %v4092_v24 = vmul.f32 %v8880_v34, %v8880_v34  ;;  %v3978_v22 = vadd.f32 %v8766_v62, %v3752_v61  ;;  %v3754_v13 = vpop.f32.mrb[25].mxu0 }
 0x4dc   : > { %v4123_v29 = vadd.f32 %v4122_v6, %v4092_v24  ;;  %v8887_v1 = vadd.f32 %v3978_v22, %v8662_v49 }
 0x4dd   : > { %v3757_v9 = vpop.f32.mrb[26].mxu0 }
 0x4de   : > { %v4055_v8 = vadd.f32 %v4054_v12, %v8887_v1  ;;  %v4093_v46 = vmul.f32 %v8887_v1, %v8887_v1  ;;  %v3983_v14 = vadd.f32 %v8758_v21, %v3757_v9  ;;  %v3759_v10 = vpop.f32.mrb[27].mxu0 }
 0x4e0   : > { %v4124_v41 = vadd.f32 %v4123_v29, %v4093_v46  ;;  %v8894_v45 = vadd.f32 %v3983_v14, %v8660_v32 }
 0x4e1   : > { %v3762_v38 = vpop.f32.mrb[28].mxu0 }
 0x4e2   : > { %v4056_v62 = vadd.f32 %v4055_v8, %v8894_v45  ;;  %v4094_v49 = vmul.f32 %v8894_v45, %v8894_v45  ;;  %v3988_v42 = vadd.f32 %v8780_v53, %v3762_v38  ;;  %v3764_v60 = vpop.f32.mrb[29].mxu0 }
 0x4e4   : > { %v4125_v47 = vadd.f32 %v4124_v41, %v4094_v49  ;;  %v8901_v20 = vadd.f32 %v3988_v42, %v8665_v19 }
 0x4e5   : > { %v3767_v4 = vpop.f32.mrb[30].mxu0 }
 0x4e6   : > { %v4057_v21 = vadd.f32 %v4056_v62, %v8901_v20  ;;  %v4095_v32 = vmul.f32 %v8901_v20, %v8901_v20  ;;  %v3993_v37 = vadd.f32 %v8772_v44, %v3767_v4  ;;  %v3769_v0 = vpop.f32.mrb[31].mxu0 }
 0x4e8   : > { %v4126_v33 = vadd.f32 %v4125_v47, %v4095_v32  ;;  %v4027_v15 = vadd.f32 %v3993_v37, %v8668_v52 }
 0x4ea   : > { %v4058_v48 = vadd.f32 %v4057_v21, %v4027_v15  ;;  %v4096_v31 = vmul.f32 %v4027_v15, %v4027_v15 }
 0x4ec   : > { %v4059_v53 = vrot.slane %v4058_v48, 4  ;;  %v4127_v55 = vadd.f32 %v4126_v33, %v4096_v31  ;;  %v5748_v31 = vld [vmem:[%s6154_s28 + $0xf8] sm:$0xff] }
 0x4ee   : > { %v4060_v6 = vadd.f32 %v4059_v53, %v4058_v48  ;;  %v4128_v61 = vrot.slane %v4127_v55, 4 }
 0x4f0   : > { %v4061_v19 = vrot.slane %v4060_v6, 2  ;;  %v4129_v12 = vadd.f32 %v4128_v61, %v4127_v55 }
 0x4f2   : > { %v4062_v24 = vadd.f32 %v4061_v19, %v4060_v6  ;;  %v4130_v22 = vrot.slane %v4129_v12, 2 }
 0x4f4   : > { %v4063_v13 = vrot.slane %v4062_v24, 1  ;;  %v4131_v29 = vadd.f32 %v4130_v22, %v4129_v12 }
 0x4f6   : > { %v4064_v9 = vadd.f32 %v4063_v13, %v4062_v24  ;;  %v4132_v8 = vrot.slane %v4131_v29, 1 }
 0x4f8   : > { %v4133_v46 = vadd.f32 %v4132_v8, %v4131_v29  ;;  %v8908_v44 = vmul.f32 0.00390625, %v4064_v9 }
 0x4fa   : > { %v4135_v14 = vmul.f32 0.00390625, %v4133_v46  ;;  %v4136_v52 = vmul.f32 %v8908_v44, %v8908_v44  ;;  %v4169_v10 = vsub.f32 %v4027_v15, %v8908_v44  ;;  %v4158_v62 = vsub.f32 %v8830_v18, %v8908_v44 }
 0x4fb   : > { %v4159_v49 = vsub.f32 %v8838_v7, %v8908_v44  ;;  %v4160_v42 = vsub.f32 %v8845_v26, %v8908_v44  ;;  %v4161_v60 = vsub.f32 %v8852_v17, %v8908_v44  ;;  %v4162_v47 = vsub.f32 %v8859_v16, %v8908_v44 }
 0x4fc   : > { %v4137_v41 = vsub.f32 %v4135_v14, %v4136_v52  ;;  %v4163_v4 = vsub.f32 %v8866_v51, %v8908_v44  ;;  %v4164_v21 = vsub.f32 %v8873_v30, %v8908_v44  ;;  %v4165_v18 = vsub.f32 %v8880_v34, %v8908_v44 }
 0x4fd   : > { %v4166_v7 = vsub.f32 %v8887_v1, %v8908_v44  ;;  %v4167_v26 = vsub.f32 %v8894_v45, %v8908_v44  ;;  %v4168_v17 = vsub.f32 %v8901_v20, %v8908_v44  ;;  %v4138_v16 = vsub.f32 %v8671_v25, %v8908_v44 }
 0x4fe   : > { %v4170_v38 = vadd.f32 1e-05, %v4137_v41  ;;  %v4139_v51 = vsub.f32 %v8674_v11, %v8908_v44  ;;  %v4140_v30 = vsub.f32 %v8677_v50, %v8908_v44  ;;  %v4141_v34 = vsub.f32 %v8680_v63, %v8908_v44 }
 0x4ff   : > { %v4142_v1 = vsub.f32 %v8683_v39, %v8908_v44  ;;  %v4143_v45 = vsub.f32 %v8686_v58, %v8908_v44  ;;  %v4144_v20 = vsub.f32 %v8689_v54, %v8908_v44  ;;  %v4145_v25 = vsub.f32 %v8694_v5, %v8908_v44 }
 0x500   : > { %5716 = vrsqrt.f32 %v4170_v38  ;;  %v4146_v11 = vsub.f32 %v8699_v59, %v8908_v44  ;;  %v4147_v50 = vsub.f32 %v8706_v35, %v8908_v44  ;;  %v4148_v63 = vsub.f32 %v8713_v57, %v8908_v44 }
 0x501   : > { %v4149_v39 = vsub.f32 %v8722_v2, %v8908_v44  ;;  %v4150_v58 = vsub.f32 %v8738_v27, %v8908_v44  ;;  %v4151_v54 = vsub.f32 %v8751_v56, %v8908_v44  ;;  %v4152_v5 = vsub.f32 %v8764_v28, %v8908_v44 }
 0x502   : > { %v4153_v59 = vsub.f32 %v8778_v23, %v8908_v44  ;;  %v4154_v57 = vsub.f32 %v8790_v43, %v8908_v44  ;;  %v4155_v2 = vsub.f32 %v8800_v40, %v8908_v44  ;;  %v4156_v27 = vsub.f32 %v8810_v36, %v8908_v44 }
 0x503   : > { %v4157_v56 = vsub.f32 %v8820_v3, %v8908_v44 }
 0x50a   : > { %v5717_v35 = vpop.eup %5716 }
 0x50b   : > { %v4203_v32 = vmul.f32 %v5717_v35, %v4169_v10  ;;  %v4172_v37 = vmul.f32 %v5717_v35, %v4138_v16  ;;  %v4173_v28 = vmul.f32 %v5717_v35, %v4139_v51  ;;  %v4174_v0 = vmul.f32 %v5717_v35, %v4140_v30  ;;  %v5751_v16 = vld [vmem:[%s6154_s28 + $0x10] sm:$0xff]  ;;  %v5752_v51 = vld [vmem:[%s6154_s28 + $0x18] sm:$0xff]  ;;  %v5754_v30 = vld [vmem:[%s6154_s28 + $0x28] sm:$0xff] }
 0x50c   : > { %v4175_v33 = vmul.f32 %v5717_v35, %v4141_v34  ;;  %v4176_v23 = vmul.f32 %v5717_v35, %v4142_v1  ;;  %v4177_v15 = vmul.f32 %v5717_v35, %v4143_v45  ;;  %v4178_v48 = vmul.f32 %v5717_v35, %v4144_v20  ;;  %v5755_v34 = vld [vmem:[%s6154_s28 + $0x30] sm:$0xff]  ;;  %v5756_v45 = vld [vmem:[%s6154_s28 + $0x38] sm:$0xff] }
 0x50d   : > { %v4235_v43 = vadd.f32 %v5748_v31, %v4203_v32  ;;  %v4179_v53 = vmul.f32 %v5717_v35, %v4145_v25  ;;  %v4180_v55 = vmul.f32 %v5717_v35, %v4146_v11  ;;  %v4181_v40 = vmul.f32 %v5717_v35, %v4147_v50  ;;  %v5757_v25 = vld [vmem:[%s6154_s28 + $0x40] sm:$0xff]  ;;  %v5758_v50 = vld [vmem:[%s6154_s28 + $0x48] sm:$0xff]  ;;  %v5764_v32 = vld [vmem:[%s6154_s28 + $0x78] sm:$0xff] }
 0x50e   : > { %v4182_v6 = vmul.f32 %v5717_v35, %v4148_v63  ;;  %v4183_v61 = vmul.f32 %v5717_v35, %v4149_v39  ;;  %v4184_v36 = vmul.f32 %v5717_v35, %v4150_v58  ;;  %v4185_v19 = vmul.f32 %v5717_v35, %v4151_v54  ;;  %v5759_v39 = vld [vmem:[%s6154_s28 + $0x50] sm:$0xff]  ;;  %v5760_v54 = vld [vmem:[%s6154_s28 + $0x58] sm:$0xff] }
 0x50f   : > { %4267 = vst [vmem:[%s8978_s18 + $0xf8] sm:$0xff] %v4235_v43  ;;  %v4186_v3 = vmul.f32 %v5717_v35, %v4152_v5  ;;  %v4187_v12 = vmul.f32 %v5717_v35, %v4153_v59  ;;  %v4188_v24 = vmul.f32 %v5717_v35, %v4154_v57  ;;  %v4189_v22 = vmul.f32 %v5717_v35, %v4155_v2  ;;  %v5761_v59 = vld [vmem:[%s6154_s28 + $0x60] sm:$0xff]  ;;  %v5762_v57 = vld [vmem:[%s6154_s28 + $0x68] sm:$0xff]  ;;  %v5768_v31 = vld [vmem:[%s6154_s28 + $0x98] sm:$0xff] }
 0x510   : > { %v4190_v13 = vmul.f32 %v5717_v35, %v4156_v27  ;;  %v8981_v29 = vmul.f32 %v5717_v35, %v4157_v56  ;;  %v8983_v9 = vmul.f32 %v5717_v35, %v4158_v62  ;;  %v8985_v8 = vmul.f32 %v5717_v35, %v4159_v49  ;;  %v5763_v27 = vld [vmem:[%s6154_s28 + $0x70] sm:$0xff] }
 0x511   : > { %v8987_v46 = vmul.f32 %v5717_v35, %v4160_v42  ;;  %v8989_v44 = vmul.f32 %v5717_v35, %v4161_v60  ;;  %v8991_v14 = vmul.f32 %v5717_v35, %v4162_v47  ;;  %v8993_v52 = vmul.f32 %v5717_v35, %v4163_v4  ;;  %v5749_v42 = vld [vmem:[%s6154_s28] sm:$0xff]  ;;  %v5750_v47 = vld [vmem:[%s6154_s28 + $0x8] sm:$0xff] }
 0x512   : > { %v8995_v10 = vmul.f32 %v5717_v35, %v4164_v21  ;;  %v8997_v41 = vmul.f32 %v5717_v35, %v4165_v18  ;;  %v8999_v38 = vmul.f32 %v5717_v35, %v4166_v7  ;;  %v9001_v62 = vmul.f32 %v5717_v35, %v4167_v26  ;;  %v5753_v7 = vld [vmem:[%s6154_s28 + $0x20] sm:$0xff] }
 0x513   : > { %v9003_v49 = vmul.f32 %v5717_v35, %v4168_v17  ;;  %v4204_v60 = vadd.f32 %v5749_v42, %v4172_v37  ;;  %v4205_v4 = vadd.f32 %v5750_v47, %v4173_v28  ;;  %v4206_v21 = vadd.f32 %v5751_v16, %v4174_v0  ;;  %v5765_v28 = vld [vmem:[%s6154_s28 + $0x80] sm:$0xff]  ;;  %v5779_v42 = vld [vmem:[%s6154_s28 + $0xf0] sm:$0xff] }
 0x514   : > { %v4207_v18 = vadd.f32 %v5752_v51, %v4175_v33  ;;  %v4208_v26 = vadd.f32 %v5753_v7, %v4176_v23  ;;  %v4209_v17 = vadd.f32 %v5754_v30, %v4177_v15  ;;  %v4210_v1 = vadd.f32 %v5755_v34, %v4178_v48  ;;  %v5766_v33 = vld [vmem:[%s6154_s28 + $0x88] sm:$0xff]  ;;  %v5767_v15 = vld [vmem:[%s6154_s28 + $0x90] sm:$0xff] }
 0x515   : > { %v4211_v20 = vadd.f32 %v5756_v45, %v4179_v53  ;;  %v4212_v11 = vadd.f32 %v5757_v25, %v4180_v55  ;;  %v4213_v63 = vadd.f32 %v5758_v50, %v4181_v40  ;;  %v4214_v58 = vadd.f32 %v5759_v39, %v4182_v6  ;;  %4236 = vst [vmem:[%s8978_s18] sm:$0xff] %v4204_v60  ;;  %v5769_v53 = vld [vmem:[%s6154_s28 + $0xa0] sm:$0xff]  ;;  %v5770_v40 = vld [vmem:[%s6154_s28 + $0xa8] sm:$0xff] }
 0x516   : > { %4237 = vst [vmem:[%s8978_s18 + $0x8] sm:$0xff] %v4205_v4  ;;  %4238 = vst [vmem:[%s8978_s18 + $0x10] sm:$0xff] %v4206_v21  ;;  %v4215_v5 = vadd.f32 %v5760_v54, %v4183_v61  ;;  %v4216_v35 = vadd.f32 %v5761_v59, %v4184_v36  ;;  %v4217_v2 = vadd.f32 %v5762_v57, %v4185_v19  ;;  %v5771_v61 = vld [vmem:[%s6154_s28 + $0xb0] sm:$0xff]  ;;  %v5772_v19 = vld [vmem:[%s6154_s28 + $0xb8] sm:$0xff] }
 0x517   : > { %v4218_v56 = vadd.f32 %v5763_v27, %v4186_v3  ;;  %4239 = vst [vmem:[%s8978_s18 + $0x18] sm:$0xff] %v4207_v18  ;;  %4240 = vst [vmem:[%s8978_s18 + $0x20] sm:$0xff] %v4208_v26  ;;  %v4219_v37 = vadd.f32 %v5764_v32, %v4187_v12  ;;  %v4220_v0 = vadd.f32 %v5765_v28, %v4188_v24  ;;  %v5773_v12 = vld [vmem:[%s6154_s28 + $0xc0] sm:$0xff] }
 0x518   : > { %4241 = vst [vmem:[%s8978_s18 + $0x28] sm:$0xff] %v4209_v17  ;;  %4242 = vst [vmem:[%s8978_s18 + $0x30] sm:$0xff] %v4210_v1  ;;  %v4221_v23 = vadd.f32 %v5766_v33, %v4189_v22  ;;  %v4222_v48 = vadd.f32 %v5767_v15, %v4190_v13  ;;  %v4223_v43 = vadd.f32 %v5768_v31, %v8981_v29  ;;  %v5774_v22 = vld [vmem:[%s6154_s28 + $0xc8] sm:$0xff]  ;;  %v5775_v29 = vld [vmem:[%s6154_s28 + $0xd0] sm:$0xff] }
 0x519   : > { %4243 = vst [vmem:[%s8978_s18 + $0x38] sm:$0xff] %v4211_v20  ;;  %4244 = vst [vmem:[%s8978_s18 + $0x40] sm:$0xff] %v4212_v11  ;;  %v4224_v55 = vadd.f32 %v5769_v53, %v8983_v9  ;;  %v4225_v6 = vadd.f32 %v5770_v40, %v8985_v8  ;;  %v4226_v36 = vadd.f32 %v5771_v61, %v8987_v46  ;;  %v5776_v8 = vld [vmem:[%s6154_s28 + $0xd8] sm:$0xff] }
 0x51a   : > { %4245 = vst [vmem:[%s8978_s18 + $0x48] sm:$0xff] %v4213_v63  ;;  %4246 = vst [vmem:[%s8978_s18 + $0x50] sm:$0xff] %v4214_v58  ;;  %v4227_v3 = vadd.f32 %v5772_v19, %v8989_v44  ;;  %v4228_v24 = vadd.f32 %v5773_v12, %v8991_v14  ;;  %v4229_v13 = vadd.f32 %v5774_v22, %v8993_v52  ;;  %v5777_v44 = vld [vmem:[%s6154_s28 + $0xe0] sm:$0xff]  ;;  %v5778_v52 = vld [vmem:[%s6154_s28 + $0xe8] sm:$0xff] }
 0x51b   : > { %4247 = vst [vmem:[%s8978_s18 + $0x58] sm:$0xff] %v4215_v5  ;;  %4248 = vst [vmem:[%s8978_s18 + $0x60] sm:$0xff] %v4216_v35  ;;  %v4230_v9 = vadd.f32 %v5775_v29, %v8995_v10  ;;  %v4231_v46 = vadd.f32 %v5776_v8, %v8997_v41  ;;  %v4232_v14 = vadd.f32 %v5777_v44, %v8999_v38 }
 0x51c   : > { %4249 = vst [vmem:[%s8978_s18 + $0x68] sm:$0xff] %v4217_v2  ;;  %4250 = vst [vmem:[%s8978_s18 + $0x70] sm:$0xff] %v4218_v56  ;;  %v4233_v10 = vadd.f32 %v5778_v52, %v9001_v62  ;;  %v4234_v60 = vadd.f32 %v5779_v42, %v9003_v49 }
 0x51d   : > { %4251 = vst [vmem:[%s8978_s18 + $0x78] sm:$0xff] %v4219_v37  ;;  %4252 = vst [vmem:[%s8978_s18 + $0x80] sm:$0xff] %v4220_v0 }
 0x51e   : > { %4253 = vst [vmem:[%s8978_s18 + $0x88] sm:$0xff] %v4221_v23  ;;  %4254 = vst [vmem:[%s8978_s18 + $0x90] sm:$0xff] %v4222_v48 }
 0x51f   : > { %4255 = vst [vmem:[%s8978_s18 + $0x98] sm:$0xff] %v4223_v43  ;;  %4256 = vst [vmem:[%s8978_s18 + $0xa0] sm:$0xff] %v4224_v55 }
 0x520   : > { %4257 = vst [vmem:[%s8978_s18 + $0xa8] sm:$0xff] %v4225_v6  ;;  %4258 = vst [vmem:[%s8978_s18 + $0xb0] sm:$0xff] %v4226_v36 }
 0x521   : > { %4259 = vst [vmem:[%s8978_s18 + $0xb8] sm:$0xff] %v4227_v3  ;;  %4260 = vst [vmem:[%s8978_s18 + $0xc0] sm:$0xff] %v4228_v24 }
 0x522   : > { %4261 = vst [vmem:[%s8978_s18 + $0xc8] sm:$0xff] %v4229_v13  ;;  %4262 = vst [vmem:[%s8978_s18 + $0xd0] sm:$0xff] %v4230_v9 }
 0x523   : > { %4263 = vst [vmem:[%s8978_s18 + $0xd8] sm:$0xff] %v4231_v46  ;;  %4264 = vst [vmem:[%s8978_s18 + $0xe0] sm:$0xff] %v4232_v14 }
 0x524   : > { %4265 = vst [vmem:[%s8978_s18 + $0xe8] sm:$0xff] %v4233_v10  ;;  %4266 = vst [vmem:[%s8978_s18 + $0xf0] sm:$0xff] %v4234_v60 }
 0x525   : > { %5879 = shalt.err (!%p5876_p1)
}
 0x526   : > { %s5880_s10 = scalar_lea.hbm %s9066_s27, 4096  ;;  %s5884_s26 = scalar_lea.hbm %s9137_s3, 8192 }
 0x527   : > { %p5881_p13 = scmp.ne.s32.totalorder %s9066_s27, %s5880_s10  ;;  %p5885_p4 = scmp.lt.u32.totalorder %s9066_s27, %s9137_s3 }
 0x528   : > { %p5886_p5 = scmp.lt.u32.totalorder %s5884_s26, %s5880_s10  ;;  %p5888_p11 = scmp.lt.u32.totalorder %s5880_s10, %s9066_s27 }
 0x529   : > { %p5882_p6 = pnand %p5881_p13, %p9571_p0 }
 0x52a   : > { %p5887_p8 = por %p5886_p5, %p5885_p4 }
 0x52b   : > { %p5883_p10 = pneg %p5882_p6 }
 0x52c   : > { %p5889_p2 = por %p5888_p11, %p5887_p8 }
 0x52e   : > { %p5890_p3 = pnand %p5889_p2, %p5883_p10 }
 0x530   : > { %5893 = shalt.err (!%p5890_p3)
}
 0x531   : > { %s5945_s28 = smov 128   ;;  %s5946_s18 = smov 8  }
 0x532   : > { %5652 = dma.vmem_to_hbm [thread:$0]  (%p9571_p0), %s9070_s7, 4096, %s9066_s27, %s4269_s16, %s5945_s28, %s5945_s28, %s5946_s18  }
 0x533 PF: > { %s4297_s20 = sand.u32 1, %s5924_s12   ;;  %p9572_p7 = scmp.ne.s32.totalorder %s9306_s19, 0 }
 0x534   : > { %p9573_p9 = scmp.ge.s32.totalorder %s5936_s15, 2  ;;  %s4298_s8 = scalar_lea.sflag [#allocation4], %s4297_s20 }
 0x536   : > { %p5666_p12 = pnand %p9573_p9, %p9572_p7 }
 0x538   : > { %5919 = dma.done.wait (!%p5666_p12), %s4298_s8, 4096  }
 0x539   : > { %5921 = vsyncadd (!%p5666_p12), %s4298_s8, 4294963200  ;;  %p17_p1 = scmp.ge.s32.totalorder %s6083_s23, 4   ;;  %s9574_s12 = smov %s5928_s13 }
 0x53a   : > { %s9575_s13 = smov %s5932_s14  ;;  %s9576_s14 = smov %s6099_s9 }
 0x53b   : > { %s9577_s15 = smov %s6083_s23  ;;  %19 = sbr.rel (!%p17_p1) target bundleno = 6 (0x6), region = 89 }
 0x542   :  { %4303 = vsyncpa [#allocation3], 1 }
 0x543   :  { %4305 = vsyncpa [#allocation3 + $0x1], 1 }
 0x544   :  { %4306 = vsyncpa [#allocation6], 1 }
 0x545   :  { %4307 = vsyncpa [#allocation4], 1 }
 0x546   :  { %4309 = vsyncpa [#allocation4 + $0x1], 1 }

</bundles_post_ra>
